<compile_context>
chip_gen: v7x
topology: tpu7x:2x2x1
jax: 0.10.0
libtpu: 0.0.40
codegen_flags: <defaults>
</compile_context>

<pallas_src>
import functools
import math

import jax
import jax.numpy as jnp
from jax.experimental import pallas as pl
from jax.experimental.pallas import tpu as pltpu

ALPHA = 0.1
BETA = 0.01
BN_EPS = 1e-5

_COMPILER_PARAMS = pltpu.CompilerParams(
    dimension_semantics=("arbitrary",),
    vmem_limit_bytes=32 * 1024 * 1024,
)


# ----------------------------- in-kernel helpers -----------------------------

def _sigmoid(z):
    # numerically stable logistic via tanh (EUP); avoids exp overflow for large |z|
    return 0.5 * (jnp.tanh(0.5 * z) + 1.0)


def _rownorm(m):
    """Row-normalize (pre-normalisation form of torch cosine_sim; norm clamped ~1e-15)."""
    return m * jax.lax.rsqrt(jnp.maximum(jnp.sum(m * m, axis=1, keepdims=True), 1e-30))


def _gram(a, b):
    """a @ b.T without an explicit transpose (contract the feature dims)."""
    return jax.lax.dot_general(a, b, (((1,), (1,)), ((), ())),
                               preferred_element_type=jnp.float32)


def _bn_train(x, gamma, beta):
    """Training-mode BatchNorm1d over rows of x:(M,C), biased variance (PyTorch forward)."""
    m = x.shape[0]
    mean = jnp.sum(x, axis=0, keepdims=True) * (1.0 / m)
    xc = x - mean
    var = jnp.sum(xc * xc, axis=0, keepdims=True) * (1.0 / m)
    return xc * jax.lax.rsqrt(var + BN_EPS) * gamma + beta


def _bn_two_halves(x, gamma, beta, half):
    """BatchNorm1d on a stacked (2B, C) activation with statistics per B-row half
    (mask-based segmented stats; matches two independent PyTorch BN calls)."""
    rows = x.shape[0]
    rid = jax.lax.broadcasted_iota(jnp.int32, (rows, 1), 0)
    wt = (rid < half).astype(jnp.float32)
    wb = 1.0 - wt
    inv = 1.0 / half
    mean = wt * (jnp.sum(x * wt, axis=0, keepdims=True) * inv) + \
           wb * (jnp.sum(x * wb, axis=0, keepdims=True) * inv)
    xc = x - mean
    sq = xc * xc
    var = wt * (jnp.sum(sq * wt, axis=0, keepdims=True) * inv) + \
          wb * (jnp.sum(sq * wb, axis=0, keepdims=True) * inv)
    return xc * jax.lax.rsqrt(var + BN_EPS) * gamma + beta


# ----------------------------- fully fused stage-1 kernel -----------------------------

def _stage1_kernel(xs1_ref, xs2_ref, y_ref,
                   fv_w1, fv_p1, fv_w2, fv_p2,
                   sv_w1, sv_p1, sv_w2, sv_p2,
                   e1_w, e1_p, e2_w, e2_p,
                   fin_w, fin_b, wn_w, wn_b,
                   logits_ref, probs_ref, losses_ref,
                   *, num_class, weighted, multi_label, compute_l2, compute_l3):
    B = y_ref.shape[0]
    Cp = y_ref.shape[1]
    HID = e1_w.shape[1]
    Bf = float(B)

    def layer_pair(h, w_ref, p_ref):
        """[Linear -> ReLU -> BatchNorm1d] on a stacked (2B, K) activation, per-half BN stats."""
        p = p_ref[...]                                   # (3, N): rows = bias, gamma, beta
        z = jnp.dot(h, w_ref[...], preferred_element_type=jnp.float32) + p[0:1, :]
        z = jnp.maximum(z, 0.0)                          # ReLU before BN (matches nn.Sequential)
        return _bn_two_halves(z, p[1:2, :], p[2:3, :], B)

    # ---- trunks on stacked [batch1 ; batch2] inputs (weights loaded once, one MXU pass) ----
    hv1 = layer_pair(layer_pair(xs1_ref[...], fv_w1, fv_p1), fv_w2, fv_p2)   # (2B, HID)
    hv2 = layer_pair(layer_pair(xs2_ref[...], sv_w1, sv_p1), sv_w2, sv_p2)   # (2B, HID)
    f1 = hv1[0:B, :]                                     # x1_v1_feature
    f2 = hv2[0:B, :]                                     # x1_v2_feature

    # ---- head: final linear on implicit concat [f1 | f2] via split weight, + sigmoid + BCE ----
    wf = fin_w[...]
    z = (jnp.dot(f1, wf[0:HID, :], preferred_element_type=jnp.float32)
         + jnp.dot(f2, wf[HID:, :], preferred_element_type=jnp.float32)
         + fin_b[...])                                   # (B, Cp)
    logits_ref[...] = z
    probs_ref[...] = _sigmoid(z)
    y = y_ref[...]
    lane = jax.lax.broadcasted_iota(jnp.int32, (1, Cp), 1)
    colmask = (lane < num_class).astype(jnp.float32)     # padded class columns do not count
    per = (jnp.maximum(z, 0.0) - z * y + jnp.log(1.0 + jnp.exp(-jnp.abs(z)))) * colmask
    bce = jnp.sum(jnp.sum(per, axis=1, keepdims=True), axis=0, keepdims=True) * (
        1.0 / (B * num_class))                           # (1,1) mean reduction

    # ---- l2: weighted unsupervised contrastive loss ----
    l2 = jnp.zeros((1, 1), jnp.float32)
    if compute_l2:
        v1f = layer_pair(hv1, e1_w, e1_p)                # = cat([e1(x1_v1), e1(x2_v1)], dim=0)
        v2f = layer_pair(hv2, e2_w, e2_p)                # = cat([e2(x1_v2), e2(x2_v2)], dim=0)
        v1n = _rownorm(v1f)
        v2n = _rownorm(v2f)
        similarity = jnp.exp(_gram(v1n, v2n))            # exp_cosine_sim(v1_feature, v2_feature)
        if weighted:
            ww = wn_w[...]
            wb_ = wn_b[...]
            wn1 = _rownorm(_sigmoid(jnp.dot(v1f, ww, preferred_element_type=jnp.float32) + wb_))
            wn2 = _rownorm(_sigmoid(jnp.dot(v2f, ww, preferred_element_type=jnp.float32) + wb_))
            sim = 0.5 * (jnp.exp(1.0 - _gram(wn1, v2n)) + jnp.exp(1.0 - _gram(wn2, v1n)))
            wsim = sim * similarity
        else:
            wsim = similarity
        n = 2 * B
        ri = jax.lax.broadcasted_iota(jnp.int32, (n, n), 0)
        ci = jax.lax.broadcasted_iota(jnp.int32, (n, n), 1)
        eye = (ri == ci).astype(jnp.float32)
        colsum = jnp.sum(wsim, axis=0, keepdims=True)               # (1, 2B)
        diag = jnp.sum(similarity * eye, axis=0, keepdims=True)     # (1, 2B)
        t = jnp.log(colsum) - jnp.log(diag)
        l2 = jnp.sum(t, axis=1, keepdims=True) * (1.0 / n) - math.log(2.0 * B)

    # ---- l3: per-class supervised contrastive loss on all_feature = [f1 | f2] ----
    l3 = jnp.zeros((1, 1), jnp.float32)
    if compute_l3:
        inv_nrm = jax.lax.rsqrt(jnp.maximum(
            jnp.sum(f1 * f1, axis=1, keepdims=True) +
            jnp.sum(f2 * f2, axis=1, keepdims=True), 1e-30))        # (B,1)
        f1n = f1 * inv_nrm
        f2n = f2 * inv_nrm
        E = jnp.exp(_gram(f1n, f1n) + _gram(f2n, f2n))              # exp_cos(all_feature, all_feature)
        if multi_label:
            dist = _gram(y, 1.0 - y) + _gram(1.0 - y, y)            # hamming distance (B,B)
            posdis = E * (1.0 - dist * (1.0 / num_class))           # E * pos_weight
            negmat = E * dist                                       # E * neg_weight
        else:
            posdis = E
            negmat = E
        logP = jnp.log(posdis + 1e-30)                              # hoisted out of the class loop
        Lt = jnp.transpose(y)                                       # (Cp, B)
        # all per-class negative sums in ONE matmul: Nt[i,k] = sum_n (1-L[n,i]) * negmat[k,n]
        Nt = jnp.dot(1.0 - Lt, negmat, preferred_element_type=jnp.float32)   # (Cp, B)
        acc = jnp.zeros((1, 1), jnp.float32)
        for i in range(num_class):                                  # static unroll, C is small
            p_col = y[:, i:i + 1]                                   # (B,1) positive indicator
            p_row = Lt[i:i + 1, :]                                  # (1,B)
            nrow = Nt[i:i + 1, :]                                   # (1,B) per-anchor neg sum
            mask = p_col * p_row                                    # (B,B) pos x pos pairs
            log_den = jnp.log(posdis + nrow + 1e-30)                # den[j,k] = negsum[k]+posdis[j,k]
            t1 = jnp.sum(jnp.sum(mask * log_den, axis=1, keepdims=True), axis=0, keepdims=True)
            s2 = jnp.sum(jnp.sum(mask * logP, axis=1, keepdims=True), axis=0, keepdims=True)
            pcnt = jnp.sum(p_col, axis=0, keepdims=True)            # (1,1) #positives
            psq = pcnt * pcnt
            size_i = (Bf - pcnt) + 1.0                              # #negatives + 1
            # classes with no positives contribute exactly 0 (t1 = s2 = psq = 0)
            acc = acc + (t1 - s2 - psq * jnp.log(size_i)) / jnp.maximum(psq, 1.0)
        l3 = acc

    # ---- pack the three scalars into one lane-dense (1, Cp) store ----
    slot = jax.lax.broadcasted_iota(jnp.int32, (1, Cp), 1)
    losses_ref[...] = (bce * (slot == 0).astype(jnp.float32)
                       + l2 * (slot == 1).astype(jnp.float32)
                       + l3 * (slot == 2).astype(jnp.float32))


# ----------------------------- stage != 1 (inference head only) -----------------------------

def _stage2_kernel(x_ref, v_ref,
                   fv_w1, fv_p1, fv_w2, fv_p2,
                   sv_w1, sv_p1, sv_w2, sv_p2,
                   fin_w, fin_b, logits_ref):
    HID = fv_w2.shape[1]

    def layer(h, w_ref, p_ref):
        p = p_ref[...]
        z = jnp.maximum(jnp.dot(h, w_ref[...], preferred_element_type=jnp.float32) + p[0:1, :], 0.0)
        return _bn_train(z, p[1:2, :], p[2:3, :])

    f1 = layer(layer(x_ref[...], fv_w1, fv_p1), fv_w2, fv_p2)
    f2 = layer(layer(v_ref[...], sv_w1, sv_p1), sv_w2, sv_p2)
    wf = fin_w[...]
    logits_ref[...] = (jnp.dot(f1, wf[0:HID, :], preferred_element_type=jnp.float32)
                       + jnp.dot(f2, wf[HID:, :], preferred_element_type=jnp.float32)
                       + fin_b[...])


# ----------------------------- pallas_call wrappers -----------------------------

def _full_spec(a):
    return pl.BlockSpec(a.shape, lambda i: (0, 0))


def stage1_pallas(params, xs1, xs2, labels_p, *, num_class, weighted, multi_label,
                  compute_l2, compute_l3):
    B = xs1.shape[0] // 2
    Cp = labels_p.shape[1]
    fv, sv = params["first_view"], params["second_view"]
    args = [xs1, xs2, labels_p,
            fv["l1"]["w"], fv["l1"]["bgb"], fv["l2"]["w"], fv["l2"]["bgb"],
            sv["l1"]["w"], sv["l1"]["bgb"], sv["l2"]["w"], sv["l2"]["bgb"],
            params["e1"]["w"], params["e1"]["bgb"],
            params["e2"]["w"], params["e2"]["bgb"],
            params["final"]["w"], params["final"]["b"],
            params["wnet"]["w"], params["wnet"]["b"]]
    kern = functools.partial(_stage1_kernel, num_class=num_class, weighted=weighted,
                             multi_label=multi_label,
                             compute_l2=compute_l2, compute_l3=compute_l3)
    return pl.pallas_call(
        kern,
        out_shape=(jax.ShapeDtypeStruct((B, Cp), jnp.float32),   # logits (padded classes)
                   jax.ShapeDtypeStruct((B, Cp), jnp.float32),   # sigmoid probs (padded classes)
                   jax.ShapeDtypeStruct((1, Cp), jnp.float32)),  # packed [bce, l2, l3, 0...]
        grid=(1,),
        in_specs=[_full_spec(a) for a in args],
        out_specs=(pl.BlockSpec((B, Cp), lambda i: (0, 0)),
                   pl.BlockSpec((B, Cp), lambda i: (0, 0)),
                   pl.BlockSpec((1, Cp), lambda i: (0, 0))),
        compiler_params=_COMPILER_PARAMS,
    )(*args)


def stage2_pallas(params, x, x_v2):
    B = x.shape[0]
    Cp = params["final"]["w"].shape[1]
    fv, sv = params["first_view"], params["second_view"]
    args = [x, x_v2,
            fv["l1"]["w"], fv["l1"]["bgb"], fv["l2"]["w"], fv["l2"]["bgb"],
            sv["l1"]["w"], sv["l1"]["bgb"], sv["l2"]["w"], sv["l2"]["bgb"],
            params["final"]["w"], params["final"]["b"]]
    return pl.pallas_call(
        _stage2_kernel,
        out_shape=jax.ShapeDtypeStruct((B, Cp), jnp.float32),
        grid=(1,),
        in_specs=[_full_spec(a) for a in args],
        out_specs=pl.BlockSpec((B, Cp), lambda i: (0, 0)),
        compiler_params=_COMPILER_PARAMS,
    )(*args)


# ----------------------------- forward -----------------------------

def mlcpc_forward(params, x, x2=None, x_v2=None, x2_v2=None, labels=None,
                  num_class=None, stage=1, weighted_unsup=True, multi_label=True,
                  alpha=ALPHA, beta=BETA):
    x = x.astype(jnp.float32)
    x_v2 = x_v2.astype(jnp.float32)
    Cp = params["final"]["w"].shape[1]

    if stage != 1:
        logits = stage2_pallas(params, x, x_v2)[:, :num_class]
        probs = jax.nn.sigmoid(logits) if multi_label else jax.nn.softmax(logits, axis=1)
        return [None], probs, None

    B = x.shape[0]
    x2 = x if x2 is None else x2.astype(jnp.float32)
    x2_v2 = x_v2 if x2_v2 is None else x2_v2.astype(jnp.float32)

    # stack the two sample batches so each trunk / projection runs once
    # (BN statistics are computed per B-row half inside the kernel).
    xs1 = jnp.concatenate([x, x2], axis=0)
    xs2 = jnp.concatenate([x_v2, x2_v2], axis=0)
    labels_p = jnp.zeros((B, Cp), jnp.float32).at[:, :num_class].set(labels.astype(jnp.float32))

    logits_p, probs_p, losses = stage1_pallas(
        params, xs1, xs2, labels_p, num_class=num_class, weighted=weighted_unsup,
        multi_label=multi_label, compute_l2=(alpha != 0), compute_l3=(beta != 0))

    loss = losses[0, 0]
    l2 = losses[0, 1]
    l3 = losses[0, 2]
    probs = probs_p[:, :num_class] if multi_label else jax.nn.softmax(logits_p[:, :num_class], axis=1)
    return [loss, alpha * l2, beta * l3], probs, None


# ----------------------------- parameters -----------------------------

def init_params(key, num_class, d_feature, d_2, hid=200):
    Cp = ((num_class + 127) // 128) * 128                 # lane-dense padded class dim
    keys = iter(jax.random.split(key, 32))

    def dense(fan_in, shape):
        return jax.random.normal(next(keys), shape, jnp.float32) / jnp.sqrt(float(fan_in))

    def lin_bn(din, dout):
        w = dense(din, (din, dout))
        b = dense(din, (dout,))
        bgb = jnp.stack([b, jnp.ones((dout,), jnp.float32), jnp.zeros((dout,), jnp.float32)],
                        axis=0)                            # packed (bias, gamma, beta)
        return dict(w=w, bgb=bgb)

    fw = dense(2 * hid, (2 * hid, num_class))
    fb = dense(2 * hid, (num_class,))
    final = dict(
        w=jnp.zeros((2 * hid, Cp), jnp.float32).at[:, :num_class].set(fw),
        b=jnp.zeros((1, Cp), jnp.float32).at[:, :num_class].set(fb.reshape(1, -1)))

    return dict(
        first_view=dict(l1=lin_bn(d_feature, 200), l2=lin_bn(200, hid)),
        second_view=dict(l1=lin_bn(d_2, 200), l2=lin_bn(200, hid)),
        e1=lin_bn(hid, hid),
        e2=lin_bn(hid, hid),
        final=final,
        wnet=dict(w=dense(hid, (hid, hid)), b=dense(hid, (1, hid))),
    )


# ----------------------------- driver -----------------------------

if __name__ == "__main__":
    B = 8
    d_feature, d_2 = 64, 32        # small-shape analogue of the (8520, 112) reference config
    num_class = 6
    hid = 200                      # hard-coded in the reference module

    key = jax.random.PRNGKey(0)
    kx, kxv2, kx2, kx2v2, kl = jax.random.split(key, 5)
    x = jax.random.normal(kx, (B, d_feature), jnp.float32)
    x_v2 = jax.random.normal(kxv2, (B, d_2), jnp.float32)
    x2 = jax.random.normal(kx2, (B, d_feature), jnp.float32)
    x2_v2 = jax.random.normal(kx2v2, (B, d_2), jnp.float32)
    labels = jax.random.bernoulli(kl, 0.5, (B, num_class)).astype(jnp.float32)

    params = init_params(jax.random.PRNGKey(42), num_class, d_feature, d_2, hid=hid)

    fwd = jax.jit(functools.partial(mlcpc_forward, num_class=num_class, stage=1,
                                    weighted_unsup=True, multi_label=True))
    losses, probs, _ = fwd(params, x, x2=x2, x_v2=x_v2, x2_v2=x2_v2, labels=labels)
    jax.block_until_ready((losses, probs))
    print("KERNEL_OK")
</pallas_src>

<mosaic_0001>
module attributes {stable_mosaic.version = 11 : i64} {
  func.func @_stage1_kernel(%arg0: i32, %arg1: memref<16x64xf32, #tpu.memory_space<vmem>>, %arg2: memref<16x32xf32, #tpu.memory_space<vmem>>, %arg3: memref<8x128xf32, #tpu.memory_space<vmem>>, %arg4: memref<64x200xf32, #tpu.memory_space<vmem>>, %arg5: memref<3x200xf32, #tpu.memory_space<vmem>>, %arg6: memref<200x200xf32, #tpu.memory_space<vmem>>, %arg7: memref<3x200xf32, #tpu.memory_space<vmem>>, %arg8: memref<32x200xf32, #tpu.memory_space<vmem>>, %arg9: memref<3x200xf32, #tpu.memory_space<vmem>>, %arg10: memref<200x200xf32, #tpu.memory_space<vmem>>, %arg11: memref<3x200xf32, #tpu.memory_space<vmem>>, %arg12: memref<200x200xf32, #tpu.memory_space<vmem>>, %arg13: memref<3x200xf32, #tpu.memory_space<vmem>>, %arg14: memref<200x200xf32, #tpu.memory_space<vmem>>, %arg15: memref<3x200xf32, #tpu.memory_space<vmem>>, %arg16: memref<400x128xf32, #tpu.memory_space<vmem>>, %arg17: memref<1x128xf32, #tpu.memory_space<vmem>>, %arg18: memref<200x200xf32, #tpu.memory_space<vmem>>, %arg19: memref<1x200xf32, #tpu.memory_space<vmem>>, %arg20: memref<8x128xf32, #tpu.memory_space<vmem>>, %arg21: memref<8x128xf32, #tpu.memory_space<vmem>>, %arg22: memref<1x128xf32, #tpu.memory_space<vmem>>) attributes {dimension_semantics = [#tpu.dimension_semantics<arbitrary>], iteration_bounds = array<i64: 1>, scalar_prefetch = 0 : i64, scratch_operands = 0 : i64, tpu.core_type = #tpu.core_type<tc>, window_params = [{pipeline_mode = #tpu.pipeline_mode<synchronous>, transform_indices = @transform_0, window_bounds = array<i64: 16, 64>}, {pipeline_mode = #tpu.pipeline_mode<synchronous>, transform_indices = @transform_1, window_bounds = array<i64: 16, 32>}, {pipeline_mode = #tpu.pipeline_mode<synchronous>, transform_indices = @transform_2, window_bounds = array<i64: 8, 128>}, {pipeline_mode = #tpu.pipeline_mode<synchronous>, transform_indices = @transform_3, window_bounds = array<i64: 64, 200>}, {pipeline_mode = #tpu.pipeline_mode<synchronous>, transform_indices = @transform_4, window_bounds = array<i64: 3, 200>}, {pipeline_mode = #tpu.pipeline_mode<synchronous>, transform_indices = @transform_5, window_bounds = array<i64: 200, 200>}, {pipeline_mode = #tpu.pipeline_mode<synchronous>, transform_indices = @transform_6, window_bounds = array<i64: 3, 200>}, {pipeline_mode = #tpu.pipeline_mode<synchronous>, transform_indices = @transform_7, window_bounds = array<i64: 32, 200>}, {pipeline_mode = #tpu.pipeline_mode<synchronous>, transform_indices = @transform_8, window_bounds = array<i64: 3, 200>}, {pipeline_mode = #tpu.pipeline_mode<synchronous>, transform_indices = @transform_9, window_bounds = array<i64: 200, 200>}, {pipeline_mode = #tpu.pipeline_mode<synchronous>, transform_indices = @transform_10, window_bounds = array<i64: 3, 200>}, {pipeline_mode = #tpu.pipeline_mode<synchronous>, transform_indices = @transform_11, window_bounds = array<i64: 200, 200>}, {pipeline_mode = #tpu.pipeline_mode<synchronous>, transform_indices = @transform_12, window_bounds = array<i64: 3, 200>}, {pipeline_mode = #tpu.pipeline_mode<synchronous>, transform_indices = @transform_13, window_bounds = array<i64: 200, 200>}, {pipeline_mode = #tpu.pipeline_mode<synchronous>, transform_indices = @transform_14, window_bounds = array<i64: 3, 200>}, {pipeline_mode = #tpu.pipeline_mode<synchronous>, transform_indices = @transform_15, window_bounds = array<i64: 400, 128>}, {pipeline_mode = #tpu.pipeline_mode<synchronous>, transform_indices = @transform_16, window_bounds = array<i64: 1, 128>}, {pipeline_mode = #tpu.pipeline_mode<synchronous>, transform_indices = @transform_17, window_bounds = array<i64: 200, 200>}, {pipeline_mode = #tpu.pipeline_mode<synchronous>, transform_indices = @transform_18, window_bounds = array<i64: 1, 200>}, {pipeline_mode = #tpu.pipeline_mode<synchronous>, transform_indices = @transform_19, window_bounds = array<i64: 8, 128>}, {pipeline_mode = #tpu.pipeline_mode<synchronous>, transform_indices = @transform_20, window_bounds = array<i64: 8, 128>}, {pipeline_mode = #tpu.pipeline_mode<synchronous>, transform_indices = @transform_21, window_bounds = array<i64: 1, 128>}]} {
    %c0 = arith.constant 0 : index
    %c0_0 = arith.constant 0 : index
    %0 = vector.load %arg1[%c0, %c0_0] : memref<16x64xf32, #tpu.memory_space<vmem>>, vector<16x64xf32>
    %c0_1 = arith.constant 0 : index
    %c0_2 = arith.constant 0 : index
    %1 = vector.load %arg5[%c0_1, %c0_2] : memref<3x200xf32, #tpu.memory_space<vmem>>, vector<3x200xf32>
    %c0_3 = arith.constant 0 : index
    %c0_4 = arith.constant 0 : index
    %2 = vector.load %arg4[%c0_3, %c0_4] : memref<64x200xf32, #tpu.memory_space<vmem>>, vector<64x200xf32>
    %cst = arith.constant dense<0.000000e+00> : vector<16x200xf32>
    %3 = tpu.matmul %0, %2, %cst {dimension_numbers = #tpu.dot_dimension_numbers<[1], [0], [0], [1], [0, 0, 1, 1], [], []>} : vector<16x64xf32>, vector<64x200xf32>, vector<16x200xf32> -> vector<16x200xf32>
    %4 = vector.extract_strided_slice %1 {offsets = [0, 0], sizes = [1, 200], strides = [1, 1]} : vector<3x200xf32> to vector<1x200xf32>
    %5 = vector.broadcast %4 : vector<1x200xf32> to vector<16x200xf32>
    %6 = arith.addf %3, %5 : vector<16x200xf32>
    %cst_5 = arith.constant 0.000000e+00 : f32
    %7 = vector.broadcast %cst_5 : f32 to vector<16x200xf32>
    %8 = arith.maximumf %6, %7 : vector<16x200xf32>
    %9 = vector.extract_strided_slice %1 {offsets = [1, 0], sizes = [1, 200], strides = [1, 1]} : vector<3x200xf32> to vector<1x200xf32>
    %10 = vector.extract_strided_slice %1 {offsets = [2, 0], sizes = [1, 200], strides = [1, 1]} : vector<3x200xf32> to vector<1x200xf32>
    %11 = tpu.iota {dimensions = array<i32: 0>} : vector<16x1xi32>
    %c8_i32 = arith.constant 8 : i32
    %12 = vector.broadcast %c8_i32 : i32 to vector<16x1xi32>
    %13 = arith.cmpi slt, %11, %12 : vector<16x1xi32>
    %14 = arith.extui %13 : vector<16x1xi1> to vector<16x1xi32>
    %15 = arith.sitofp %14 : vector<16x1xi32> to vector<16x1xf32>
    %cst_6 = arith.constant 1.000000e+00 : f32
    %16 = vector.broadcast %cst_6 : f32 to vector<16x1xf32>
    %17 = arith.subf %16, %15 : vector<16x1xf32>
    %18 = vector.broadcast %15 : vector<16x1xf32> to vector<16x200xf32>
    %19 = arith.mulf %8, %18 : vector<16x200xf32>
    %cst_7 = arith.constant dense<0.000000e+00> : vector<200xf32>
    %20 = vector.multi_reduction <add>, %19, %cst_7 [0] : vector<16x200xf32> to vector<200xf32>
    %21 = vector.shape_cast %20 : vector<200xf32> to vector<1x200xf32>
    %cst_8 = arith.constant 1.250000e-01 : f32
    %22 = vector.broadcast %cst_8 : f32 to vector<1x200xf32>
    %23 = arith.mulf %21, %22 : vector<1x200xf32>
    %24 = vector.broadcast %15 : vector<16x1xf32> to vector<16x200xf32>
    %25 = vector.broadcast %23 : vector<1x200xf32> to vector<16x200xf32>
    %26 = arith.mulf %24, %25 : vector<16x200xf32>
    %27 = vector.broadcast %17 : vector<16x1xf32> to vector<16x200xf32>
    %28 = arith.mulf %8, %27 : vector<16x200xf32>
    %cst_9 = arith.constant dense<0.000000e+00> : vector<200xf32>
    %29 = vector.multi_reduction <add>, %28, %cst_9 [0] : vector<16x200xf32> to vector<200xf32>
    %30 = vector.shape_cast %29 : vector<200xf32> to vector<1x200xf32>
    %cst_10 = arith.constant 1.250000e-01 : f32
    %31 = vector.broadcast %cst_10 : f32 to vector<1x200xf32>
    %32 = arith.mulf %30, %31 : vector<1x200xf32>
    %33 = vector.broadcast %17 : vector<16x1xf32> to vector<16x200xf32>
    %34 = vector.broadcast %32 : vector<1x200xf32> to vector<16x200xf32>
    %35 = arith.mulf %33, %34 : vector<16x200xf32>
    %36 = arith.addf %26, %35 : vector<16x200xf32>
    %37 = arith.subf %8, %36 : vector<16x200xf32>
    %38 = arith.mulf %37, %37 : vector<16x200xf32>
    %39 = vector.broadcast %15 : vector<16x1xf32> to vector<16x200xf32>
    %40 = arith.mulf %38, %39 : vector<16x200xf32>
    %cst_11 = arith.constant dense<0.000000e+00> : vector<200xf32>
    %41 = vector.multi_reduction <add>, %40, %cst_11 [0] : vector<16x200xf32> to vector<200xf32>
    %42 = vector.shape_cast %41 : vector<200xf32> to vector<1x200xf32>
    %cst_12 = arith.constant 1.250000e-01 : f32
    %43 = vector.broadcast %cst_12 : f32 to vector<1x200xf32>
    %44 = arith.mulf %42, %43 : vector<1x200xf32>
    %45 = vector.broadcast %15 : vector<16x1xf32> to vector<16x200xf32>
    %46 = vector.broadcast %44 : vector<1x200xf32> to vector<16x200xf32>
    %47 = arith.mulf %45, %46 : vector<16x200xf32>
    %48 = vector.broadcast %17 : vector<16x1xf32> to vector<16x200xf32>
    %49 = arith.mulf %38, %48 : vector<16x200xf32>
    %cst_13 = arith.constant dense<0.000000e+00> : vector<200xf32>
    %50 = vector.multi_reduction <add>, %49, %cst_13 [0] : vector<16x200xf32> to vector<200xf32>
    %51 = vector.shape_cast %50 : vector<200xf32> to vector<1x200xf32>
    %cst_14 = arith.constant 1.250000e-01 : f32
    %52 = vector.broadcast %cst_14 : f32 to vector<1x200xf32>
    %53 = arith.mulf %51, %52 : vector<1x200xf32>
    %54 = vector.broadcast %17 : vector<16x1xf32> to vector<16x200xf32>
    %55 = vector.broadcast %53 : vector<1x200xf32> to vector<16x200xf32>
    %56 = arith.mulf %54, %55 : vector<16x200xf32>
    %57 = arith.addf %47, %56 : vector<16x200xf32>
    %cst_15 = arith.constant 9.99999974E-6 : f32
    %58 = vector.broadcast %cst_15 : f32 to vector<16x200xf32>
    %59 = arith.addf %57, %58 : vector<16x200xf32>
    %60 = math.rsqrt %59 : vector<16x200xf32>
    %61 = arith.mulf %37, %60 : vector<16x200xf32>
    %62 = vector.broadcast %9 : vector<1x200xf32> to vector<16x200xf32>
    %63 = arith.mulf %61, %62 : vector<16x200xf32>
    %64 = vector.broadcast %10 : vector<1x200xf32> to vector<16x200xf32>
    %65 = arith.addf %63, %64 : vector<16x200xf32>
    %c0_16 = arith.constant 0 : index
    %c0_17 = arith.constant 0 : index
    %66 = vector.load %arg7[%c0_16, %c0_17] : memref<3x200xf32, #tpu.memory_space<vmem>>, vector<3x200xf32>
    %c0_18 = arith.constant 0 : index
    %c0_19 = arith.constant 0 : index
    %67 = vector.load %arg6[%c0_18, %c0_19] : memref<200x200xf32, #tpu.memory_space<vmem>>, vector<200x200xf32>
    %cst_20 = arith.constant dense<0.000000e+00> : vector<16x200xf32>
    %68 = tpu.matmul %65, %67, %cst_20 {dimension_numbers = #tpu.dot_dimension_numbers<[1], [0], [0], [1], [0, 0, 1, 1], [], []>} : vector<16x200xf32>, vector<200x200xf32>, vector<16x200xf32> -> vector<16x200xf32>
    %69 = vector.extract_strided_slice %66 {offsets = [0, 0], sizes = [1, 200], strides = [1, 1]} : vector<3x200xf32> to vector<1x200xf32>
    %70 = vector.broadcast %69 : vector<1x200xf32> to vector<16x200xf32>
    %71 = arith.addf %68, %70 : vector<16x200xf32>
    %cst_21 = arith.constant 0.000000e+00 : f32
    %72 = vector.broadcast %cst_21 : f32 to vector<16x200xf32>
    %73 = arith.maximumf %71, %72 : vector<16x200xf32>
    %74 = vector.extract_strided_slice %66 {offsets = [1, 0], sizes = [1, 200], strides = [1, 1]} : vector<3x200xf32> to vector<1x200xf32>
    %75 = vector.extract_strided_slice %66 {offsets = [2, 0], sizes = [1, 200], strides = [1, 1]} : vector<3x200xf32> to vector<1x200xf32>
    %76 = tpu.iota {dimensions = array<i32: 0>} : vector<16x1xi32>
    %c8_i32_22 = arith.constant 8 : i32
    %77 = vector.broadcast %c8_i32_22 : i32 to vector<16x1xi32>
    %78 = arith.cmpi slt, %76, %77 : vector<16x1xi32>
    %79 = arith.extui %78 : vector<16x1xi1> to vector<16x1xi32>
    %80 = arith.sitofp %79 : vector<16x1xi32> to vector<16x1xf32>
    %cst_23 = arith.constant 1.000000e+00 : f32
    %81 = vector.broadcast %cst_23 : f32 to vector<16x1xf32>
    %82 = arith.subf %81, %80 : vector<16x1xf32>
    %83 = vector.broadcast %80 : vector<16x1xf32> to vector<16x200xf32>
    %84 = arith.mulf %73, %83 : vector<16x200xf32>
    %cst_24 = arith.constant dense<0.000000e+00> : vector<200xf32>
    %85 = vector.multi_reduction <add>, %84, %cst_24 [0] : vector<16x200xf32> to vector<200xf32>
    %86 = vector.shape_cast %85 : vector<200xf32> to vector<1x200xf32>
    %cst_25 = arith.constant 1.250000e-01 : f32
    %87 = vector.broadcast %cst_25 : f32 to vector<1x200xf32>
    %88 = arith.mulf %86, %87 : vector<1x200xf32>
    %89 = vector.broadcast %80 : vector<16x1xf32> to vector<16x200xf32>
    %90 = vector.broadcast %88 : vector<1x200xf32> to vector<16x200xf32>
    %91 = arith.mulf %89, %90 : vector<16x200xf32>
    %92 = vector.broadcast %82 : vector<16x1xf32> to vector<16x200xf32>
    %93 = arith.mulf %73, %92 : vector<16x200xf32>
    %cst_26 = arith.constant dense<0.000000e+00> : vector<200xf32>
    %94 = vector.multi_reduction <add>, %93, %cst_26 [0] : vector<16x200xf32> to vector<200xf32>
    %95 = vector.shape_cast %94 : vector<200xf32> to vector<1x200xf32>
    %cst_27 = arith.constant 1.250000e-01 : f32
    %96 = vector.broadcast %cst_27 : f32 to vector<1x200xf32>
    %97 = arith.mulf %95, %96 : vector<1x200xf32>
    %98 = vector.broadcast %82 : vector<16x1xf32> to vector<16x200xf32>
    %99 = vector.broadcast %97 : vector<1x200xf32> to vector<16x200xf32>
    %100 = arith.mulf %98, %99 : vector<16x200xf32>
    %101 = arith.addf %91, %100 : vector<16x200xf32>
    %102 = arith.subf %73, %101 : vector<16x200xf32>
    %103 = arith.mulf %102, %102 : vector<16x200xf32>
    %104 = vector.broadcast %80 : vector<16x1xf32> to vector<16x200xf32>
    %105 = arith.mulf %103, %104 : vector<16x200xf32>
    %cst_28 = arith.constant dense<0.000000e+00> : vector<200xf32>
    %106 = vector.multi_reduction <add>, %105, %cst_28 [0] : vector<16x200xf32> to vector<200xf32>
    %107 = vector.shape_cast %106 : vector<200xf32> to vector<1x200xf32>
    %cst_29 = arith.constant 1.250000e-01 : f32
    %108 = vector.broadcast %cst_29 : f32 to vector<1x200xf32>
    %109 = arith.mulf %107, %108 : vector<1x200xf32>
    %110 = vector.broadcast %80 : vector<16x1xf32> to vector<16x200xf32>
    %111 = vector.broadcast %109 : vector<1x200xf32> to vector<16x200xf32>
    %112 = arith.mulf %110, %111 : vector<16x200xf32>
    %113 = vector.broadcast %82 : vector<16x1xf32> to vector<16x200xf32>
    %114 = arith.mulf %103, %113 : vector<16x200xf32>
    %cst_30 = arith.constant dense<0.000000e+00> : vector<200xf32>
    %115 = vector.multi_reduction <add>, %114, %cst_30 [0] : vector<16x200xf32> to vector<200xf32>
    %116 = vector.shape_cast %115 : vector<200xf32> to vector<1x200xf32>
    %cst_31 = arith.constant 1.250000e-01 : f32
    %117 = vector.broadcast %cst_31 : f32 to vector<1x200xf32>
    %118 = arith.mulf %116, %117 : vector<1x200xf32>
    %119 = vector.broadcast %82 : vector<16x1xf32> to vector<16x200xf32>
    %120 = vector.broadcast %118 : vector<1x200xf32> to vector<16x200xf32>
    %121 = arith.mulf %119, %120 : vector<16x200xf32>
    %122 = arith.addf %112, %121 : vector<16x200xf32>
    %cst_32 = arith.constant 9.99999974E-6 : f32
    %123 = vector.broadcast %cst_32 : f32 to vector<16x200xf32>
    %124 = arith.addf %122, %123 : vector<16x200xf32>
    %125 = math.rsqrt %124 : vector<16x200xf32>
    %126 = arith.mulf %102, %125 : vector<16x200xf32>
    %127 = vector.broadcast %74 : vector<1x200xf32> to vector<16x200xf32>
    %128 = arith.mulf %126, %127 : vector<16x200xf32>
    %129 = vector.broadcast %75 : vector<1x200xf32> to vector<16x200xf32>
    %130 = arith.addf %128, %129 : vector<16x200xf32>
    %c0_33 = arith.constant 0 : index
    %c0_34 = arith.constant 0 : index
    %131 = vector.load %arg2[%c0_33, %c0_34] : memref<16x32xf32, #tpu.memory_space<vmem>>, vector<16x32xf32>
    %c0_35 = arith.constant 0 : index
    %c0_36 = arith.constant 0 : index
    %132 = vector.load %arg9[%c0_35, %c0_36] : memref<3x200xf32, #tpu.memory_space<vmem>>, vector<3x200xf32>
    %c0_37 = arith.constant 0 : index
    %c0_38 = arith.constant 0 : index
    %133 = vector.load %arg8[%c0_37, %c0_38] : memref<32x200xf32, #tpu.memory_space<vmem>>, vector<32x200xf32>
    %cst_39 = arith.constant dense<0.000000e+00> : vector<16x200xf32>
    %134 = tpu.matmul %131, %133, %cst_39 {dimension_numbers = #tpu.dot_dimension_numbers<[1], [0], [0], [1], [0, 0, 1, 1], [], []>} : vector<16x32xf32>, vector<32x200xf32>, vector<16x200xf32> -> vector<16x200xf32>
    %135 = vector.extract_strided_slice %132 {offsets = [0, 0], sizes = [1, 200], strides = [1, 1]} : vector<3x200xf32> to vector<1x200xf32>
    %136 = vector.broadcast %135 : vector<1x200xf32> to vector<16x200xf32>
    %137 = arith.addf %134, %136 : vector<16x200xf32>
    %cst_40 = arith.constant 0.000000e+00 : f32
    %138 = vector.broadcast %cst_40 : f32 to vector<16x200xf32>
    %139 = arith.maximumf %137, %138 : vector<16x200xf32>
    %140 = vector.extract_strided_slice %132 {offsets = [1, 0], sizes = [1, 200], strides = [1, 1]} : vector<3x200xf32> to vector<1x200xf32>
    %141 = vector.extract_strided_slice %132 {offsets = [2, 0], sizes = [1, 200], strides = [1, 1]} : vector<3x200xf32> to vector<1x200xf32>
    %142 = tpu.iota {dimensions = array<i32: 0>} : vector<16x1xi32>
    %c8_i32_41 = arith.constant 8 : i32
    %143 = vector.broadcast %c8_i32_41 : i32 to vector<16x1xi32>
    %144 = arith.cmpi slt, %142, %143 : vector<16x1xi32>
    %145 = arith.extui %144 : vector<16x1xi1> to vector<16x1xi32>
    %146 = arith.sitofp %145 : vector<16x1xi32> to vector<16x1xf32>
    %cst_42 = arith.constant 1.000000e+00 : f32
    %147 = vector.broadcast %cst_42 : f32 to vector<16x1xf32>
    %148 = arith.subf %147, %146 : vector<16x1xf32>
    %149 = vector.broadcast %146 : vector<16x1xf32> to vector<16x200xf32>
    %150 = arith.mulf %139, %149 : vector<16x200xf32>
    %cst_43 = arith.constant dense<0.000000e+00> : vector<200xf32>
    %151 = vector.multi_reduction <add>, %150, %cst_43 [0] : vector<16x200xf32> to vector<200xf32>
    %152 = vector.shape_cast %151 : vector<200xf32> to vector<1x200xf32>
    %cst_44 = arith.constant 1.250000e-01 : f32
    %153 = vector.broadcast %cst_44 : f32 to vector<1x200xf32>
    %154 = arith.mulf %152, %153 : vector<1x200xf32>
    %155 = vector.broadcast %146 : vector<16x1xf32> to vector<16x200xf32>
    %156 = vector.broadcast %154 : vector<1x200xf32> to vector<16x200xf32>
    %157 = arith.mulf %155, %156 : vector<16x200xf32>
    %158 = vector.broadcast %148 : vector<16x1xf32> to vector<16x200xf32>
    %159 = arith.mulf %139, %158 : vector<16x200xf32>
    %cst_45 = arith.constant dense<0.000000e+00> : vector<200xf32>
    %160 = vector.multi_reduction <add>, %159, %cst_45 [0] : vector<16x200xf32> to vector<200xf32>
    %161 = vector.shape_cast %160 : vector<200xf32> to vector<1x200xf32>
    %cst_46 = arith.constant 1.250000e-01 : f32
    %162 = vector.broadcast %cst_46 : f32 to vector<1x200xf32>
    %163 = arith.mulf %161, %162 : vector<1x200xf32>
    %164 = vector.broadcast %148 : vector<16x1xf32> to vector<16x200xf32>
    %165 = vector.broadcast %163 : vector<1x200xf32> to vector<16x200xf32>
    %166 = arith.mulf %164, %165 : vector<16x200xf32>
    %167 = arith.addf %157, %166 : vector<16x200xf32>
    %168 = arith.subf %139, %167 : vector<16x200xf32>
    %169 = arith.mulf %168, %168 : vector<16x200xf32>
    %170 = vector.broadcast %146 : vector<16x1xf32> to vector<16x200xf32>
    %171 = arith.mulf %169, %170 : vector<16x200xf32>
    %cst_47 = arith.constant dense<0.000000e+00> : vector<200xf32>
    %172 = vector.multi_reduction <add>, %171, %cst_47 [0] : vector<16x200xf32> to vector<200xf32>
    %173 = vector.shape_cast %172 : vector<200xf32> to vector<1x200xf32>
    %cst_48 = arith.constant 1.250000e-01 : f32
    %174 = vector.broadcast %cst_48 : f32 to vector<1x200xf32>
    %175 = arith.mulf %173, %174 : vector<1x200xf32>
    %176 = vector.broadcast %146 : vector<16x1xf32> to vector<16x200xf32>
    %177 = vector.broadcast %175 : vector<1x200xf32> to vector<16x200xf32>
    %178 = arith.mulf %176, %177 : vector<16x200xf32>
    %179 = vector.broadcast %148 : vector<16x1xf32> to vector<16x200xf32>
    %180 = arith.mulf %169, %179 : vector<16x200xf32>
    %cst_49 = arith.constant dense<0.000000e+00> : vector<200xf32>
    %181 = vector.multi_reduction <add>, %180, %cst_49 [0] : vector<16x200xf32> to vector<200xf32>
    %182 = vector.shape_cast %181 : vector<200xf32> to vector<1x200xf32>
    %cst_50 = arith.constant 1.250000e-01 : f32
    %183 = vector.broadcast %cst_50 : f32 to vector<1x200xf32>
    %184 = arith.mulf %182, %183 : vector<1x200xf32>
    %185 = vector.broadcast %148 : vector<16x1xf32> to vector<16x200xf32>
    %186 = vector.broadcast %184 : vector<1x200xf32> to vector<16x200xf32>
    %187 = arith.mulf %185, %186 : vector<16x200xf32>
    %188 = arith.addf %178, %187 : vector<16x200xf32>
    %cst_51 = arith.constant 9.99999974E-6 : f32
    %189 = vector.broadcast %cst_51 : f32 to vector<16x200xf32>
    %190 = arith.addf %188, %189 : vector<16x200xf32>
    %191 = math.rsqrt %190 : vector<16x200xf32>
    %192 = arith.mulf %168, %191 : vector<16x200xf32>
    %193 = vector.broadcast %140 : vector<1x200xf32> to vector<16x200xf32>
    %194 = arith.mulf %192, %193 : vector<16x200xf32>
    %195 = vector.broadcast %141 : vector<1x200xf32> to vector<16x200xf32>
    %196 = arith.addf %194, %195 : vector<16x200xf32>
    %c0_52 = arith.constant 0 : index
    %c0_53 = arith.constant 0 : index
    %197 = vector.load %arg11[%c0_52, %c0_53] : memref<3x200xf32, #tpu.memory_space<vmem>>, vector<3x200xf32>
    %c0_54 = arith.constant 0 : index
    %c0_55 = arith.constant 0 : index
    %198 = vector.load %arg10[%c0_54, %c0_55] : memref<200x200xf32, #tpu.memory_space<vmem>>, vector<200x200xf32>
    %cst_56 = arith.constant dense<0.000000e+00> : vector<16x200xf32>
    %199 = tpu.matmul %196, %198, %cst_56 {dimension_numbers = #tpu.dot_dimension_numbers<[1], [0], [0], [1], [0, 0, 1, 1], [], []>} : vector<16x200xf32>, vector<200x200xf32>, vector<16x200xf32> -> vector<16x200xf32>
    %200 = vector.extract_strided_slice %197 {offsets = [0, 0], sizes = [1, 200], strides = [1, 1]} : vector<3x200xf32> to vector<1x200xf32>
    %201 = vector.broadcast %200 : vector<1x200xf32> to vector<16x200xf32>
    %202 = arith.addf %199, %201 : vector<16x200xf32>
    %cst_57 = arith.constant 0.000000e+00 : f32
    %203 = vector.broadcast %cst_57 : f32 to vector<16x200xf32>
    %204 = arith.maximumf %202, %203 : vector<16x200xf32>
    %205 = vector.extract_strided_slice %197 {offsets = [1, 0], sizes = [1, 200], strides = [1, 1]} : vector<3x200xf32> to vector<1x200xf32>
    %206 = vector.extract_strided_slice %197 {offsets = [2, 0], sizes = [1, 200], strides = [1, 1]} : vector<3x200xf32> to vector<1x200xf32>
    %207 = tpu.iota {dimensions = array<i32: 0>} : vector<16x1xi32>
    %c8_i32_58 = arith.constant 8 : i32
    %208 = vector.broadcast %c8_i32_58 : i32 to vector<16x1xi32>
    %209 = arith.cmpi slt, %207, %208 : vector<16x1xi32>
    %210 = arith.extui %209 : vector<16x1xi1> to vector<16x1xi32>
    %211 = arith.sitofp %210 : vector<16x1xi32> to vector<16x1xf32>
    %cst_59 = arith.constant 1.000000e+00 : f32
    %212 = vector.broadcast %cst_59 : f32 to vector<16x1xf32>
    %213 = arith.subf %212, %211 : vector<16x1xf32>
    %214 = vector.broadcast %211 : vector<16x1xf32> to vector<16x200xf32>
    %215 = arith.mulf %204, %214 : vector<16x200xf32>
    %cst_60 = arith.constant dense<0.000000e+00> : vector<200xf32>
    %216 = vector.multi_reduction <add>, %215, %cst_60 [0] : vector<16x200xf32> to vector<200xf32>
    %217 = vector.shape_cast %216 : vector<200xf32> to vector<1x200xf32>
    %cst_61 = arith.constant 1.250000e-01 : f32
    %218 = vector.broadcast %cst_61 : f32 to vector<1x200xf32>
    %219 = arith.mulf %217, %218 : vector<1x200xf32>
    %220 = vector.broadcast %211 : vector<16x1xf32> to vector<16x200xf32>
    %221 = vector.broadcast %219 : vector<1x200xf32> to vector<16x200xf32>
    %222 = arith.mulf %220, %221 : vector<16x200xf32>
    %223 = vector.broadcast %213 : vector<16x1xf32> to vector<16x200xf32>
    %224 = arith.mulf %204, %223 : vector<16x200xf32>
    %cst_62 = arith.constant dense<0.000000e+00> : vector<200xf32>
    %225 = vector.multi_reduction <add>, %224, %cst_62 [0] : vector<16x200xf32> to vector<200xf32>
    %226 = vector.shape_cast %225 : vector<200xf32> to vector<1x200xf32>
    %cst_63 = arith.constant 1.250000e-01 : f32
    %227 = vector.broadcast %cst_63 : f32 to vector<1x200xf32>
    %228 = arith.mulf %226, %227 : vector<1x200xf32>
    %229 = vector.broadcast %213 : vector<16x1xf32> to vector<16x200xf32>
    %230 = vector.broadcast %228 : vector<1x200xf32> to vector<16x200xf32>
    %231 = arith.mulf %229, %230 : vector<16x200xf32>
    %232 = arith.addf %222, %231 : vector<16x200xf32>
    %233 = arith.subf %204, %232 : vector<16x200xf32>
    %234 = arith.mulf %233, %233 : vector<16x200xf32>
    %235 = vector.broadcast %211 : vector<16x1xf32> to vector<16x200xf32>
    %236 = arith.mulf %234, %235 : vector<16x200xf32>
    %cst_64 = arith.constant dense<0.000000e+00> : vector<200xf32>
    %237 = vector.multi_reduction <add>, %236, %cst_64 [0] : vector<16x200xf32> to vector<200xf32>
    %238 = vector.shape_cast %237 : vector<200xf32> to vector<1x200xf32>
    %cst_65 = arith.constant 1.250000e-01 : f32
    %239 = vector.broadcast %cst_65 : f32 to vector<1x200xf32>
    %240 = arith.mulf %238, %239 : vector<1x200xf32>
    %241 = vector.broadcast %211 : vector<16x1xf32> to vector<16x200xf32>
    %242 = vector.broadcast %240 : vector<1x200xf32> to vector<16x200xf32>
    %243 = arith.mulf %241, %242 : vector<16x200xf32>
    %244 = vector.broadcast %213 : vector<16x1xf32> to vector<16x200xf32>
    %245 = arith.mulf %234, %244 : vector<16x200xf32>
    %cst_66 = arith.constant dense<0.000000e+00> : vector<200xf32>
    %246 = vector.multi_reduction <add>, %245, %cst_66 [0] : vector<16x200xf32> to vector<200xf32>
    %247 = vector.shape_cast %246 : vector<200xf32> to vector<1x200xf32>
    %cst_67 = arith.constant 1.250000e-01 : f32
    %248 = vector.broadcast %cst_67 : f32 to vector<1x200xf32>
    %249 = arith.mulf %247, %248 : vector<1x200xf32>
    %250 = vector.broadcast %213 : vector<16x1xf32> to vector<16x200xf32>
    %251 = vector.broadcast %249 : vector<1x200xf32> to vector<16x200xf32>
    %252 = arith.mulf %250, %251 : vector<16x200xf32>
    %253 = arith.addf %243, %252 : vector<16x200xf32>
    %cst_68 = arith.constant 9.99999974E-6 : f32
    %254 = vector.broadcast %cst_68 : f32 to vector<16x200xf32>
    %255 = arith.addf %253, %254 : vector<16x200xf32>
    %256 = math.rsqrt %255 : vector<16x200xf32>
    %257 = arith.mulf %233, %256 : vector<16x200xf32>
    %258 = vector.broadcast %205 : vector<1x200xf32> to vector<16x200xf32>
    %259 = arith.mulf %257, %258 : vector<16x200xf32>
    %260 = vector.broadcast %206 : vector<1x200xf32> to vector<16x200xf32>
    %261 = arith.addf %259, %260 : vector<16x200xf32>
    %262 = vector.extract_strided_slice %130 {offsets = [0, 0], sizes = [8, 200], strides = [1, 1]} : vector<16x200xf32> to vector<8x200xf32>
    %263 = vector.extract_strided_slice %261 {offsets = [0, 0], sizes = [8, 200], strides = [1, 1]} : vector<16x200xf32> to vector<8x200xf32>
    %c0_69 = arith.constant 0 : index
    %c0_70 = arith.constant 0 : index
    %264 = vector.load %arg16[%c0_69, %c0_70] : memref<400x128xf32, #tpu.memory_space<vmem>>, vector<400x128xf32>
    %265 = vector.extract_strided_slice %264 {offsets = [0, 0], sizes = [200, 128], strides = [1, 1]} : vector<400x128xf32> to vector<200x128xf32>
    %cst_71 = arith.constant dense<0.000000e+00> : vector<8x128xf32>
    %266 = tpu.matmul %262, %265, %cst_71 {dimension_numbers = #tpu.dot_dimension_numbers<[1], [0], [0], [1], [0, 0, 1, 1], [], []>} : vector<8x200xf32>, vector<200x128xf32>, vector<8x128xf32> -> vector<8x128xf32>
    %267 = vector.extract_strided_slice %264 {offsets = [200, 0], sizes = [200, 128], strides = [1, 1]} : vector<400x128xf32> to vector<200x128xf32>
    %cst_72 = arith.constant dense<0.000000e+00> : vector<8x128xf32>
    %268 = tpu.matmul %263, %267, %cst_72 {dimension_numbers = #tpu.dot_dimension_numbers<[1], [0], [0], [1], [0, 0, 1, 1], [], []>} : vector<8x200xf32>, vector<200x128xf32>, vector<8x128xf32> -> vector<8x128xf32>
    %269 = arith.addf %266, %268 : vector<8x128xf32>
    %c0_73 = arith.constant 0 : index
    %c0_74 = arith.constant 0 : index
    %270 = vector.load %arg17[%c0_73, %c0_74] : memref<1x128xf32, #tpu.memory_space<vmem>>, vector<1x128xf32>
    %271 = vector.broadcast %270 : vector<1x128xf32> to vector<8x128xf32>
    %272 = arith.addf %269, %271 : vector<8x128xf32>
    %c0_75 = arith.constant 0 : index
    %c0_76 = arith.constant 0 : index
    %273 = vector.load %arg20[%c0_75, %c0_76] : memref<8x128xf32, #tpu.memory_space<vmem>>, vector<8x128xf32>
    tpu.vector_store %arg20[%c0_75, %c0_76], %272 {strides = array<i32>} : memref<8x128xf32, #tpu.memory_space<vmem>>, vector<8x128xf32>,
    %cst_77 = arith.constant 5.000000e-01 : f32
    %274 = vector.broadcast %cst_77 : f32 to vector<8x128xf32>
    %275 = arith.mulf %274, %272 : vector<8x128xf32>
    %276 = math.tanh %275 : vector<8x128xf32>
    %cst_78 = arith.constant 1.000000e+00 : f32
    %277 = vector.broadcast %cst_78 : f32 to vector<8x128xf32>
    %278 = arith.addf %276, %277 : vector<8x128xf32>
    %cst_79 = arith.constant 5.000000e-01 : f32
    %279 = vector.broadcast %cst_79 : f32 to vector<8x128xf32>
    %280 = arith.mulf %279, %278 : vector<8x128xf32>
    %c0_80 = arith.constant 0 : index
    %c0_81 = arith.constant 0 : index
    %281 = vector.load %arg21[%c0_80, %c0_81] : memref<8x128xf32, #tpu.memory_space<vmem>>, vector<8x128xf32>
    tpu.vector_store %arg21[%c0_80, %c0_81], %280 {strides = array<i32>} : memref<8x128xf32, #tpu.memory_space<vmem>>, vector<8x128xf32>,
    %c0_82 = arith.constant 0 : index
    %c0_83 = arith.constant 0 : index
    %282 = vector.load %arg3[%c0_82, %c0_83] : memref<8x128xf32, #tpu.memory_space<vmem>>, vector<8x128xf32>
    %283 = tpu.iota {dimensions = array<i32: 1>} : vector<1x128xi32>
    %c6_i32 = arith.constant 6 : i32
    %284 = vector.broadcast %c6_i32 : i32 to vector<1x128xi32>
    %285 = arith.cmpi slt, %283, %284 : vector<1x128xi32>
    %286 = arith.extui %285 : vector<1x128xi1> to vector<1x128xi32>
    %287 = arith.sitofp %286 : vector<1x128xi32> to vector<1x128xf32>
    %cst_84 = arith.constant 0.000000e+00 : f32
    %288 = vector.broadcast %cst_84 : f32 to vector<8x128xf32>
    %289 = arith.maximumf %272, %288 : vector<8x128xf32>
    %290 = arith.mulf %272, %282 : vector<8x128xf32>
    %291 = arith.subf %289, %290 : vector<8x128xf32>
    %292 = math.absf %272 : vector<8x128xf32>
    %cst_85 = arith.constant 0.000000e+00 : f32
    %293 = vector.broadcast %cst_85 : f32 to vector<8x128xf32>
    %294 = arith.subf %293, %292 : vector<8x128xf32>
    %295 = math.exp %294 : vector<8x128xf32>
    %cst_86 = arith.constant 1.000000e+00 : f32
    %296 = vector.broadcast %cst_86 : f32 to vector<8x128xf32>
    %297 = arith.addf %296, %295 : vector<8x128xf32>
    %298 = math.log %297 : vector<8x128xf32>
    %299 = arith.addf %291, %298 : vector<8x128xf32>
    %300 = vector.broadcast %287 : vector<1x128xf32> to vector<8x128xf32>
    %301 = arith.mulf %299, %300 : vector<8x128xf32>
    %cst_87 = arith.constant dense<0.000000e+00> : vector<8xf32>
    %302 = vector.multi_reduction <add>, %301, %cst_87 [1] : vector<8x128xf32> to vector<8xf32>
    %303 = vector.shape_cast %302 : vector<8xf32> to vector<8x1xf32>
    %cst_88 = arith.constant dense<0.000000e+00> : vector<1xf32>
    %304 = vector.multi_reduction <add>, %303, %cst_88 [0] : vector<8x1xf32> to vector<1xf32>
    %305 = vector.shape_cast %304 : vector<1xf32> to vector<1x1xf32>
    %cst_89 = arith.constant 0.020833334 : f32
    %306 = vector.broadcast %cst_89 : f32 to vector<1x1xf32>
    %307 = arith.mulf %305, %306 : vector<1x1xf32>
    %c0_90 = arith.constant 0 : index
    %c0_91 = arith.constant 0 : index
    %308 = vector.load %arg13[%c0_90, %c0_91] : memref<3x200xf32, #tpu.memory_space<vmem>>, vector<3x200xf32>
    %c0_92 = arith.constant 0 : index
    %c0_93 = arith.constant 0 : index
    %309 = vector.load %arg12[%c0_92, %c0_93] : memref<200x200xf32, #tpu.memory_space<vmem>>, vector<200x200xf32>
    %cst_94 = arith.constant dense<0.000000e+00> : vector<16x200xf32>
    %310 = tpu.matmul %130, %309, %cst_94 {dimension_numbers = #tpu.dot_dimension_numbers<[1], [0], [0], [1], [0, 0, 1, 1], [], []>} : vector<16x200xf32>, vector<200x200xf32>, vector<16x200xf32> -> vector<16x200xf32>
    %311 = vector.extract_strided_slice %308 {offsets = [0, 0], sizes = [1, 200], strides = [1, 1]} : vector<3x200xf32> to vector<1x200xf32>
    %312 = vector.broadcast %311 : vector<1x200xf32> to vector<16x200xf32>
    %313 = arith.addf %310, %312 : vector<16x200xf32>
    %cst_95 = arith.constant 0.000000e+00 : f32
    %314 = vector.broadcast %cst_95 : f32 to vector<16x200xf32>
    %315 = arith.maximumf %313, %314 : vector<16x200xf32>
    %316 = vector.extract_strided_slice %308 {offsets = [1, 0], sizes = [1, 200], strides = [1, 1]} : vector<3x200xf32> to vector<1x200xf32>
    %317 = vector.extract_strided_slice %308 {offsets = [2, 0], sizes = [1, 200], strides = [1, 1]} : vector<3x200xf32> to vector<1x200xf32>
    %318 = tpu.iota {dimensions = array<i32: 0>} : vector<16x1xi32>
    %c8_i32_96 = arith.constant 8 : i32
    %319 = vector.broadcast %c8_i32_96 : i32 to vector<16x1xi32>
    %320 = arith.cmpi slt, %318, %319 : vector<16x1xi32>
    %321 = arith.extui %320 : vector<16x1xi1> to vector<16x1xi32>
    %322 = arith.sitofp %321 : vector<16x1xi32> to vector<16x1xf32>
    %cst_97 = arith.constant 1.000000e+00 : f32
    %323 = vector.broadcast %cst_97 : f32 to vector<16x1xf32>
    %324 = arith.subf %323, %322 : vector<16x1xf32>
    %325 = vector.broadcast %322 : vector<16x1xf32> to vector<16x200xf32>
    %326 = arith.mulf %315, %325 : vector<16x200xf32>
    %cst_98 = arith.constant dense<0.000000e+00> : vector<200xf32>
    %327 = vector.multi_reduction <add>, %326, %cst_98 [0] : vector<16x200xf32> to vector<200xf32>
    %328 = vector.shape_cast %327 : vector<200xf32> to vector<1x200xf32>
    %cst_99 = arith.constant 1.250000e-01 : f32
    %329 = vector.broadcast %cst_99 : f32 to vector<1x200xf32>
    %330 = arith.mulf %328, %329 : vector<1x200xf32>
    %331 = vector.broadcast %322 : vector<16x1xf32> to vector<16x200xf32>
    %332 = vector.broadcast %330 : vector<1x200xf32> to vector<16x200xf32>
    %333 = arith.mulf %331, %332 : vector<16x200xf32>
    %334 = vector.broadcast %324 : vector<16x1xf32> to vector<16x200xf32>
    %335 = arith.mulf %315, %334 : vector<16x200xf32>
    %cst_100 = arith.constant dense<0.000000e+00> : vector<200xf32>
    %336 = vector.multi_reduction <add>, %335, %cst_100 [0] : vector<16x200xf32> to vector<200xf32>
    %337 = vector.shape_cast %336 : vector<200xf32> to vector<1x200xf32>
    %cst_101 = arith.constant 1.250000e-01 : f32
    %338 = vector.broadcast %cst_101 : f32 to vector<1x200xf32>
    %339 = arith.mulf %337, %338 : vector<1x200xf32>
    %340 = vector.broadcast %324 : vector<16x1xf32> to vector<16x200xf32>
    %341 = vector.broadcast %339 : vector<1x200xf32> to vector<16x200xf32>
    %342 = arith.mulf %340, %341 : vector<16x200xf32>
    %343 = arith.addf %333, %342 : vector<16x200xf32>
    %344 = arith.subf %315, %343 : vector<16x200xf32>
    %345 = arith.mulf %344, %344 : vector<16x200xf32>
    %346 = vector.broadcast %322 : vector<16x1xf32> to vector<16x200xf32>
    %347 = arith.mulf %345, %346 : vector<16x200xf32>
    %cst_102 = arith.constant dense<0.000000e+00> : vector<200xf32>
    %348 = vector.multi_reduction <add>, %347, %cst_102 [0] : vector<16x200xf32> to vector<200xf32>
    %349 = vector.shape_cast %348 : vector<200xf32> to vector<1x200xf32>
    %cst_103 = arith.constant 1.250000e-01 : f32
    %350 = vector.broadcast %cst_103 : f32 to vector<1x200xf32>
    %351 = arith.mulf %349, %350 : vector<1x200xf32>
    %352 = vector.broadcast %322 : vector<16x1xf32> to vector<16x200xf32>
    %353 = vector.broadcast %351 : vector<1x200xf32> to vector<16x200xf32>
    %354 = arith.mulf %352, %353 : vector<16x200xf32>
    %355 = vector.broadcast %324 : vector<16x1xf32> to vector<16x200xf32>
    %356 = arith.mulf %345, %355 : vector<16x200xf32>
    %cst_104 = arith.constant dense<0.000000e+00> : vector<200xf32>
    %357 = vector.multi_reduction <add>, %356, %cst_104 [0] : vector<16x200xf32> to vector<200xf32>
    %358 = vector.shape_cast %357 : vector<200xf32> to vector<1x200xf32>
    %cst_105 = arith.constant 1.250000e-01 : f32
    %359 = vector.broadcast %cst_105 : f32 to vector<1x200xf32>
    %360 = arith.mulf %358, %359 : vector<1x200xf32>
    %361 = vector.broadcast %324 : vector<16x1xf32> to vector<16x200xf32>
    %362 = vector.broadcast %360 : vector<1x200xf32> to vector<16x200xf32>
    %363 = arith.mulf %361, %362 : vector<16x200xf32>
    %364 = arith.addf %354, %363 : vector<16x200xf32>
    %cst_106 = arith.constant 9.99999974E-6 : f32
    %365 = vector.broadcast %cst_106 : f32 to vector<16x200xf32>
    %366 = arith.addf %364, %365 : vector<16x200xf32>
    %367 = math.rsqrt %366 : vector<16x200xf32>
    %368 = arith.mulf %344, %367 : vector<16x200xf32>
    %369 = vector.broadcast %316 : vector<1x200xf32> to vector<16x200xf32>
    %370 = arith.mulf %368, %369 : vector<16x200xf32>
    %371 = vector.broadcast %317 : vector<1x200xf32> to vector<16x200xf32>
    %372 = arith.addf %370, %371 : vector<16x200xf32>
    %c0_107 = arith.constant 0 : index
    %c0_108 = arith.constant 0 : index
    %373 = vector.load %arg15[%c0_107, %c0_108] : memref<3x200xf32, #tpu.memory_space<vmem>>, vector<3x200xf32>
    %c0_109 = arith.constant 0 : index
    %c0_110 = arith.constant 0 : index
    %374 = vector.load %arg14[%c0_109, %c0_110] : memref<200x200xf32, #tpu.memory_space<vmem>>, vector<200x200xf32>
    %cst_111 = arith.constant dense<0.000000e+00> : vector<16x200xf32>
    %375 = tpu.matmul %261, %374, %cst_111 {dimension_numbers = #tpu.dot_dimension_numbers<[1], [0], [0], [1], [0, 0, 1, 1], [], []>} : vector<16x200xf32>, vector<200x200xf32>, vector<16x200xf32> -> vector<16x200xf32>
    %376 = vector.extract_strided_slice %373 {offsets = [0, 0], sizes = [1, 200], strides = [1, 1]} : vector<3x200xf32> to vector<1x200xf32>
    %377 = vector.broadcast %376 : vector<1x200xf32> to vector<16x200xf32>
    %378 = arith.addf %375, %377 : vector<16x200xf32>
    %cst_112 = arith.constant 0.000000e+00 : f32
    %379 = vector.broadcast %cst_112 : f32 to vector<16x200xf32>
    %380 = arith.maximumf %378, %379 : vector<16x200xf32>
    %381 = vector.extract_strided_slice %373 {offsets = [1, 0], sizes = [1, 200], strides = [1, 1]} : vector<3x200xf32> to vector<1x200xf32>
    %382 = vector.extract_strided_slice %373 {offsets = [2, 0], sizes = [1, 200], strides = [1, 1]} : vector<3x200xf32> to vector<1x200xf32>
    %383 = tpu.iota {dimensions = array<i32: 0>} : vector<16x1xi32>
    %c8_i32_113 = arith.constant 8 : i32
    %384 = vector.broadcast %c8_i32_113 : i32 to vector<16x1xi32>
    %385 = arith.cmpi slt, %383, %384 : vector<16x1xi32>
    %386 = arith.extui %385 : vector<16x1xi1> to vector<16x1xi32>
    %387 = arith.sitofp %386 : vector<16x1xi32> to vector<16x1xf32>
    %cst_114 = arith.constant 1.000000e+00 : f32
    %388 = vector.broadcast %cst_114 : f32 to vector<16x1xf32>
    %389 = arith.subf %388, %387 : vector<16x1xf32>
    %390 = vector.broadcast %387 : vector<16x1xf32> to vector<16x200xf32>
    %391 = arith.mulf %380, %390 : vector<16x200xf32>
    %cst_115 = arith.constant dense<0.000000e+00> : vector<200xf32>
    %392 = vector.multi_reduction <add>, %391, %cst_115 [0] : vector<16x200xf32> to vector<200xf32>
    %393 = vector.shape_cast %392 : vector<200xf32> to vector<1x200xf32>
    %cst_116 = arith.constant 1.250000e-01 : f32
    %394 = vector.broadcast %cst_116 : f32 to vector<1x200xf32>
    %395 = arith.mulf %393, %394 : vector<1x200xf32>
    %396 = vector.broadcast %387 : vector<16x1xf32> to vector<16x200xf32>
    %397 = vector.broadcast %395 : vector<1x200xf32> to vector<16x200xf32>
    %398 = arith.mulf %396, %397 : vector<16x200xf32>
    %399 = vector.broadcast %389 : vector<16x1xf32> to vector<16x200xf32>
    %400 = arith.mulf %380, %399 : vector<16x200xf32>
    %cst_117 = arith.constant dense<0.000000e+00> : vector<200xf32>
    %401 = vector.multi_reduction <add>, %400, %cst_117 [0] : vector<16x200xf32> to vector<200xf32>
    %402 = vector.shape_cast %401 : vector<200xf32> to vector<1x200xf32>
    %cst_118 = arith.constant 1.250000e-01 : f32
    %403 = vector.broadcast %cst_118 : f32 to vector<1x200xf32>
    %404 = arith.mulf %402, %403 : vector<1x200xf32>
    %405 = vector.broadcast %389 : vector<16x1xf32> to vector<16x200xf32>
    %406 = vector.broadcast %404 : vector<1x200xf32> to vector<16x200xf32>
    %407 = arith.mulf %405, %406 : vector<16x200xf32>
    %408 = arith.addf %398, %407 : vector<16x200xf32>
    %409 = arith.subf %380, %408 : vector<16x200xf32>
    %410 = arith.mulf %409, %409 : vector<16x200xf32>
    %411 = vector.broadcast %387 : vector<16x1xf32> to vector<16x200xf32>
    %412 = arith.mulf %410, %411 : vector<16x200xf32>
    %cst_119 = arith.constant dense<0.000000e+00> : vector<200xf32>
    %413 = vector.multi_reduction <add>, %412, %cst_119 [0] : vector<16x200xf32> to vector<200xf32>
    %414 = vector.shape_cast %413 : vector<200xf32> to vector<1x200xf32>
    %cst_120 = arith.constant 1.250000e-01 : f32
    %415 = vector.broadcast %cst_120 : f32 to vector<1x200xf32>
    %416 = arith.mulf %414, %415 : vector<1x200xf32>
    %417 = vector.broadcast %387 : vector<16x1xf32> to vector<16x200xf32>
    %418 = vector.broadcast %416 : vector<1x200xf32> to vector<16x200xf32>
    %419 = arith.mulf %417, %418 : vector<16x200xf32>
    %420 = vector.broadcast %389 : vector<16x1xf32> to vector<16x200xf32>
    %421 = arith.mulf %410, %420 : vector<16x200xf32>
    %cst_121 = arith.constant dense<0.000000e+00> : vector<200xf32>
    %422 = vector.multi_reduction <add>, %421, %cst_121 [0] : vector<16x200xf32> to vector<200xf32>
    %423 = vector.shape_cast %422 : vector<200xf32> to vector<1x200xf32>
    %cst_122 = arith.constant 1.250000e-01 : f32
    %424 = vector.broadcast %cst_122 : f32 to vector<1x200xf32>
    %425 = arith.mulf %423, %424 : vector<1x200xf32>
    %426 = vector.broadcast %389 : vector<16x1xf32> to vector<16x200xf32>
    %427 = vector.broadcast %425 : vector<1x200xf32> to vector<16x200xf32>
    %428 = arith.mulf %426, %427 : vector<16x200xf32>
    %429 = arith.addf %419, %428 : vector<16x200xf32>
    %cst_123 = arith.constant 9.99999974E-6 : f32
    %430 = vector.broadcast %cst_123 : f32 to vector<16x200xf32>
    %431 = arith.addf %429, %430 : vector<16x200xf32>
    %432 = math.rsqrt %431 : vector<16x200xf32>
    %433 = arith.mulf %409, %432 : vector<16x200xf32>
    %434 = vector.broadcast %381 : vector<1x200xf32> to vector<16x200xf32>
    %435 = arith.mulf %433, %434 : vector<16x200xf32>
    %436 = vector.broadcast %382 : vector<1x200xf32> to vector<16x200xf32>
    %437 = arith.addf %435, %436 : vector<16x200xf32>
    %438 = arith.mulf %372, %372 : vector<16x200xf32>
    %cst_124 = arith.constant dense<0.000000e+00> : vector<16xf32>
    %439 = vector.multi_reduction <add>, %438, %cst_124 [1] : vector<16x200xf32> to vector<16xf32>
    %440 = vector.shape_cast %439 : vector<16xf32> to vector<16x1xf32>
    %cst_125 = arith.constant 1.000000e-30 : f32
    %441 = vector.broadcast %cst_125 : f32 to vector<16x1xf32>
    %442 = arith.maximumf %440, %441 : vector<16x1xf32>
    %443 = math.rsqrt %442 : vector<16x1xf32>
    %444 = vector.broadcast %443 : vector<16x1xf32> to vector<16x200xf32>
    %445 = arith.mulf %372, %444 : vector<16x200xf32>
    %446 = arith.mulf %437, %437 : vector<16x200xf32>
    %cst_126 = arith.constant dense<0.000000e+00> : vector<16xf32>
    %447 = vector.multi_reduction <add>, %446, %cst_126 [1] : vector<16x200xf32> to vector<16xf32>
    %448 = vector.shape_cast %447 : vector<16xf32> to vector<16x1xf32>
    %cst_127 = arith.constant 1.000000e-30 : f32
    %449 = vector.broadcast %cst_127 : f32 to vector<16x1xf32>
    %450 = arith.maximumf %448, %449 : vector<16x1xf32>
    %451 = math.rsqrt %450 : vector<16x1xf32>
    %452 = vector.broadcast %451 : vector<16x1xf32> to vector<16x200xf32>
    %453 = arith.mulf %437, %452 : vector<16x200xf32>
    %cst_128 = arith.constant dense<0.000000e+00> : vector<16x16xf32>
    %454 = tpu.matmul %445, %453, %cst_128 {dimension_numbers = #tpu.dot_dimension_numbers<[1], [1], [0], [0], [0, 0, 1, 0], [], []>} : vector<16x200xf32>, vector<16x200xf32>, vector<16x16xf32> -> vector<16x16xf32>
    %455 = math.exp %454 : vector<16x16xf32>
    %c0_129 = arith.constant 0 : index
    %c0_130 = arith.constant 0 : index
    %456 = vector.load %arg18[%c0_129, %c0_130] : memref<200x200xf32, #tpu.memory_space<vmem>>, vector<200x200xf32>
    %c0_131 = arith.constant 0 : index
    %c0_132 = arith.constant 0 : index
    %457 = vector.load %arg19[%c0_131, %c0_132] : memref<1x200xf32, #tpu.memory_space<vmem>>, vector<1x200xf32>
    %cst_133 = arith.constant dense<0.000000e+00> : vector<16x200xf32>
    %458 = tpu.matmul %372, %456, %cst_133 {dimension_numbers = #tpu.dot_dimension_numbers<[1], [0], [0], [1], [0, 0, 1, 1], [], []>} : vector<16x200xf32>, vector<200x200xf32>, vector<16x200xf32> -> vector<16x200xf32>
    %459 = vector.broadcast %457 : vector<1x200xf32> to vector<16x200xf32>
    %460 = arith.addf %458, %459 : vector<16x200xf32>
    %cst_134 = arith.constant 5.000000e-01 : f32
    %461 = vector.broadcast %cst_134 : f32 to vector<16x200xf32>
    %462 = arith.mulf %461, %460 : vector<16x200xf32>
    %463 = math.tanh %462 : vector<16x200xf32>
    %cst_135 = arith.constant 1.000000e+00 : f32
    %464 = vector.broadcast %cst_135 : f32 to vector<16x200xf32>
    %465 = arith.addf %463, %464 : vector<16x200xf32>
    %cst_136 = arith.constant 5.000000e-01 : f32
    %466 = vector.broadcast %cst_136 : f32 to vector<16x200xf32>
    %467 = arith.mulf %466, %465 : vector<16x200xf32>
    %468 = arith.mulf %467, %467 : vector<16x200xf32>
    %cst_137 = arith.constant dense<0.000000e+00> : vector<16xf32>
    %469 = vector.multi_reduction <add>, %468, %cst_137 [1] : vector<16x200xf32> to vector<16xf32>
    %470 = vector.shape_cast %469 : vector<16xf32> to vector<16x1xf32>
    %cst_138 = arith.constant 1.000000e-30 : f32
    %471 = vector.broadcast %cst_138 : f32 to vector<16x1xf32>
    %472 = arith.maximumf %470, %471 : vector<16x1xf32>
    %473 = math.rsqrt %472 : vector<16x1xf32>
    %474 = vector.broadcast %473 : vector<16x1xf32> to vector<16x200xf32>
    %475 = arith.mulf %467, %474 : vector<16x200xf32>
    %cst_139 = arith.constant dense<0.000000e+00> : vector<16x200xf32>
    %476 = tpu.matmul %437, %456, %cst_139 {dimension_numbers = #tpu.dot_dimension_numbers<[1], [0], [0], [1], [0, 0, 1, 1], [], []>} : vector<16x200xf32>, vector<200x200xf32>, vector<16x200xf32> -> vector<16x200xf32>
    %477 = vector.broadcast %457 : vector<1x200xf32> to vector<16x200xf32>
    %478 = arith.addf %476, %477 : vector<16x200xf32>
    %cst_140 = arith.constant 5.000000e-01 : f32
    %479 = vector.broadcast %cst_140 : f32 to vector<16x200xf32>
    %480 = arith.mulf %479, %478 : vector<16x200xf32>
    %481 = math.tanh %480 : vector<16x200xf32>
    %cst_141 = arith.constant 1.000000e+00 : f32
    %482 = vector.broadcast %cst_141 : f32 to vector<16x200xf32>
    %483 = arith.addf %481, %482 : vector<16x200xf32>
    %cst_142 = arith.constant 5.000000e-01 : f32
    %484 = vector.broadcast %cst_142 : f32 to vector<16x200xf32>
    %485 = arith.mulf %484, %483 : vector<16x200xf32>
    %486 = arith.mulf %485, %485 : vector<16x200xf32>
    %cst_143 = arith.constant dense<0.000000e+00> : vector<16xf32>
    %487 = vector.multi_reduction <add>, %486, %cst_143 [1] : vector<16x200xf32> to vector<16xf32>
    %488 = vector.shape_cast %487 : vector<16xf32> to vector<16x1xf32>
    %cst_144 = arith.constant 1.000000e-30 : f32
    %489 = vector.broadcast %cst_144 : f32 to vector<16x1xf32>
    %490 = arith.maximumf %488, %489 : vector<16x1xf32>
    %491 = math.rsqrt %490 : vector<16x1xf32>
    %492 = vector.broadcast %491 : vector<16x1xf32> to vector<16x200xf32>
    %493 = arith.mulf %485, %492 : vector<16x200xf32>
    %cst_145 = arith.constant dense<0.000000e+00> : vector<16x16xf32>
    %494 = tpu.matmul %475, %453, %cst_145 {dimension_numbers = #tpu.dot_dimension_numbers<[1], [1], [0], [0], [0, 0, 1, 0], [], []>} : vector<16x200xf32>, vector<16x200xf32>, vector<16x16xf32> -> vector<16x16xf32>
    %cst_146 = arith.constant 1.000000e+00 : f32
    %495 = vector.broadcast %cst_146 : f32 to vector<16x16xf32>
    %496 = arith.subf %495, %494 : vector<16x16xf32>
    %497 = math.exp %496 : vector<16x16xf32>
    %cst_147 = arith.constant dense<0.000000e+00> : vector<16x16xf32>
    %498 = tpu.matmul %493, %445, %cst_147 {dimension_numbers = #tpu.dot_dimension_numbers<[1], [1], [0], [0], [0, 0, 1, 0], [], []>} : vector<16x200xf32>, vector<16x200xf32>, vector<16x16xf32> -> vector<16x16xf32>
    %cst_148 = arith.constant 1.000000e+00 : f32
    %499 = vector.broadcast %cst_148 : f32 to vector<16x16xf32>
    %500 = arith.subf %499, %498 : vector<16x16xf32>
    %501 = math.exp %500 : vector<16x16xf32>
    %502 = arith.addf %497, %501 : vector<16x16xf32>
    %cst_149 = arith.constant 5.000000e-01 : f32
    %503 = vector.broadcast %cst_149 : f32 to vector<16x16xf32>
    %504 = arith.mulf %503, %502 : vector<16x16xf32>
    %505 = arith.mulf %504, %455 : vector<16x16xf32>
    %506 = tpu.iota {dimensions = array<i32: 0>} : vector<16x16xi32>
    %507 = tpu.iota {dimensions = array<i32: 1>} : vector<16x16xi32>
    %508 = arith.cmpi eq, %506, %507 : vector<16x16xi32>
    %509 = arith.extui %508 : vector<16x16xi1> to vector<16x16xi32>
    %510 = arith.sitofp %509 : vector<16x16xi32> to vector<16x16xf32>
    %cst_150 = arith.constant dense<0.000000e+00> : vector<16xf32>
    %511 = vector.multi_reduction <add>, %505, %cst_150 [0] : vector<16x16xf32> to vector<16xf32>
    %512 = vector.shape_cast %511 : vector<16xf32> to vector<1x16xf32>
    %513 = arith.mulf %455, %510 : vector<16x16xf32>
    %cst_151 = arith.constant dense<0.000000e+00> : vector<16xf32>
    %514 = vector.multi_reduction <add>, %513, %cst_151 [0] : vector<16x16xf32> to vector<16xf32>
    %515 = vector.shape_cast %514 : vector<16xf32> to vector<1x16xf32>
    %516 = math.log %512 : vector<1x16xf32>
    %517 = math.log %515 : vector<1x16xf32>
    %518 = arith.subf %516, %517 : vector<1x16xf32>
    %cst_152 = arith.constant dense<0.000000e+00> : vector<1xf32>
    %519 = vector.multi_reduction <add>, %518, %cst_152 [1] : vector<1x16xf32> to vector<1xf32>
    %520 = vector.shape_cast %519 : vector<1xf32> to vector<1x1xf32>
    %cst_153 = arith.constant 6.250000e-02 : f32
    %521 = vector.broadcast %cst_153 : f32 to vector<1x1xf32>
    %522 = arith.mulf %520, %521 : vector<1x1xf32>
    %cst_154 = arith.constant 2.77258873 : f32
    %523 = vector.broadcast %cst_154 : f32 to vector<1x1xf32>
    %524 = arith.subf %522, %523 : vector<1x1xf32>
    %525 = arith.mulf %262, %262 : vector<8x200xf32>
    %cst_155 = arith.constant dense<0.000000e+00> : vector<8xf32>
    %526 = vector.multi_reduction <add>, %525, %cst_155 [1] : vector<8x200xf32> to vector<8xf32>
    %527 = vector.shape_cast %526 : vector<8xf32> to vector<8x1xf32>
    %528 = arith.mulf %263, %263 : vector<8x200xf32>
    %cst_156 = arith.constant dense<0.000000e+00> : vector<8xf32>
    %529 = vector.multi_reduction <add>, %528, %cst_156 [1] : vector<8x200xf32> to vector<8xf32>
    %530 = vector.shape_cast %529 : vector<8xf32> to vector<8x1xf32>
    %531 = arith.addf %527, %530 : vector<8x1xf32>
    %cst_157 = arith.constant 1.000000e-30 : f32
    %532 = vector.broadcast %cst_157 : f32 to vector<8x1xf32>
    %533 = arith.maximumf %531, %532 : vector<8x1xf32>
    %534 = math.rsqrt %533 : vector<8x1xf32>
    %535 = vector.broadcast %534 : vector<8x1xf32> to vector<8x200xf32>
    %536 = arith.mulf %262, %535 : vector<8x200xf32>
    %537 = vector.broadcast %534 : vector<8x1xf32> to vector<8x200xf32>
    %538 = arith.mulf %263, %537 : vector<8x200xf32>
    %cst_158 = arith.constant dense<0.000000e+00> : vector<8x8xf32>
    %539 = tpu.matmul %536, %536, %cst_158 {dimension_numbers = #tpu.dot_dimension_numbers<[1], [1], [0], [0], [0, 0, 1, 0], [], []>} : vector<8x200xf32>, vector<8x200xf32>, vector<8x8xf32> -> vector<8x8xf32>
    %cst_159 = arith.constant dense<0.000000e+00> : vector<8x8xf32>
    %540 = tpu.matmul %538, %538, %cst_159 {dimension_numbers = #tpu.dot_dimension_numbers<[1], [1], [0], [0], [0, 0, 1, 0], [], []>} : vector<8x200xf32>, vector<8x200xf32>, vector<8x8xf32> -> vector<8x8xf32>
    %541 = arith.addf %539, %540 : vector<8x8xf32>
    %542 = math.exp %541 : vector<8x8xf32>
    %cst_160 = arith.constant 1.000000e+00 : f32
    %543 = vector.broadcast %cst_160 : f32 to vector<8x128xf32>
    %544 = arith.subf %543, %282 : vector<8x128xf32>
    %cst_161 = arith.constant dense<0.000000e+00> : vector<8x8xf32>
    %545 = tpu.matmul %282, %544, %cst_161 {dimension_numbers = #tpu.dot_dimension_numbers<[1], [1], [0], [0], [0, 0, 1, 0], [], []>} : vector<8x128xf32>, vector<8x128xf32>, vector<8x8xf32> -> vector<8x8xf32>
    %cst_162 = arith.constant 1.000000e+00 : f32
    %546 = vector.broadcast %cst_162 : f32 to vector<8x128xf32>
    %547 = arith.subf %546, %282 : vector<8x128xf32>
    %cst_163 = arith.constant dense<0.000000e+00> : vector<8x8xf32>
    %548 = tpu.matmul %547, %282, %cst_163 {dimension_numbers = #tpu.dot_dimension_numbers<[1], [1], [0], [0], [0, 0, 1, 0], [], []>} : vector<8x128xf32>, vector<8x128xf32>, vector<8x8xf32> -> vector<8x8xf32>
    %549 = arith.addf %545, %548 : vector<8x8xf32>
    %cst_164 = arith.constant 0.166666672 : f32
    %550 = vector.broadcast %cst_164 : f32 to vector<8x8xf32>
    %551 = arith.mulf %549, %550 : vector<8x8xf32>
    %cst_165 = arith.constant 1.000000e+00 : f32
    %552 = vector.broadcast %cst_165 : f32 to vector<8x8xf32>
    %553 = arith.subf %552, %551 : vector<8x8xf32>
    %554 = arith.mulf %542, %553 : vector<8x8xf32>
    %555 = arith.mulf %542, %549 : vector<8x8xf32>
    %cst_166 = arith.constant 1.000000e-30 : f32
    %556 = vector.broadcast %cst_166 : f32 to vector<8x8xf32>
    %557 = arith.addf %554, %556 : vector<8x8xf32>
    %558 = math.log %557 : vector<8x8xf32>
    %559 = tpu.transpose %282, [1, 0] : vector<8x128xf32> -> vector<128x8xf32>
    %cst_167 = arith.constant 1.000000e+00 : f32
    %560 = vector.broadcast %cst_167 : f32 to vector<128x8xf32>
    %561 = arith.subf %560, %559 : vector<128x8xf32>
    %cst_168 = arith.constant dense<0.000000e+00> : vector<128x8xf32>
    %562 = tpu.matmul %561, %555, %cst_168 {dimension_numbers = #tpu.dot_dimension_numbers<[1], [0], [0], [1], [0, 0, 1, 1], [], []>} : vector<128x8xf32>, vector<8x8xf32>, vector<128x8xf32> -> vector<128x8xf32>
    %cst_169 = arith.constant 0.000000e+00 : f32
    %563 = vector.broadcast %cst_169 : f32 to vector<1x1xf32>
    %564 = vector.extract_strided_slice %282 {offsets = [0, 0], sizes = [8, 1], strides = [1, 1]} : vector<8x128xf32> to vector<8x1xf32>
    %565 = vector.extract_strided_slice %559 {offsets = [0, 0], sizes = [1, 8], strides = [1, 1]} : vector<128x8xf32> to vector<1x8xf32>
    %566 = vector.extract_strided_slice %562 {offsets = [0, 0], sizes = [1, 8], strides = [1, 1]} : vector<128x8xf32> to vector<1x8xf32>
    %567 = vector.broadcast %564 : vector<8x1xf32> to vector<8x8xf32>
    %568 = vector.broadcast %565 : vector<1x8xf32> to vector<8x8xf32>
    %569 = arith.mulf %567, %568 : vector<8x8xf32>
    %570 = vector.broadcast %566 : vector<1x8xf32> to vector<8x8xf32>
    %571 = arith.addf %554, %570 : vector<8x8xf32>
    %cst_170 = arith.constant 1.000000e-30 : f32
    %572 = vector.broadcast %cst_170 : f32 to vector<8x8xf32>
    %573 = arith.addf %571, %572 : vector<8x8xf32>
    %574 = math.log %573 : vector<8x8xf32>
    %575 = arith.mulf %569, %574 : vector<8x8xf32>
    %cst_171 = arith.constant dense<0.000000e+00> : vector<8xf32>
    %576 = vector.multi_reduction <add>, %575, %cst_171 [1] : vector<8x8xf32> to vector<8xf32>
    %577 = vector.shape_cast %576 : vector<8xf32> to vector<8x1xf32>
    %cst_172 = arith.constant dense<0.000000e+00> : vector<1xf32>
    %578 = vector.multi_reduction <add>, %577, %cst_172 [0] : vector<8x1xf32> to vector<1xf32>
    %579 = vector.shape_cast %578 : vector<1xf32> to vector<1x1xf32>
    %580 = arith.mulf %569, %558 : vector<8x8xf32>
    %cst_173 = arith.constant dense<0.000000e+00> : vector<8xf32>
    %581 = vector.multi_reduction <add>, %580, %cst_173 [1] : vector<8x8xf32> to vector<8xf32>
    %582 = vector.shape_cast %581 : vector<8xf32> to vector<8x1xf32>
    %cst_174 = arith.constant dense<0.000000e+00> : vector<1xf32>
    %583 = vector.multi_reduction <add>, %582, %cst_174 [0] : vector<8x1xf32> to vector<1xf32>
    %584 = vector.shape_cast %583 : vector<1xf32> to vector<1x1xf32>
    %cst_175 = arith.constant dense<0.000000e+00> : vector<1xf32>
    %585 = vector.multi_reduction <add>, %564, %cst_175 [0] : vector<8x1xf32> to vector<1xf32>
    %586 = vector.shape_cast %585 : vector<1xf32> to vector<1x1xf32>
    %587 = arith.mulf %586, %586 : vector<1x1xf32>
    %cst_176 = arith.constant 8.000000e+00 : f32
    %588 = vector.broadcast %cst_176 : f32 to vector<1x1xf32>
    %589 = arith.subf %588, %586 : vector<1x1xf32>
    %cst_177 = arith.constant 1.000000e+00 : f32
    %590 = vector.broadcast %cst_177 : f32 to vector<1x1xf32>
    %591 = arith.addf %589, %590 : vector<1x1xf32>
    %592 = arith.subf %579, %584 : vector<1x1xf32>
    %593 = math.log %591 : vector<1x1xf32>
    %594 = arith.mulf %587, %593 : vector<1x1xf32>
    %595 = arith.subf %592, %594 : vector<1x1xf32>
    %cst_178 = arith.constant 1.000000e+00 : f32
    %596 = vector.broadcast %cst_178 : f32 to vector<1x1xf32>
    %597 = arith.maximumf %587, %596 : vector<1x1xf32>
    %598 = arith.divf %595, %597 : vector<1x1xf32>
    %599 = arith.addf %563, %598 : vector<1x1xf32>
    %600 = vector.extract_strided_slice %282 {offsets = [0, 1], sizes = [8, 1], strides = [1, 1]} : vector<8x128xf32> to vector<8x1xf32>
    %601 = vector.extract_strided_slice %559 {offsets = [1, 0], sizes = [1, 8], strides = [1, 1]} : vector<128x8xf32> to vector<1x8xf32>
    %602 = vector.extract_strided_slice %562 {offsets = [1, 0], sizes = [1, 8], strides = [1, 1]} : vector<128x8xf32> to vector<1x8xf32>
    %603 = vector.broadcast %600 : vector<8x1xf32> to vector<8x8xf32>
    %604 = vector.broadcast %601 : vector<1x8xf32> to vector<8x8xf32>
    %605 = arith.mulf %603, %604 : vector<8x8xf32>
    %606 = vector.broadcast %602 : vector<1x8xf32> to vector<8x8xf32>
    %607 = arith.addf %554, %606 : vector<8x8xf32>
    %cst_179 = arith.constant 1.000000e-30 : f32
    %608 = vector.broadcast %cst_179 : f32 to vector<8x8xf32>
    %609 = arith.addf %607, %608 : vector<8x8xf32>
    %610 = math.log %609 : vector<8x8xf32>
    %611 = arith.mulf %605, %610 : vector<8x8xf32>
    %cst_180 = arith.constant dense<0.000000e+00> : vector<8xf32>
    %612 = vector.multi_reduction <add>, %611, %cst_180 [1] : vector<8x8xf32> to vector<8xf32>
    %613 = vector.shape_cast %612 : vector<8xf32> to vector<8x1xf32>
    %cst_181 = arith.constant dense<0.000000e+00> : vector<1xf32>
    %614 = vector.multi_reduction <add>, %613, %cst_181 [0] : vector<8x1xf32> to vector<1xf32>
    %615 = vector.shape_cast %614 : vector<1xf32> to vector<1x1xf32>
    %616 = arith.mulf %605, %558 : vector<8x8xf32>
    %cst_182 = arith.constant dense<0.000000e+00> : vector<8xf32>
    %617 = vector.multi_reduction <add>, %616, %cst_182 [1] : vector<8x8xf32> to vector<8xf32>
    %618 = vector.shape_cast %617 : vector<8xf32> to vector<8x1xf32>
    %cst_183 = arith.constant dense<0.000000e+00> : vector<1xf32>
    %619 = vector.multi_reduction <add>, %618, %cst_183 [0] : vector<8x1xf32> to vector<1xf32>
    %620 = vector.shape_cast %619 : vector<1xf32> to vector<1x1xf32>
    %cst_184 = arith.constant dense<0.000000e+00> : vector<1xf32>
    %621 = vector.multi_reduction <add>, %600, %cst_184 [0] : vector<8x1xf32> to vector<1xf32>
    %622 = vector.shape_cast %621 : vector<1xf32> to vector<1x1xf32>
    %623 = arith.mulf %622, %622 : vector<1x1xf32>
    %cst_185 = arith.constant 8.000000e+00 : f32
    %624 = vector.broadcast %cst_185 : f32 to vector<1x1xf32>
    %625 = arith.subf %624, %622 : vector<1x1xf32>
    %cst_186 = arith.constant 1.000000e+00 : f32
    %626 = vector.broadcast %cst_186 : f32 to vector<1x1xf32>
    %627 = arith.addf %625, %626 : vector<1x1xf32>
    %628 = arith.subf %615, %620 : vector<1x1xf32>
    %629 = math.log %627 : vector<1x1xf32>
    %630 = arith.mulf %623, %629 : vector<1x1xf32>
    %631 = arith.subf %628, %630 : vector<1x1xf32>
    %cst_187 = arith.constant 1.000000e+00 : f32
    %632 = vector.broadcast %cst_187 : f32 to vector<1x1xf32>
    %633 = arith.maximumf %623, %632 : vector<1x1xf32>
    %634 = arith.divf %631, %633 : vector<1x1xf32>
    %635 = arith.addf %599, %634 : vector<1x1xf32>
    %636 = vector.extract_strided_slice %282 {offsets = [0, 2], sizes = [8, 1], strides = [1, 1]} : vector<8x128xf32> to vector<8x1xf32>
    %637 = vector.extract_strided_slice %559 {offsets = [2, 0], sizes = [1, 8], strides = [1, 1]} : vector<128x8xf32> to vector<1x8xf32>
    %638 = vector.extract_strided_slice %562 {offsets = [2, 0], sizes = [1, 8], strides = [1, 1]} : vector<128x8xf32> to vector<1x8xf32>
    %639 = vector.broadcast %636 : vector<8x1xf32> to vector<8x8xf32>
    %640 = vector.broadcast %637 : vector<1x8xf32> to vector<8x8xf32>
    %641 = arith.mulf %639, %640 : vector<8x8xf32>
    %642 = vector.broadcast %638 : vector<1x8xf32> to vector<8x8xf32>
    %643 = arith.addf %554, %642 : vector<8x8xf32>
    %cst_188 = arith.constant 1.000000e-30 : f32
    %644 = vector.broadcast %cst_188 : f32 to vector<8x8xf32>
    %645 = arith.addf %643, %644 : vector<8x8xf32>
    %646 = math.log %645 : vector<8x8xf32>
    %647 = arith.mulf %641, %646 : vector<8x8xf32>
    %cst_189 = arith.constant dense<0.000000e+00> : vector<8xf32>
    %648 = vector.multi_reduction <add>, %647, %cst_189 [1] : vector<8x8xf32> to vector<8xf32>
    %649 = vector.shape_cast %648 : vector<8xf32> to vector<8x1xf32>
    %cst_190 = arith.constant dense<0.000000e+00> : vector<1xf32>
    %650 = vector.multi_reduction <add>, %649, %cst_190 [0] : vector<8x1xf32> to vector<1xf32>
    %651 = vector.shape_cast %650 : vector<1xf32> to vector<1x1xf32>
    %652 = arith.mulf %641, %558 : vector<8x8xf32>
    %cst_191 = arith.constant dense<0.000000e+00> : vector<8xf32>
    %653 = vector.multi_reduction <add>, %652, %cst_191 [1] : vector<8x8xf32> to vector<8xf32>
    %654 = vector.shape_cast %653 : vector<8xf32> to vector<8x1xf32>
    %cst_192 = arith.constant dense<0.000000e+00> : vector<1xf32>
    %655 = vector.multi_reduction <add>, %654, %cst_192 [0] : vector<8x1xf32> to vector<1xf32>
    %656 = vector.shape_cast %655 : vector<1xf32> to vector<1x1xf32>
    %cst_193 = arith.constant dense<0.000000e+00> : vector<1xf32>
    %657 = vector.multi_reduction <add>, %636, %cst_193 [0] : vector<8x1xf32> to vector<1xf32>
    %658 = vector.shape_cast %657 : vector<1xf32> to vector<1x1xf32>
    %659 = arith.mulf %658, %658 : vector<1x1xf32>
    %cst_194 = arith.constant 8.000000e+00 : f32
    %660 = vector.broadcast %cst_194 : f32 to vector<1x1xf32>
    %661 = arith.subf %660, %658 : vector<1x1xf32>
    %cst_195 = arith.constant 1.000000e+00 : f32
    %662 = vector.broadcast %cst_195 : f32 to vector<1x1xf32>
    %663 = arith.addf %661, %662 : vector<1x1xf32>
    %664 = arith.subf %651, %656 : vector<1x1xf32>
    %665 = math.log %663 : vector<1x1xf32>
    %666 = arith.mulf %659, %665 : vector<1x1xf32>
    %667 = arith.subf %664, %666 : vector<1x1xf32>
    %cst_196 = arith.constant 1.000000e+00 : f32
    %668 = vector.broadcast %cst_196 : f32 to vector<1x1xf32>
    %669 = arith.maximumf %659, %668 : vector<1x1xf32>
    %670 = arith.divf %667, %669 : vector<1x1xf32>
    %671 = arith.addf %635, %670 : vector<1x1xf32>
    %672 = vector.extract_strided_slice %282 {offsets = [0, 3], sizes = [8, 1], strides = [1, 1]} : vector<8x128xf32> to vector<8x1xf32>
    %673 = vector.extract_strided_slice %559 {offsets = [3, 0], sizes = [1, 8], strides = [1, 1]} : vector<128x8xf32> to vector<1x8xf32>
    %674 = vector.extract_strided_slice %562 {offsets = [3, 0], sizes = [1, 8], strides = [1, 1]} : vector<128x8xf32> to vector<1x8xf32>
    %675 = vector.broadcast %672 : vector<8x1xf32> to vector<8x8xf32>
    %676 = vector.broadcast %673 : vector<1x8xf32> to vector<8x8xf32>
    %677 = arith.mulf %675, %676 : vector<8x8xf32>
    %678 = vector.broadcast %674 : vector<1x8xf32> to vector<8x8xf32>
    %679 = arith.addf %554, %678 : vector<8x8xf32>
    %cst_197 = arith.constant 1.000000e-30 : f32
    %680 = vector.broadcast %cst_197 : f32 to vector<8x8xf32>
    %681 = arith.addf %679, %680 : vector<8x8xf32>
    %682 = math.log %681 : vector<8x8xf32>
    %683 = arith.mulf %677, %682 : vector<8x8xf32>
    %cst_198 = arith.constant dense<0.000000e+00> : vector<8xf32>
    %684 = vector.multi_reduction <add>, %683, %cst_198 [1] : vector<8x8xf32> to vector<8xf32>
    %685 = vector.shape_cast %684 : vector<8xf32> to vector<8x1xf32>
    %cst_199 = arith.constant dense<0.000000e+00> : vector<1xf32>
    %686 = vector.multi_reduction <add>, %685, %cst_199 [0] : vector<8x1xf32> to vector<1xf32>
    %687 = vector.shape_cast %686 : vector<1xf32> to vector<1x1xf32>
    %688 = arith.mulf %677, %558 : vector<8x8xf32>
    %cst_200 = arith.constant dense<0.000000e+00> : vector<8xf32>
    %689 = vector.multi_reduction <add>, %688, %cst_200 [1] : vector<8x8xf32> to vector<8xf32>
    %690 = vector.shape_cast %689 : vector<8xf32> to vector<8x1xf32>
    %cst_201 = arith.constant dense<0.000000e+00> : vector<1xf32>
    %691 = vector.multi_reduction <add>, %690, %cst_201 [0] : vector<8x1xf32> to vector<1xf32>
    %692 = vector.shape_cast %691 : vector<1xf32> to vector<1x1xf32>
    %cst_202 = arith.constant dense<0.000000e+00> : vector<1xf32>
    %693 = vector.multi_reduction <add>, %672, %cst_202 [0] : vector<8x1xf32> to vector<1xf32>
    %694 = vector.shape_cast %693 : vector<1xf32> to vector<1x1xf32>
    %695 = arith.mulf %694, %694 : vector<1x1xf32>
    %cst_203 = arith.constant 8.000000e+00 : f32
    %696 = vector.broadcast %cst_203 : f32 to vector<1x1xf32>
    %697 = arith.subf %696, %694 : vector<1x1xf32>
    %cst_204 = arith.constant 1.000000e+00 : f32
    %698 = vector.broadcast %cst_204 : f32 to vector<1x1xf32>
    %699 = arith.addf %697, %698 : vector<1x1xf32>
    %700 = arith.subf %687, %692 : vector<1x1xf32>
    %701 = math.log %699 : vector<1x1xf32>
    %702 = arith.mulf %695, %701 : vector<1x1xf32>
    %703 = arith.subf %700, %702 : vector<1x1xf32>
    %cst_205 = arith.constant 1.000000e+00 : f32
    %704 = vector.broadcast %cst_205 : f32 to vector<1x1xf32>
    %705 = arith.maximumf %695, %704 : vector<1x1xf32>
    %706 = arith.divf %703, %705 : vector<1x1xf32>
    %707 = arith.addf %671, %706 : vector<1x1xf32>
    %708 = vector.extract_strided_slice %282 {offsets = [0, 4], sizes = [8, 1], strides = [1, 1]} : vector<8x128xf32> to vector<8x1xf32>
    %709 = vector.extract_strided_slice %559 {offsets = [4, 0], sizes = [1, 8], strides = [1, 1]} : vector<128x8xf32> to vector<1x8xf32>
    %710 = vector.extract_strided_slice %562 {offsets = [4, 0], sizes = [1, 8], strides = [1, 1]} : vector<128x8xf32> to vector<1x8xf32>
    %711 = vector.broadcast %708 : vector<8x1xf32> to vector<8x8xf32>
    %712 = vector.broadcast %709 : vector<1x8xf32> to vector<8x8xf32>
    %713 = arith.mulf %711, %712 : vector<8x8xf32>
    %714 = vector.broadcast %710 : vector<1x8xf32> to vector<8x8xf32>
    %715 = arith.addf %554, %714 : vector<8x8xf32>
    %cst_206 = arith.constant 1.000000e-30 : f32
    %716 = vector.broadcast %cst_206 : f32 to vector<8x8xf32>
    %717 = arith.addf %715, %716 : vector<8x8xf32>
    %718 = math.log %717 : vector<8x8xf32>
    %719 = arith.mulf %713, %718 : vector<8x8xf32>
    %cst_207 = arith.constant dense<0.000000e+00> : vector<8xf32>
    %720 = vector.multi_reduction <add>, %719, %cst_207 [1] : vector<8x8xf32> to vector<8xf32>
    %721 = vector.shape_cast %720 : vector<8xf32> to vector<8x1xf32>
    %cst_208 = arith.constant dense<0.000000e+00> : vector<1xf32>
    %722 = vector.multi_reduction <add>, %721, %cst_208 [0] : vector<8x1xf32> to vector<1xf32>
    %723 = vector.shape_cast %722 : vector<1xf32> to vector<1x1xf32>
    %724 = arith.mulf %713, %558 : vector<8x8xf32>
    %cst_209 = arith.constant dense<0.000000e+00> : vector<8xf32>
    %725 = vector.multi_reduction <add>, %724, %cst_209 [1] : vector<8x8xf32> to vector<8xf32>
    %726 = vector.shape_cast %725 : vector<8xf32> to vector<8x1xf32>
    %cst_210 = arith.constant dense<0.000000e+00> : vector<1xf32>
    %727 = vector.multi_reduction <add>, %726, %cst_210 [0] : vector<8x1xf32> to vector<1xf32>
    %728 = vector.shape_cast %727 : vector<1xf32> to vector<1x1xf32>
    %cst_211 = arith.constant dense<0.000000e+00> : vector<1xf32>
    %729 = vector.multi_reduction <add>, %708, %cst_211 [0] : vector<8x1xf32> to vector<1xf32>
    %730 = vector.shape_cast %729 : vector<1xf32> to vector<1x1xf32>
    %731 = arith.mulf %730, %730 : vector<1x1xf32>
    %cst_212 = arith.constant 8.000000e+00 : f32
    %732 = vector.broadcast %cst_212 : f32 to vector<1x1xf32>
    %733 = arith.subf %732, %730 : vector<1x1xf32>
    %cst_213 = arith.constant 1.000000e+00 : f32
    %734 = vector.broadcast %cst_213 : f32 to vector<1x1xf32>
    %735 = arith.addf %733, %734 : vector<1x1xf32>
    %736 = arith.subf %723, %728 : vector<1x1xf32>
    %737 = math.log %735 : vector<1x1xf32>
    %738 = arith.mulf %731, %737 : vector<1x1xf32>
    %739 = arith.subf %736, %738 : vector<1x1xf32>
    %cst_214 = arith.constant 1.000000e+00 : f32
    %740 = vector.broadcast %cst_214 : f32 to vector<1x1xf32>
    %741 = arith.maximumf %731, %740 : vector<1x1xf32>
    %742 = arith.divf %739, %741 : vector<1x1xf32>
    %743 = arith.addf %707, %742 : vector<1x1xf32>
    %744 = vector.extract_strided_slice %282 {offsets = [0, 5], sizes = [8, 1], strides = [1, 1]} : vector<8x128xf32> to vector<8x1xf32>
    %745 = vector.extract_strided_slice %559 {offsets = [5, 0], sizes = [1, 8], strides = [1, 1]} : vector<128x8xf32> to vector<1x8xf32>
    %746 = vector.extract_strided_slice %562 {offsets = [5, 0], sizes = [1, 8], strides = [1, 1]} : vector<128x8xf32> to vector<1x8xf32>
    %747 = vector.broadcast %744 : vector<8x1xf32> to vector<8x8xf32>
    %748 = vector.broadcast %745 : vector<1x8xf32> to vector<8x8xf32>
    %749 = arith.mulf %747, %748 : vector<8x8xf32>
    %750 = vector.broadcast %746 : vector<1x8xf32> to vector<8x8xf32>
    %751 = arith.addf %554, %750 : vector<8x8xf32>
    %cst_215 = arith.constant 1.000000e-30 : f32
    %752 = vector.broadcast %cst_215 : f32 to vector<8x8xf32>
    %753 = arith.addf %751, %752 : vector<8x8xf32>
    %754 = math.log %753 : vector<8x8xf32>
    %755 = arith.mulf %749, %754 : vector<8x8xf32>
    %cst_216 = arith.constant dense<0.000000e+00> : vector<8xf32>
    %756 = vector.multi_reduction <add>, %755, %cst_216 [1] : vector<8x8xf32> to vector<8xf32>
    %757 = vector.shape_cast %756 : vector<8xf32> to vector<8x1xf32>
    %cst_217 = arith.constant dense<0.000000e+00> : vector<1xf32>
    %758 = vector.multi_reduction <add>, %757, %cst_217 [0] : vector<8x1xf32> to vector<1xf32>
    %759 = vector.shape_cast %758 : vector<1xf32> to vector<1x1xf32>
    %760 = arith.mulf %749, %558 : vector<8x8xf32>
    %cst_218 = arith.constant dense<0.000000e+00> : vector<8xf32>
    %761 = vector.multi_reduction <add>, %760, %cst_218 [1] : vector<8x8xf32> to vector<8xf32>
    %762 = vector.shape_cast %761 : vector<8xf32> to vector<8x1xf32>
    %cst_219 = arith.constant dense<0.000000e+00> : vector<1xf32>
    %763 = vector.multi_reduction <add>, %762, %cst_219 [0] : vector<8x1xf32> to vector<1xf32>
    %764 = vector.shape_cast %763 : vector<1xf32> to vector<1x1xf32>
    %cst_220 = arith.constant dense<0.000000e+00> : vector<1xf32>
    %765 = vector.multi_reduction <add>, %744, %cst_220 [0] : vector<8x1xf32> to vector<1xf32>
    %766 = vector.shape_cast %765 : vector<1xf32> to vector<1x1xf32>
    %767 = arith.mulf %766, %766 : vector<1x1xf32>
    %cst_221 = arith.constant 8.000000e+00 : f32
    %768 = vector.broadcast %cst_221 : f32 to vector<1x1xf32>
    %769 = arith.subf %768, %766 : vector<1x1xf32>
    %cst_222 = arith.constant 1.000000e+00 : f32
    %770 = vector.broadcast %cst_222 : f32 to vector<1x1xf32>
    %771 = arith.addf %769, %770 : vector<1x1xf32>
    %772 = arith.subf %759, %764 : vector<1x1xf32>
    %773 = math.log %771 : vector<1x1xf32>
    %774 = arith.mulf %767, %773 : vector<1x1xf32>
    %775 = arith.subf %772, %774 : vector<1x1xf32>
    %cst_223 = arith.constant 1.000000e+00 : f32
    %776 = vector.broadcast %cst_223 : f32 to vector<1x1xf32>
    %777 = arith.maximumf %767, %776 : vector<1x1xf32>
    %778 = arith.divf %775, %777 : vector<1x1xf32>
    %779 = arith.addf %743, %778 : vector<1x1xf32>
    %780 = tpu.iota {dimensions = array<i32: 1>} : vector<1x128xi32>
    %c0_i32 = arith.constant 0 : i32
    %781 = vector.broadcast %c0_i32 : i32 to vector<1x128xi32>
    %782 = arith.cmpi eq, %780, %781 : vector<1x128xi32>
    %783 = arith.extui %782 : vector<1x128xi1> to vector<1x128xi32>
    %784 = arith.sitofp %783 : vector<1x128xi32> to vector<1x128xf32>
    %785 = vector.broadcast %307 : vector<1x1xf32> to vector<1x128xf32>
    %786 = arith.mulf %785, %784 : vector<1x128xf32>
    %c1_i32 = arith.constant 1 : i32
    %787 = vector.broadcast %c1_i32 : i32 to vector<1x128xi32>
    %788 = arith.cmpi eq, %780, %787 : vector<1x128xi32>
    %789 = arith.extui %788 : vector<1x128xi1> to vector<1x128xi32>
    %790 = arith.sitofp %789 : vector<1x128xi32> to vector<1x128xf32>
    %791 = vector.broadcast %524 : vector<1x1xf32> to vector<1x128xf32>
    %792 = arith.mulf %791, %790 : vector<1x128xf32>
    %793 = arith.addf %786, %792 : vector<1x128xf32>
    %c2_i32 = arith.constant 2 : i32
    %794 = vector.broadcast %c2_i32 : i32 to vector<1x128xi32>
    %795 = arith.cmpi eq, %780, %794 : vector<1x128xi32>
    %796 = arith.extui %795 : vector<1x128xi1> to vector<1x128xi32>
    %797 = arith.sitofp %796 : vector<1x128xi32> to vector<1x128xf32>
    %798 = vector.broadcast %779 : vector<1x1xf32> to vector<1x128xf32>
    %799 = arith.mulf %798, %797 : vector<1x128xf32>
    %800 = arith.addf %793, %799 : vector<1x128xf32>
    %c0_224 = arith.constant 0 : index
    %c0_225 = arith.constant 0 : index
    %801 = vector.load %arg22[%c0_224, %c0_225] : memref<1x128xf32, #tpu.memory_space<vmem>>, vector<1x128xf32>
    tpu.vector_store %arg22[%c0_224, %c0_225], %800 {strides = array<i32>} : memref<1x128xf32, #tpu.memory_space<vmem>>, vector<1x128xf32>,
    return
  }
  func.func @transform_0(%arg0: i32) -> (i32, i32) {
    %c0_i32 = arith.constant 0 : i32
    %c0_i32_0 = arith.constant 0 : i32
    %c0_i32_1 = arith.constant 0 : i32
    return %c0_i32, %c0_i32_0 : i32, i32
  }
  func.func @transform_1(%arg0: i32) -> (i32, i32) {
    %c0_i32 = arith.constant 0 : i32
    %c0_i32_0 = arith.constant 0 : i32
    %c0_i32_1 = arith.constant 0 : i32
    return %c0_i32, %c0_i32_0 : i32, i32
  }
  func.func @transform_2(%arg0: i32) -> (i32, i32) {
    %c0_i32 = arith.constant 0 : i32
    %c0_i32_0 = arith.constant 0 : i32
    %c0_i32_1 = arith.constant 0 : i32
    return %c0_i32, %c0_i32_0 : i32, i32
  }
  func.func @transform_3(%arg0: i32) -> (i32, i32) {
    %c0_i32 = arith.constant 0 : i32
    %c0_i32_0 = arith.constant 0 : i32
    %c0_i32_1 = arith.constant 0 : i32
    return %c0_i32, %c0_i32_0 : i32, i32
  }
  func.func @transform_4(%arg0: i32) -> (i32, i32) {
    %c0_i32 = arith.constant 0 : i32
    %c0_i32_0 = arith.constant 0 : i32
    %c0_i32_1 = arith.constant 0 : i32
    return %c0_i32, %c0_i32_0 : i32, i32
  }
  func.func @transform_5(%arg0: i32) -> (i32, i32) {
    %c0_i32 = arith.constant 0 : i32
    %c0_i32_0 = arith.constant 0 : i32
    %c0_i32_1 = arith.constant 0 : i32
    return %c0_i32, %c0_i32_0 : i32, i32
  }
  func.func @transform_6(%arg0: i32) -> (i32, i32) {
    %c0_i32 = arith.constant 0 : i32
    %c0_i32_0 = arith.constant 0 : i32
    %c0_i32_1 = arith.constant 0 : i32
    return %c0_i32, %c0_i32_0 : i32, i32
  }
  func.func @transform_7(%arg0: i32) -> (i32, i32) {
    %c0_i32 = arith.constant 0 : i32
    %c0_i32_0 = arith.constant 0 : i32
    %c0_i32_1 = arith.constant 0 : i32
    return %c0_i32, %c0_i32_0 : i32, i32
  }
  func.func @transform_8(%arg0: i32) -> (i32, i32) {
    %c0_i32 = arith.constant 0 : i32
    %c0_i32_0 = arith.constant 0 : i32
    %c0_i32_1 = arith.constant 0 : i32
    return %c0_i32, %c0_i32_0 : i32, i32
  }
  func.func @transform_9(%arg0: i32) -> (i32, i32) {
    %c0_i32 = arith.constant 0 : i32
    %c0_i32_0 = arith.constant 0 : i32
    %c0_i32_1 = arith.constant 0 : i32
    return %c0_i32, %c0_i32_0 : i32, i32
  }
  func.func @transform_10(%arg0: i32) -> (i32, i32) {
    %c0_i32 = arith.constant 0 : i32
    %c0_i32_0 = arith.constant 0 : i32
    %c0_i32_1 = arith.constant 0 : i32
    return %c0_i32, %c0_i32_0 : i32, i32
  }
  func.func @transform_11(%arg0: i32) -> (i32, i32) {
    %c0_i32 = arith.constant 0 : i32
    %c0_i32_0 = arith.constant 0 : i32
    %c0_i32_1 = arith.constant 0 : i32
    return %c0_i32, %c0_i32_0 : i32, i32
  }
  func.func @transform_12(%arg0: i32) -> (i32, i32) {
    %c0_i32 = arith.constant 0 : i32
    %c0_i32_0 = arith.constant 0 : i32
    %c0_i32_1 = arith.constant 0 : i32
    return %c0_i32, %c0_i32_0 : i32, i32
  }
  func.func @transform_13(%arg0: i32) -> (i32, i32) {
    %c0_i32 = arith.constant 0 : i32
    %c0_i32_0 = arith.constant 0 : i32
    %c0_i32_1 = arith.constant 0 : i32
    return %c0_i32, %c0_i32_0 : i32, i32
  }
  func.func @transform_14(%arg0: i32) -> (i32, i32) {
    %c0_i32 = arith.constant 0 : i32
    %c0_i32_0 = arith.constant 0 : i32
    %c0_i32_1 = arith.constant 0 : i32
    return %c0_i32, %c0_i32_0 : i32, i32
  }
  func.func @transform_15(%arg0: i32) -> (i32, i32) {
    %c0_i32 = arith.constant 0 : i32
    %c0_i32_0 = arith.constant 0 : i32
    %c0_i32_1 = arith.constant 0 : i32
    return %c0_i32, %c0_i32_0 : i32, i32
  }
  func.func @transform_16(%arg0: i32) -> (i32, i32) {
    %c0_i32 = arith.constant 0 : i32
    %c0_i32_0 = arith.constant 0 : i32
    %c0_i32_1 = arith.constant 0 : i32
    return %c0_i32, %c0_i32_0 : i32, i32
  }
  func.func @transform_17(%arg0: i32) -> (i32, i32) {
    %c0_i32 = arith.constant 0 : i32
    %c0_i32_0 = arith.constant 0 : i32
    %c0_i32_1 = arith.constant 0 : i32
    return %c0_i32, %c0_i32_0 : i32, i32
  }
  func.func @transform_18(%arg0: i32) -> (i32, i32) {
    %c0_i32 = arith.constant 0 : i32
    %c0_i32_0 = arith.constant 0 : i32
    %c0_i32_1 = arith.constant 0 : i32
    return %c0_i32, %c0_i32_0 : i32, i32
  }
  func.func @transform_19(%arg0: i32) -> (i32, i32) {
    %c0_i32 = arith.constant 0 : i32
    %c0_i32_0 = arith.constant 0 : i32
    %c0_i32_1 = arith.constant 0 : i32
    return %c0_i32, %c0_i32_0 : i32, i32
  }
  func.func @transform_20(%arg0: i32) -> (i32, i32) {
    %c0_i32 = arith.constant 0 : i32
    %c0_i32_0 = arith.constant 0 : i32
    %c0_i32_1 = arith.constant 0 : i32
    return %c0_i32, %c0_i32_0 : i32, i32
  }
  func.func @transform_21(%arg0: i32) -> (i32, i32) {
    %c0_i32 = arith.constant 0 : i32
    %c0_i32_0 = arith.constant 0 : i32
    %c0_i32_1 = arith.constant 0 : i32
    return %c0_i32, %c0_i32_0 : i32, i32
  }
}

</mosaic_0001>

<bundles_post_ra>
// kernel: mlcpc_forward.1
= control target key start
LH: loop header
LB: loop body
LE: loop exit
PB: predicated region body
PF: predicated region fallthrough
CT: control target
= control target key end

     0   :  { %s6429_s0 = inlined_call_operand.vmem [shape: f32[16,64], index: 0, kind: input, shape index: {}]   ;;  %s6430_s1 = inlined_call_operand.vmem [shape: f32[16,32], index: 1, kind: input, shape index: {}]   ;;  %s6431_s2 = inlined_call_operand.vmem [shape: f32[8,128], index: 2, kind: input, shape index: {}]   ;;  %s6432_s3 = inlined_call_operand.vmem [shape: f32[64,200], index: 3, kind: input, shape index: {}]   ;;  %s6433_s4 = inlined_call_operand.hbm [shape: f32[3,200], index: 4, kind: input, shape index: {}]   ;;  %s6434_s5 = inlined_call_operand.hbm [shape: f32[200,200], index: 5, kind: input, shape index: {}]   ;;  %s6435_s6 = inlined_call_operand.hbm [shape: f32[3,200], index: 6, kind: input, shape index: {}]   ;;  %s6436_s7 = inlined_call_operand.hbm [shape: f32[32,200], index: 7, kind: input, shape index: {}]   ;;  %s6437_s8 = inlined_call_operand.vmem [shape: f32[3,200], index: 8, kind: input, shape index: {}]   ;;  %s6438_s9 = inlined_call_operand.hbm [shape: f32[200,200], index: 9, kind: input, shape index: {}]   ;;  %s6439_s10 = inlined_call_operand.vmem [shape: f32[3,200], index: 10, kind: input, shape index: {}]   ;;  %s6440_s11 = inlined_call_operand.hbm [shape: f32[200,200], index: 11, kind: input, shape index: {}]   ;;  %s6441_s12 = inlined_call_operand.hbm [shape: f32[3,200], index: 12, kind: input, shape index: {}]   ;;  %s6442_s13 = inlined_call_operand.hbm [shape: f32[200,200], index: 13, kind: input, shape index: {}]   ;;  %s6443_s14 = inlined_call_operand.hbm [shape: f32[3,200], index: 14, kind: input, shape index: {}]   ;;  %s6444_s15 = inlined_call_operand.hbm [shape: f32[400,128], index: 15, kind: input, shape index: {}]   ;;  %s6445_s16 = inlined_call_operand.hbm [shape: f32[1,128], index: 16, kind: input, shape index: {}]   ;;  %s6446_s17 = inlined_call_operand.hbm [shape: f32[200,200], index: 17, kind: input, shape index: {}]   ;;  %s6447_s18 = inlined_call_operand.hbm [shape: f32[1,200], index: 18, kind: input, shape index: {}]   ;;  %s6448_s19 = inlined_call_operand.hbm [shape: f32[8,128], index: 19, kind: output, shape index: {0}]   ;;  %s6449_s20 = inlined_call_operand.hbm [shape: f32[8,128], index: 20, kind: output, shape index: {1}]   ;;  %s6450_s21 = inlined_call_operand.vmem [shape: f32[1,128], index: 21, kind: output, shape index: {2}]  }
   0x1   :  { %6481 = sst [smem:[#allocation53_spill]] %s6429_s0 }
   0x2   :  { %6482 = sst [smem:[#allocation54_spill]] %s6430_s1 }
   0x3   :  { %6483 = sst [smem:[#allocation55_spill]] %s6431_s2 }
   0x4   :  { %6484 = sst [smem:[#allocation56_spill]] %s6432_s3 }
   0x5   :  { %6485 = sst [smem:[#allocation57_spill]] %s6433_s4 }
   0x6   :  { %6486 = sst [smem:[#allocation58_spill]] %s6434_s5 }
   0x7   :  { %6487 = sst [smem:[#allocation59_spill]] %s6449_s20 }
   0x8   :  { %6488 = sst [smem:[#allocation60_spill]] %s6450_s21 }
   0x9   :  { %27 = vsyncpa [#allocation3], 0 }
   0xa   :  { %28 = vsyncpa [#allocation6], 0 }
   0xb   :  { %29 = vsyncpa [#allocation9], 0 }
   0xc   :  { %30 = vsyncpa [#allocation12], 0 }
   0xd   :  { %31 = vsyncpa [#allocation15], 0 }
   0xe   :  { %32 = vsyncpa [#allocation18], 0 }
   0xf   :  { %33 = vsyncpa [#allocation21], 0 }
  0x10   :  { %34 = vsyncpa [#allocation4], 0 }
  0x11   :  { %35 = vsyncpa [#allocation25], 0  ;;  %s5065_s2 = smov [#allocation5]   ;;  %s6489_s3 = sld [smem:[#allocation58_spill]] }
  0x12   :  { %s59_s25 = sshll.u32 %s5065_s2, 4  ;;  %s60_s25 = int_to_ptr.vmem [resolvable:$true] %s59_s25 }
  0x17   :  { %s4717_s28 = scalar_lea.hbm %s6489_s3, 6400 }
  0x18   :  { %p4718_p0 = scmp.ne.s32.totalorder %s6489_s3, %s4717_s28  ;;  %p4721_p1 = scmp.lt.u32.totalorder %s4717_s28, %s6489_s3 }
  0x1a   :  { %p4723_p2 = pnand %p4721_p1, %p4718_p0 }
  0x1c   :  { %4726 = shalt.err (!%p4723_p2)
}
  0x1d   :  { %s4727_s5 = scalar_lea.vmem %s60_s25, 6400  ;;  %p4732_p4 = scmp.lt.s32.totalorder %s60_s25, %s60_s25 }
  0x1e   :  { %p4728_p3 = scmp.ne.s32.totalorder %s60_s25, %s4727_s5  ;;  %p4733_p5 = scmp.lt.s32.totalorder %s4727_s5, %s4727_s5 }
  0x20   :  { %p4734_p6 = por %p4733_p5, %p4732_p4 }
  0x22   :  { %p4735_p7 = pnand %p4734_p6, %p4728_p3 }
  0x24   :  { %4738 = shalt.err (!%p4735_p7)
}
  0x25   :  { %s5066_s22 = smov 256   ;;  %s5067_s23 = smov 16  }
  0x26   :  { %65 = dma.hbm_to_vmem [thread:$0]  %s6489_s3, 6400, %s60_s25, [#allocation6], %s5066_s22, %s5066_s22, %s5067_s23  }
  0x27   :  { %s5068_s2 = smov [#allocation8]   ;;  %s5069_s27 = smov [#allocation11]  }
  0x28   :  { %s81_s26 = sshll.u32 %s5068_s2, 4  ;;  %s109_s28 = sshll.u32 %s5069_s27, 4  ;;  %s82_s26 = int_to_ptr.vmem [resolvable:$true] %s81_s26  ;;  %s110_s28 = int_to_ptr.vmem [resolvable:$true] %s109_s28 }
  0x29   :  { %s4739_s4 = scalar_lea.hbm %s6436_s7, 1024 }
  0x2a   :  { %p4740_p8 = scmp.ne.s32.totalorder %s6436_s7, %s4739_s4  ;;  %p4743_p9 = scmp.lt.u32.totalorder %s4739_s4, %s6436_s7 }
  0x2c   :  { %p4745_p10 = pnand %p4743_p9, %p4740_p8 }
  0x2e   :  { %4748 = shalt.err (!%p4745_p10)
}
  0x2f   :  { %s4749_s25 = scalar_lea.vmem %s82_s26, 1024  ;;  %p4754_p12 = scmp.lt.s32.totalorder %s82_s26, %s82_s26 }
  0x30   :  { %p4750_p11 = scmp.ne.s32.totalorder %s82_s26, %s4749_s25  ;;  %p4755_p13 = scmp.lt.s32.totalorder %s4749_s25, %s4749_s25 }
  0x32   :  { %p4756_p0 = por %p4755_p13, %p4754_p12 }
  0x34   :  { %p4757_p1 = pnand %p4756_p0, %p4750_p11 }
  0x36   :  { %4760 = shalt.err (!%p4757_p1)
}
  0x37   :  { %87 = dma.hbm_to_vmem [thread:$0]  %s6436_s7, 1024, %s82_s26, [#allocation9], %s5066_s22, %s5066_s22, %s5067_s23  }
  0x38   :  { %s4761_s21 = scalar_lea.hbm %s6440_s11, 6400 }
  0x39   :  { %p4762_p2 = scmp.ne.s32.totalorder %s6440_s11, %s4761_s21  ;;  %p4765_p3 = scmp.lt.u32.totalorder %s4761_s21, %s6440_s11 }
  0x3b   :  { %p4767_p4 = pnand %p4765_p3, %p4762_p2 }
  0x3d   :  { %4770 = shalt.err (!%p4767_p4)
}
  0x3e   :  { %s4771_s4 = scalar_lea.vmem %s110_s28, 6400  ;;  %p4776_p6 = scmp.lt.s32.totalorder %s110_s28, %s110_s28 }
  0x3f   :  { %p4772_p5 = scmp.ne.s32.totalorder %s110_s28, %s4771_s4  ;;  %p4777_p7 = scmp.lt.s32.totalorder %s4771_s4, %s4771_s4 }
  0x41   :  { %p4778_p8 = por %p4777_p7, %p4776_p6 }
  0x43   :  { %p4779_p9 = pnand %p4778_p8, %p4772_p5 }
  0x45   :  { %4782 = shalt.err (!%p4779_p9)
}
  0x46   :  { %115 = dma.hbm_to_vmem [thread:$0]  %s6440_s11, 6400, %s110_s28, [#allocation12], %s5066_s22, %s5066_s22, %s5067_s23  }
  0x47   :  { %s5070_s30 = smov [#allocation14]   ;;  %s5071_s25 = smov [#allocation17]  }
  0x48   :  { %s131_s5 = sshll.u32 %s5070_s30, 4  ;;  %s153_s3 = sshll.u32 %s5071_s25, 4  ;;  %s132_s5 = int_to_ptr.vmem [resolvable:$true] %s131_s5  ;;  %s154_s3 = int_to_ptr.vmem [resolvable:$true] %s153_s3 }
  0x49   :  { %s4783_s20 = scalar_lea.hbm %s6442_s13, 6400 }
  0x4a   :  { %p4784_p10 = scmp.ne.s32.totalorder %s6442_s13, %s4783_s20  ;;  %p4787_p11 = scmp.lt.u32.totalorder %s4783_s20, %s6442_s13 }
  0x4c   :  { %p4789_p12 = pnand %p4787_p11, %p4784_p10 }
  0x4e   :  { %4792 = shalt.err (!%p4789_p12)
}
  0x4f   :  { %s4793_s11 = scalar_lea.vmem %s132_s5, 6400  ;;  %p4798_p0 = scmp.lt.s32.totalorder %s132_s5, %s132_s5 }
  0x50   :  { %p4794_p13 = scmp.ne.s32.totalorder %s132_s5, %s4793_s11  ;;  %p4799_p1 = scmp.lt.s32.totalorder %s4793_s11, %s4793_s11 }
  0x52   :  { %p4800_p2 = por %p4799_p1, %p4798_p0 }
  0x54   :  { %p4801_p3 = pnand %p4800_p2, %p4794_p13 }
  0x56   :  { %4804 = shalt.err (!%p4801_p3)
}
  0x57   :  { %137 = dma.hbm_to_vmem [thread:$0]  %s6442_s13, 6400, %s132_s5, [#allocation15], %s5066_s22, %s5066_s22, %s5067_s23  }
  0x58   :  { %s4805_s26 = scalar_lea.hbm %s6444_s15, 6400 }
  0x59   :  { %p4806_p4 = scmp.ne.s32.totalorder %s6444_s15, %s4805_s26  ;;  %p4809_p5 = scmp.lt.u32.totalorder %s4805_s26, %s6444_s15 }
  0x5b   :  { %p4811_p6 = pnand %p4809_p5, %p4806_p4 }
  0x5d   :  { %4814 = shalt.err (!%p4811_p6)
}
  0x5e   :  { %s4815_s20 = scalar_lea.vmem %s154_s3, 6400  ;;  %p4820_p8 = scmp.lt.s32.totalorder %s154_s3, %s154_s3 }
  0x5f   :  { %p4816_p7 = scmp.ne.s32.totalorder %s154_s3, %s4815_s20  ;;  %p4821_p9 = scmp.lt.s32.totalorder %s4815_s20, %s4815_s20 }
  0x61   :  { %p4822_p10 = por %p4821_p9, %p4820_p8 }
  0x63   :  { %p4823_p11 = pnand %p4822_p10, %p4816_p7 }
  0x65   :  { %4826 = shalt.err (!%p4823_p11)
}
  0x66   :  { %s5072_s13 = smov 128   ;;  %s5073_s5 = smov 8  }
  0x67   :  { %159 = dma.hbm_to_vmem [thread:$0]  %s6444_s15, 6400, %s154_s3, [#allocation18], %s5072_s13, %s5072_s13, %s5073_s5  }
  0x68   :  { %s5074_s27 = smov [#allocation20]   ;;  %s5075_s11 = smov [#allocation2]  }
  0x69   :  { %s175_s29 = sshll.u32 %s5074_s27, 4  ;;  %s50_s28 = sshll.u32 %s5075_s11, 4  ;;  %s176_s29 = int_to_ptr.vmem [resolvable:$true] %s175_s29  ;;  %s51_s28 = int_to_ptr.vmem [resolvable:$true] %s50_s28 }
  0x6a   :  { %s4827_s7 = scalar_lea.hbm %s6446_s17, 6400 }
  0x6b   :  { %p4828_p12 = scmp.ne.s32.totalorder %s6446_s17, %s4827_s7  ;;  %p4831_p13 = scmp.lt.u32.totalorder %s4827_s7, %s6446_s17 }
  0x6d   :  { %p4833_p0 = pnand %p4831_p13, %p4828_p12 }
  0x6f   :  { %4836 = shalt.err (!%p4833_p0)
}
  0x70   :  { %s4837_s15 = scalar_lea.vmem %s176_s29, 6400  ;;  %p4842_p2 = scmp.lt.s32.totalorder %s176_s29, %s176_s29 }
  0x71   :  { %p4838_p1 = scmp.ne.s32.totalorder %s176_s29, %s4837_s15  ;;  %p4843_p3 = scmp.lt.s32.totalorder %s4837_s15, %s4837_s15 }
  0x73   :  { %p4844_p4 = por %p4843_p3, %p4842_p2 }
  0x75   :  { %p4845_p5 = pnand %p4844_p4, %p4838_p1 }
  0x77   :  { %4848 = shalt.err (!%p4845_p5)
}
  0x78   :  { %181 = dma.hbm_to_vmem [thread:$0]  %s6446_s17, 6400, %s176_s29, [#allocation21], %s5066_s22, %s5066_s22, %s5067_s23  }
  0x79   :  { %s6490_s5 = sld [smem:[#allocation57_spill]] }
  0x7f   :  { %s4849_s21 = scalar_lea.hbm %s6490_s5, 128 }
  0x80   :  { %p4850_p6 = scmp.ne.s32.totalorder %s6490_s5, %s4849_s21  ;;  %p4853_p7 = scmp.lt.u32.totalorder %s4849_s21, %s6490_s5 }
  0x82   :  { %p4855_p8 = pnand %p4853_p7, %p4850_p6 }
  0x84   :  { %4858 = shalt.err (!%p4855_p8)
}
  0x85   :  { %s4859_s4 = scalar_lea.vmem %s51_s28, 128  ;;  %p4864_p10 = scmp.lt.s32.totalorder %s51_s28, %s51_s28 }
  0x86   :  { %p4860_p9 = scmp.ne.s32.totalorder %s51_s28, %s4859_s4  ;;  %p4865_p11 = scmp.lt.s32.totalorder %s4859_s4, %s4859_s4 }
  0x88   :  { %p4866_p12 = por %p4865_p11, %p4864_p10 }
  0x8a   :  { %p4867_p13 = pnand %p4866_p12, %p4860_p9 }
  0x8c   :  { %4870 = shalt.err (!%p4867_p13)
}
  0x8d   :  { %53 = dma.hbm_to_vmem [thread:$0]  %s6490_s5, 128, %s51_s28, [#allocation3]  }
  0x8e   :  { %s5076_s7 = smov [#allocation7]   ;;  %s5077_s30 = smov [#allocation10]  }
  0x8f   :  { %s72_s26 = sshll.u32 %s5076_s7, 4  ;;  %s95_s25 = sshll.u32 %s5077_s30, 4  ;;  %s73_s26 = int_to_ptr.vmem [resolvable:$true] %s72_s26  ;;  %s96_s25 = int_to_ptr.vmem [resolvable:$true] %s95_s25 }
  0x90   :  { %s4871_s3 = scalar_lea.hbm %s6435_s6, 128 }
  0x91   :  { %p4872_p0 = scmp.ne.s32.totalorder %s6435_s6, %s4871_s3  ;;  %p4875_p1 = scmp.lt.u32.totalorder %s4871_s3, %s6435_s6 }
  0x93   :  { %p4877_p2 = pnand %p4875_p1, %p4872_p0 }
  0x95   :  { %4880 = shalt.err (!%p4877_p2)
}
  0x96   :  { %s4881_s28 = scalar_lea.vmem %s73_s26, 128  ;;  %p4886_p4 = scmp.lt.s32.totalorder %s73_s26, %s73_s26 }
  0x97   :  { %p4882_p3 = scmp.ne.s32.totalorder %s73_s26, %s4881_s28  ;;  %p4887_p5 = scmp.lt.s32.totalorder %s4881_s28, %s4881_s28 }
  0x99   :  { %p4888_p6 = por %p4887_p5, %p4886_p4 }
  0x9b   :  { %p4889_p7 = pnand %p4888_p6, %p4882_p3 }
  0x9d   :  { %4892 = shalt.err (!%p4889_p7)
}
  0x9e   :  { %75 = dma.hbm_to_vmem [thread:$0]  %s6435_s6, 128, %s73_s26, [#allocation6]  }
  0x9f   :  { %s4893_s0 = scalar_lea.hbm %s6438_s9, 6400 }
  0xa0   :  { %p4894_p8 = scmp.ne.s32.totalorder %s6438_s9, %s4893_s0  ;;  %p4897_p9 = scmp.lt.u32.totalorder %s4893_s0, %s6438_s9 }
  0xa2   :  { %p4899_p10 = pnand %p4897_p9, %p4894_p8 }
  0xa4   :  { %4902 = shalt.err (!%p4899_p10)
}
  0xa5   :  { %s4903_s30 = scalar_lea.vmem %s96_s25, 6400  ;;  %p4908_p12 = scmp.lt.s32.totalorder %s96_s25, %s96_s25 }
  0xa6   :  { %p4904_p11 = scmp.ne.s32.totalorder %s96_s25, %s4903_s30  ;;  %p4909_p13 = scmp.lt.s32.totalorder %s4903_s30, %s4903_s30 }
  0xa8   :  { %p4910_p0 = por %p4909_p13, %p4908_p12 }
  0xaa   :  { %p4911_p1 = pnand %p4910_p0, %p4904_p11 }
  0xac   :  { %4914 = shalt.err (!%p4911_p1)
}
  0xad   :  { %101 = dma.hbm_to_vmem [thread:$0]  %s6438_s9, 6400, %s96_s25, [#allocation9], %s5066_s22, %s5066_s22, %s5067_s23  }
  0xae   :  { %s5078_s1 = smov [#allocation13]   ;;  %s5079_s3 = smov [#allocation16]  }
  0xaf   :  { %s122_s15 = sshll.u32 %s5078_s1, 4  ;;  %s144_s24 = sshll.u32 %s5079_s3, 4  ;;  %s123_s15 = int_to_ptr.vmem [resolvable:$true] %s122_s15  ;;  %s145_s24 = int_to_ptr.vmem [resolvable:$true] %s144_s24 }
  0xb0   :  { %s4915_s21 = scalar_lea.hbm %s6441_s12, 128 }
  0xb1   :  { %p4916_p2 = scmp.ne.s32.totalorder %s6441_s12, %s4915_s21  ;;  %p4919_p3 = scmp.lt.u32.totalorder %s4915_s21, %s6441_s12 }
  0xb3   :  { %p4921_p4 = pnand %p4919_p3, %p4916_p2 }
  0xb5   :  { %4924 = shalt.err (!%p4921_p4)
}
  0xb6   :  { %s4925_s9 = scalar_lea.vmem %s123_s15, 128  ;;  %p4930_p6 = scmp.lt.s32.totalorder %s123_s15, %s123_s15 }
  0xb7   :  { %p4926_p5 = scmp.ne.s32.totalorder %s123_s15, %s4925_s9  ;;  %p4931_p7 = scmp.lt.s32.totalorder %s4925_s9, %s4925_s9 }
  0xb9   :  { %p4932_p8 = por %p4931_p7, %p4930_p6 }
  0xbb   :  { %p4933_p9 = pnand %p4932_p8, %p4926_p5 }
  0xbd   :  { %4936 = shalt.err (!%p4933_p9)
}
  0xbe   :  { %125 = dma.hbm_to_vmem [thread:$0]  %s6441_s12, 128, %s123_s15, [#allocation12]  }
  0xbf   :  { %s4937_s0 = scalar_lea.hbm %s6443_s14, 128 }
  0xc0   :  { %p4938_p10 = scmp.ne.s32.totalorder %s6443_s14, %s4937_s0  ;;  %p4941_p11 = scmp.lt.u32.totalorder %s4937_s0, %s6443_s14 }
  0xc2   :  { %p4943_p12 = pnand %p4941_p11, %p4938_p10 }
  0xc4   :  { %4946 = shalt.err (!%p4943_p12)
}
  0xc5   :  { %s4947_s30 = scalar_lea.vmem %s145_s24, 128  ;;  %p4952_p0 = scmp.lt.s32.totalorder %s145_s24, %s145_s24 }
  0xc6   :  { %p4948_p13 = scmp.ne.s32.totalorder %s145_s24, %s4947_s30  ;;  %p4953_p1 = scmp.lt.s32.totalorder %s4947_s30, %s4947_s30 }
  0xc8   :  { %p4954_p2 = por %p4953_p1, %p4952_p0 }
  0xca   :  { %p4955_p3 = pnand %p4954_p2, %p4948_p13 }
  0xcc   :  { %4958 = shalt.err (!%p4955_p3)
}
  0xcd   :  { %147 = dma.hbm_to_vmem [thread:$0]  %s6443_s14, 128, %s145_s24, [#allocation15]  }
  0xce   :  { %s5080_s26 = smov [#allocation19]   ;;  %s5081_s15 = smov [#allocation22]  }
  0xcf   :  { %s166_s1 = sshll.u32 %s5080_s26, 4  ;;  %s188_s3 = sshll.u32 %s5081_s15, 4  ;;  %s167_s1 = int_to_ptr.vmem [resolvable:$true] %s166_s1  ;;  %s189_s3 = int_to_ptr.vmem [resolvable:$true] %s188_s3 }
  0xd0   :  { %s4959_s21 = scalar_lea.hbm %s6445_s16, 16 }
  0xd1   :  { %p4960_p4 = scmp.ne.s32.totalorder %s6445_s16, %s4959_s21  ;;  %p4963_p5 = scmp.lt.u32.totalorder %s4959_s21, %s6445_s16 }
  0xd3   :  { %p4965_p6 = pnand %p4963_p5, %p4960_p4 }
  0xd5   :  { %4968 = shalt.err (!%p4965_p6)
}
  0xd6   :  { %s4969_s14 = scalar_lea.vmem %s167_s1, 16  ;;  %s4973_s24 = scalar_lea.vmem %s167_s1, 32 }
  0xd7   :  { %p4970_p7 = scmp.ne.s32.totalorder %s167_s1, %s4969_s14  ;;  %p4974_p8 = scmp.lt.s32.totalorder %s167_s1, %s167_s1 }
  0xd8   :  { %p4975_p9 = scmp.lt.s32.totalorder %s4973_s24, %s4969_s14 }
  0xda   :  { %p4976_p10 = por %p4975_p9, %p4974_p8 }
  0xdc   :  { %p4977_p11 = pnand %p4976_p10, %p4970_p7 }
  0xde   :  { %4980 = shalt.err (!%p4977_p11)
}
  0xdf   :  { %169 = dma.hbm_to_vmem [thread:$0]  %s6445_s16, 16, %s167_s1, [#allocation18]  }
  0xe0   :  { %s4981_s11 = scalar_lea.hbm %s6447_s18, 32 }
  0xe1   :  { %p4982_p12 = scmp.ne.s32.totalorder %s6447_s18, %s4981_s11  ;;  %p4985_p13 = scmp.lt.u32.totalorder %s4981_s11, %s6447_s18 }
  0xe3   :  { %p4987_p0 = pnand %p4985_p13, %p4982_p12 }
  0xe5   :  { %4990 = shalt.err (!%p4987_p0)
}
  0xe6   :  { %s4991_s7 = scalar_lea.vmem %s189_s3, 32  ;;  %p4996_p2 = scmp.lt.s32.totalorder %s189_s3, %s189_s3 }
  0xe7   :  { %p4992_p1 = scmp.ne.s32.totalorder %s189_s3, %s4991_s7  ;;  %p4997_p3 = scmp.lt.s32.totalorder %s4991_s7, %s4991_s7 }
  0xe9   :  { %p4998_p4 = por %p4997_p3, %p4996_p2 }
  0xeb   :  { %p4999_p5 = pnand %p4998_p4, %p4992_p1 }
  0xed   :  { %5002 = shalt.err (!%p4999_p5)
}
  0xee   :  { %191 = dma.hbm_to_vmem [thread:$0]  %s6447_s18, 32, %s189_s3, [#allocation21]  }
  0xef   :  { %5047 = dma.done.wait [#allocation3], 128  }
  0xf0   :  { %5048 = vsyncadd [#allocation3], 4294967168 }
  0xf1   :  { %5049 = dma.done.wait [#allocation6], 6528  }
  0xf2   :  { %5050 = vsyncadd [#allocation6], 4294960768 }
  0xf3   :  { %5051 = dma.done.wait [#allocation9], 7424  }
  0xf4   :  { %5052 = vsyncadd [#allocation9], 4294959872 }
  0xf5   :  { %5053 = dma.done.wait [#allocation12], 6528  }
  0xf6   :  { %5054 = vsyncadd [#allocation12], 4294960768 }
  0xf7   :  { %5055 = dma.done.wait [#allocation15], 6528  }
  0xf8   :  { %5056 = vsyncadd [#allocation15], 4294960768 }
  0xf9   :  { %5057 = dma.done.wait [#allocation18], 6416  }
  0xfa   :  { %5058 = vsyncadd [#allocation18], 4294960880 }
  0xfb   :  { %5059 = dma.done.wait [#allocation21], 6432  }
  0xfc   :  { %5060 = vsyncadd [#allocation21], 4294960864  ;;  %v6457_v0 = vmov 0.0   ;;  %s6491_s6 = sld [smem:[#allocation56_spill]]  ;;  %v882_v3 = vld [vmem:[#allocation8 + $0x8] sm:$0xff]  ;;  %v884_v5 = vld [vmem:[#allocation8 + $0x18] sm:$0xff] }
  0xfd   :  { %979 = vmatprep.mubr.f32.mxu0 %v6457_v0  ;;  %340 = vmatprep.mubr.f32.mxu1 %v6457_v0  ;;  %v4193_v8 = vpack.c.bf16 %v884_v5, %v882_v3  ;;  %v881_v10 = vld [vmem:[#allocation8] sm:$0xff]  ;;  %v883_v11 = vld [vmem:[#allocation8 + $0x10] sm:$0xff]  ;;  %v886_v15 = vld [vmem:[#allocation8 + $0x28] sm:$0xff]  ;;  %s6492_s1 = sld [smem:[#allocation54_spill]]  ;;  %vm908_vm0 = vcmask 261120   ;;  %s6493_s27 = sld [smem:[#allocation53_spill]] }
  0xfe   :  { %v4195_v13 = vpack.c.bf16 %v883_v11, %v881_v10  ;;  %v888_v16 = vld [vmem:[#allocation8 + $0x38] sm:$0xff]  ;;  %v885_v21 = vld [vmem:[#allocation8 + $0x20] sm:$0xff]  ;;  %v887_v23 = vld [vmem:[#allocation8 + $0x30] sm:$0xff]  ;;  %vm269_vm1 = vcmask 523264   ;;  %vm379_vm2 = vcmask 588800   ;;  %vm3019_vm6 = vcmask 130048  }
  0xff   :  { %4194 = vmatprep.subr.bf16.mxu0 %v4193_v8  ;;  %v4197_v18 = vpack.c.bf16 %v888_v16, %v886_v15  ;;  %v4199_v26 = vpack.c.bf16 %v887_v23, %v885_v21  ;;  %v1174_v41 = vld [vmem:[#allocation10 + $0x8] sm:$0xff]  ;;  %v1176_v42 = vld [vmem:[#allocation10 + $0x18] sm:$0xff]  ;;  %v1173_v44 = vld [vmem:[#allocation10] sm:$0xff]  ;;  %s6533_s25 = sld [smem:[#allocation55_spill]]  ;;  %vm5090_vm7 = vmmov 0   ;;  %vm3413_vm8 = vcmask 64512  }
 0x100   :  { %4196 = vmatpush1.bf16.msra.mxu0 %v4195_v13  ;;  %v4201_v43 = vpack.c.bf16 %v1176_v42, %v1174_v41  ;;  %v1175_v45 = vld [vmem:[#allocation10 + $0x10] sm:$0xff]  ;;  %v1178_v47 = vld [vmem:[#allocation10 + $0x28] sm:$0xff]  ;;  %v1180_v48 = vld [vmem:[#allocation10 + $0x38] sm:$0xff]  ;;  %vm3687_vm10 = vcmask 15368   ;;  %vm3748_vm11 = vcmask 23568   ;;  %vm3809_vm12 = vcmask 31768  }
 0x101   :  { %4198 = vmatprep.subr.bf16.mxu0 %v4197_v18  ;;  %v4203_v46 = vpack.c.bf16 %v1175_v45, %v1173_v44  ;;  %v4205_v49 = vpack.c.bf16 %v1180_v48, %v1178_v47  ;;  %v1177_v50 = vld [vmem:[#allocation10 + $0x20] sm:$0xff]  ;;  %v1179_v51 = vld [vmem:[#allocation10 + $0x30] sm:$0xff]  ;;  %v1182_v55 = vld [vmem:[#allocation10 + $0x48] sm:$0xff]  ;;  %vm3870_vm13 = vcmask 39968   ;;  %vm3931_vm14 = vcmask 48168   ;;  %s5091_s11 = smov 127  }
 0x102   :  { %v235_v1 = vld [vmem:[%s6491_s6 + $0x8] sm:$0xff]  ;;  %v237_v2 = vld [vmem:[%s6491_s6 + $0x18] sm:$0xff]  ;;  %v234_v6 = vld [vmem:[%s6491_s6] sm:$0xff]  ;;  %v4207_v52 = vpack.c.bf16 %v1179_v51, %v1177_v50  ;;  %s5092_s0 = smov 126   ;;  %s5093_s4 = smov 125  }
 0x103   :  { %v4129_v4 = vpack.c.bf16 %v237_v2, %v235_v1  ;;  %v236_v7 = vld [vmem:[%s6491_s6 + $0x10] sm:$0xff]  ;;  %v239_v12 = vld [vmem:[%s6491_s6 + $0x28] sm:$0xff]  ;;  %v241_v14 = vld [vmem:[%s6491_s6 + $0x38] sm:$0xff]  ;;  %s5094_s17 = smov 124   ;;  %s5095_s29 = smov 123  }
 0x104   :  { %v4131_v9 = vpack.c.bf16 %v236_v7, %v234_v6  ;;  %v4133_v17 = vpack.c.bf16 %v241_v14, %v239_v12  ;;  %v238_v19 = vld [vmem:[%s6491_s6 + $0x20] sm:$0xff]  ;;  %v240_v20 = vld [vmem:[%s6491_s6 + $0x30] sm:$0xff]  ;;  %v243_v24 = vld [vmem:[%s6491_s6 + $0x48] sm:$0xff]  ;;  %4200 = vmatpush1.bf16.msra.mxu0 %v4199_v26  ;;  %s5096_s7 = smov [#allocation23]   ;;  %s5097_s30 = smov [#allocation24]  }
 0x105   :  { %4130 = vmatprep.subr.bf16.mxu1 %v4129_v4  ;;  %v4135_v22 = vpack.c.bf16 %v240_v20, %v238_v19  ;;  %v245_v25 = vld [vmem:[%s6491_s6 + $0x58] sm:$0xff]  ;;  %v242_v28 = vld [vmem:[%s6491_s6 + $0x40] sm:$0xff]  ;;  %v244_v29 = vld [vmem:[%s6491_s6 + $0x50] sm:$0xff]  ;;  %4202 = vmatprep.subr.bf16.mxu0 %v4201_v43  ;;  %s3981_s16 = sshll.u32 %s5096_s7, 4  ;;  %s3991_s18 = sshll.u32 %s5097_s30, 4  ;;  %s3982_s16 = int_to_ptr.vmem [resolvable:$true] %s3981_s16  ;;  %s3992_s18 = int_to_ptr.vmem [resolvable:$true] %s3991_s18 }
 0x106   :  { %4132 = vmatpush1.bf16.msra.mxu1 %v4131_v9  ;;  %v4137_v27 = vpack.c.bf16 %v245_v25, %v243_v24  ;;  %v247_v30 = vld [vmem:[%s6491_s6 + $0x68] sm:$0xff]  ;;  %v249_v31 = vld [vmem:[%s6491_s6 + $0x78] sm:$0xff]  ;;  %v4139_v32 = vpack.c.bf16 %v244_v29, %v242_v28  ;;  %v878_v33 = vld [vmem:[%s6492_s1] sm:$0xff]  ;;  %s5003_s12 = scalar_lea.vmem %s3982_s16, 128  ;;  %p5008_p7 = scmp.lt.s32.totalorder %s3982_s16, %s3982_s16 }
 0x107   :  { %4134 = vmatprep.subr.bf16.mxu1 %v4133_v17  ;;  %v4141_v34 = vpack.c.bf16 %v249_v31, %v247_v30  ;;  %v246_v35 = vld [vmem:[%s6491_s6 + $0x60] sm:$0xff]  ;;  %v248_v36 = vld [vmem:[%s6491_s6 + $0x70] sm:$0xff]  ;;  %4018 = vmatmul.mubr.msk.f32.vlgmr.msra.gmra.mrb[0].mxu0 %vm908_vm0, %v878_v33  ;;  %v879_v38 = vld [vmem:[%s6492_s1 + $0x8] sm:$0xff]  ;;  %p5004_p6 = scmp.ne.s32.totalorder %s3982_s16, %s5003_s12  ;;  %p5009_p8 = scmp.lt.s32.totalorder %s5003_s12, %s5003_s12 }
 0x108   :  { %v4143_v37 = vpack.c.bf16 %v248_v36, %v246_v35  ;;  %985 = vmatprep.mubr.f32.mxu0 %v6457_v0  ;;  %v231_v39 = vld [vmem:[%s6493_s27] sm:$0xff]  ;;  %v232_v40 = vld [vmem:[%s6493_s27 + $0x8] sm:$0xff]  ;;  %4204 = vmatpush1.bf16.msra.mxu0 %v4203_v46  ;;  %v547_v53 = vld [vmem:[#allocation5 + $0x8] sm:$0xff] }
 0x109   :  { %4206 = vmatprep.subr.bf16.mxu0 %v4205_v49  ;;  %v549_v54 = vld [vmem:[#allocation5 + $0x18] sm:$0xff]  ;;  %v1184_v57 = vld [vmem:[#allocation10 + $0x58] sm:$0xff]  ;;  %v546_v58 = vld [vmem:[#allocation5] sm:$0xff]  ;;  %p5010_p9 = por %p5009_p8, %p5008_p7 }
 0x10a   :  { %4136 = vmatpush1.bf16.msra.mxu1 %v4135_v22  ;;  %v4145_v56 = vpack.c.bf16 %v549_v54, %v547_v53  ;;  %v548_v59 = vld [vmem:[#allocation5 + $0x10] sm:$0xff]  ;;  %v4209_v60 = vpack.c.bf16 %v1184_v57, %v1182_v55  ;;  %v1181_v62 = vld [vmem:[#allocation10 + $0x40] sm:$0xff]  ;;  %v1183_v63 = vld [vmem:[#allocation10 + $0x50] sm:$0xff] }
 0x10b   :  { %4138 = vmatprep.subr.bf16.mxu1 %v4137_v27  ;;  %4019 = vmatmul.mubr.msk.f32.gmra.mrb[2].mxu0 %vm908_vm0, %v879_v38  ;;  %v4147_v61 = vpack.c.bf16 %v548_v59, %v546_v58  ;;  %v4211_v1 = vpack.c.bf16 %v1183_v63, %v1181_v62  ;;  %v551_v2 = vld [vmem:[#allocation5 + $0x28] sm:$0xff]  ;;  %v553_v3 = vld [vmem:[#allocation5 + $0x38] sm:$0xff]  ;;  %v1186_v4 = vld [vmem:[#allocation10 + $0x68] sm:$0xff]  ;;  %p5011_p10 = pnand %p5010_p9, %p5004_p6 }
 0x10c   :  { %4208 = vmatpush1.bf16.msra.mxu0 %v4207_v52  ;;  %v4149_v5 = vpack.c.bf16 %v553_v3, %v551_v2  ;;  %v1188_v6 = vld [vmem:[#allocation10 + $0x78] sm:$0xff]  ;;  %v550_v7 = vld [vmem:[#allocation5 + $0x20] sm:$0xff]  ;;  %v1185_v11 = vld [vmem:[#allocation10 + $0x60] sm:$0xff] }
 0x10d   :  { %4210 = vmatprep.subr.bf16.mxu0 %v4209_v60  ;;  %v552_v8 = vld [vmem:[#allocation5 + $0x30] sm:$0xff]  ;;  %v4213_v9 = vpack.c.bf16 %v1188_v6, %v1186_v4  ;;  %v1187_v12 = vld [vmem:[#allocation10 + $0x70] sm:$0xff]  ;;  %v557_v15 = vld [vmem:[#allocation5 + $0x58] sm:$0xff] }
 0x10e   :  { %4140 = vmatpush1.bf16.msra.mxu1 %v4139_v32  ;;  %v4151_v10 = vpack.c.bf16 %v552_v8, %v550_v7  ;;  %v4215_v13 = vpack.c.bf16 %v1187_v12, %v1185_v11  ;;  %v555_v14 = vld [vmem:[#allocation5 + $0x48] sm:$0xff]  ;;  %v1190_v16 = vld [vmem:[#allocation10 + $0x88] sm:$0xff]  ;;  %v1192_v18 = vld [vmem:[#allocation10 + $0x98] sm:$0xff] }
 0x10f   :  { %4142 = vmatprep.subr.bf16.mxu1 %v4141_v34  ;;  %v4153_v17 = vpack.c.bf16 %v557_v15, %v555_v14  ;;  %v554_v19 = vld [vmem:[#allocation5 + $0x40] sm:$0xff]  ;;  %v556_v20 = vld [vmem:[#allocation5 + $0x50] sm:$0xff]  ;;  %v4217_v21 = vpack.c.bf16 %v1192_v18, %v1190_v16  ;;  %v1189_v23 = vld [vmem:[#allocation10 + $0x80] sm:$0xff] }
 0x110   :  { %4212 = vmatpush1.bf16.msra.mxu0 %v4211_v1  ;;  %v4155_v22 = vpack.c.bf16 %v556_v20, %v554_v19  ;;  %v1191_v24 = vld [vmem:[#allocation10 + $0x90] sm:$0xff]  ;;  %v561_v27 = vld [vmem:[#allocation5 + $0x78] sm:$0xff]  ;;  %v1194_v28 = vld [vmem:[#allocation10 + $0xa8] sm:$0xff] }
 0x111   :  { %4214 = vmatprep.subr.bf16.mxu0 %v4213_v9  ;;  %v4219_v25 = vpack.c.bf16 %v1191_v24, %v1189_v23  ;;  %v559_v26 = vld [vmem:[#allocation5 + $0x68] sm:$0xff]  ;;  %v1196_v30 = vld [vmem:[#allocation10 + $0xb8] sm:$0xff]  ;;  %v558_v31 = vld [vmem:[#allocation5 + $0x60] sm:$0xff] }
 0x112   :  { %4144 = vmatpush1.bf16.msra.mxu1 %v4143_v37  ;;  %v4157_v29 = vpack.c.bf16 %v561_v27, %v559_v26  ;;  %v560_v32 = vld [vmem:[#allocation5 + $0x70] sm:$0xff]  ;;  %v4221_v33 = vpack.c.bf16 %v1196_v30, %v1194_v28  ;;  %v1193_v35 = vld [vmem:[#allocation10 + $0xa0] sm:$0xff]  ;;  %v1195_v36 = vld [vmem:[#allocation10 + $0xb0] sm:$0xff] }
 0x113   :  { %4146 = vmatprep.subr.bf16.mxu1 %v4145_v56  ;;  %v4159_v34 = vpack.c.bf16 %v560_v32, %v558_v31  ;;  %v4223_v37 = vpack.c.bf16 %v1195_v36, %v1193_v35  ;;  %v563_v38 = vld [vmem:[#allocation5 + $0x88] sm:$0xff]  ;;  %v1200_v42 = vld [vmem:[#allocation10 + $0xd8] sm:$0xff]  ;;  %v562_v43 = vld [vmem:[#allocation5 + $0x80] sm:$0xff] }
 0x114   :  { %4216 = vmatpush1.bf16.msra.mxu0 %v4215_v13  ;;  %v564_v44 = vld [vmem:[#allocation5 + $0x90] sm:$0xff]  ;;  %v1197_v47 = vld [vmem:[#allocation10 + $0xc0] sm:$0xff]  ;;  %v1199_v48 = vld [vmem:[#allocation10 + $0xd0] sm:$0xff] }
 0x115   :  { %4014 = vmatmul.mubr.msk.f32.vlgmr.msra.gmra.mrb[0].mxu1 %vm269_vm1, %v231_v39  ;;  %4218 = vmatprep.subr.bf16.mxu0 %v4217_v21  ;;  %v565_v39 = vld [vmem:[#allocation5 + $0x98] sm:$0xff]  ;;  %v4163_v46 = vpack.c.bf16 %v564_v44, %v562_v43  ;;  %v4227_v49 = vpack.c.bf16 %v1199_v48, %v1197_v47  ;;  %v567_v50 = vld [vmem:[#allocation5 + $0xa8] sm:$0xff]  ;;  %v1202_v52 = vld [vmem:[#allocation10 + $0xe8] sm:$0xff] }
 0x116   :  { %346 = vmatprep.mubr.f32.mxu1 %v6457_v0  ;;  %4148 = vmatpush1.bf16.msra.mxu1 %v4147_v61  ;;  %v4161_v41 = vpack.c.bf16 %v565_v39, %v563_v38  ;;  %v569_v51 = vld [vmem:[#allocation5 + $0xb8] sm:$0xff]  ;;  %v1204_v54 = vld [vmem:[#allocation10 + $0xf8] sm:$0xff]  ;;  %v566_v55 = vld [vmem:[#allocation5 + $0xa0] sm:$0xff] }
 0x117   :  { %4150 = vmatprep.subr.bf16.mxu1 %v4149_v5  ;;  %v4165_v53 = vpack.c.bf16 %v569_v51, %v567_v50  ;;  %v568_v56 = vld [vmem:[#allocation5 + $0xb0] sm:$0xff]  ;;  %v4229_v57 = vpack.c.bf16 %v1204_v54, %v1202_v52  ;;  %v1201_v59 = vld [vmem:[#allocation10 + $0xe0] sm:$0xff]  ;;  %v1203_v60 = vld [vmem:[#allocation10 + $0xf0] sm:$0xff] }
 0x118   :  { %4220 = vmatpush1.bf16.msra.mxu0 %v4219_v25  ;;  %v4167_v58 = vpack.c.bf16 %v568_v56, %v566_v55  ;;  %v4231_v61 = vpack.c.bf16 %v1203_v60, %v1201_v59  ;;  %v571_v62 = vld [vmem:[#allocation5 + $0xc8] sm:$0xff]  ;;  %v573_v63 = vld [vmem:[#allocation5 + $0xd8] sm:$0xff]  ;;  %v1206_v1 = vld [vmem:[#allocation10 + $0x108] sm:$0xff] }
 0x119   :  { %4015 = vmatmul.mubr.msk.f32.gmra.mrb[2].mxu1 %vm269_vm1, %v232_v40  ;;  %4222 = vmatprep.subr.bf16.mxu0 %v4221_v33  ;;  %v1198_v40 = vld [vmem:[#allocation10 + $0xc8] sm:$0xff]  ;;  %v4169_v2 = vpack.c.bf16 %v573_v63, %v571_v62  ;;  %v1208_v3 = vld [vmem:[#allocation10 + $0x118] sm:$0xff]  ;;  %v1205_v8 = vld [vmem:[#allocation10 + $0x100] sm:$0xff]  ;;  %v6459_v63 = vlaneseq  ;;  %vm3630_vm1 = vcmask 7168  }
 0x11a   :  { %4152 = vmatpush1.bf16.msra.mxu1 %v4151_v10  ;;  %v4225_v45 = vpack.c.bf16 %v1200_v42, %v1198_v40  ;;  %v570_v4 = vld [vmem:[#allocation5 + $0xc0] sm:$0xff]  ;;  %v572_v5 = vld [vmem:[#allocation5 + $0xd0] sm:$0xff]  ;;  %v4233_v6 = vpack.c.bf16 %v1208_v3, %v1206_v1  ;;  %v1207_v9 = vld [vmem:[#allocation10 + $0x110] sm:$0xff] }
 0x11b   :  { %4154 = vmatprep.subr.bf16.mxu1 %v4153_v17  ;;  %v4171_v7 = vpack.c.bf16 %v572_v5, %v570_v4  ;;  %v4235_v10 = vpack.c.bf16 %v1207_v9, %v1205_v8  ;;  %v575_v11 = vld [vmem:[#allocation5 + $0xe8] sm:$0xff]  ;;  %v577_v12 = vld [vmem:[#allocation5 + $0xf8] sm:$0xff]  ;;  %v1210_v13 = vld [vmem:[#allocation10 + $0x128] sm:$0xff]  ;;  %v5447_v1 = vshrl.u32 %v6459_v63, 7 }
 0x11c   :  { %4224 = vmatpush1.bf16.msra.mxu0 %v4223_v37  ;;  %v4173_v14 = vpack.c.bf16 %v577_v12, %v575_v11  ;;  %v1212_v15 = vld [vmem:[#allocation10 + $0x138] sm:$0xff]  ;;  %v574_v16 = vld [vmem:[#allocation5 + $0xe0] sm:$0xff]  ;;  %v1209_v20 = vld [vmem:[#allocation10 + $0x120] sm:$0xff] }
 0x11d   :  { %4226 = vmatprep.subr.bf16.mxu0 %v4225_v45  ;;  %v576_v17 = vld [vmem:[#allocation5 + $0xf0] sm:$0xff]  ;;  %v4237_v18 = vpack.c.bf16 %v1212_v15, %v1210_v13  ;;  %v1211_v21 = vld [vmem:[#allocation10 + $0x130] sm:$0xff]  ;;  %v581_v24 = vld [vmem:[#allocation5 + $0x118] sm:$0xff]  ;;  %6494 = vst [vmem:[#allocation35_spill] sm:$0xff] %v5447_v1  ;;  %v5458_v4 = vsub.s32 4, %v5447_v1 }
 0x11e   :  { %4156 = vmatpush1.bf16.msra.mxu1 %v4155_v22  ;;  %v4175_v19 = vpack.c.bf16 %v576_v17, %v574_v16  ;;  %v4239_v22 = vpack.c.bf16 %v1211_v21, %v1209_v20  ;;  %v579_v23 = vld [vmem:[#allocation5 + $0x108] sm:$0xff]  ;;  %v1214_v25 = vld [vmem:[#allocation10 + $0x148] sm:$0xff]  ;;  %v1216_v27 = vld [vmem:[#allocation10 + $0x158] sm:$0xff] }
 0x11f   :  { %4158 = vmatprep.subr.bf16.mxu1 %v4157_v29  ;;  %v4177_v26 = vpack.c.bf16 %v581_v24, %v579_v23  ;;  %v578_v28 = vld [vmem:[#allocation5 + $0x100] sm:$0xff]  ;;  %v580_v29 = vld [vmem:[#allocation5 + $0x110] sm:$0xff]  ;;  %v4241_v30 = vpack.c.bf16 %v1216_v27, %v1214_v25  ;;  %v1213_v32 = vld [vmem:[#allocation10 + $0x140] sm:$0xff]  ;;  %6496 = vst [vmem:[#allocation37_spill] sm:$0xff] %v5458_v4 }
 0x120   :  { %4228 = vmatpush1.bf16.msra.mxu0 %v4227_v49  ;;  %v4179_v31 = vpack.c.bf16 %v580_v29, %v578_v28  ;;  %v1215_v33 = vld [vmem:[#allocation10 + $0x150] sm:$0xff]  ;;  %v585_v36 = vld [vmem:[#allocation5 + $0x138] sm:$0xff]  ;;  %v1218_v37 = vld [vmem:[#allocation10 + $0x168] sm:$0xff] }
 0x121   :  { %4230 = vmatprep.subr.bf16.mxu0 %v4229_v57  ;;  %v583_v35 = vld [vmem:[#allocation5 + $0x128] sm:$0xff]  ;;  %v1220_v39 = vld [vmem:[#allocation10 + $0x178] sm:$0xff]  ;;  %v582_v40 = vld [vmem:[#allocation5 + $0x120] sm:$0xff] }
 0x122   :  { %4160 = vmatpush1.bf16.msra.mxu1 %v4159_v34  ;;  %v4243_v34 = vpack.c.bf16 %v1215_v33, %v1213_v32  ;;  %v4181_v38 = vpack.c.bf16 %v585_v36, %v583_v35  ;;  %v4245_v42 = vpack.c.bf16 %v1220_v39, %v1218_v37  ;;  %v1217_v44 = vld [vmem:[#allocation10 + $0x160] sm:$0xff]  ;;  %v1219_v45 = vld [vmem:[#allocation10 + $0x170] sm:$0xff]  ;;  %v586_v50 = vld [vmem:[#allocation5 + $0x140] sm:$0xff] }
 0x123   :  { %4162 = vmatprep.subr.bf16.mxu1 %v4161_v41  ;;  %v584_v41 = vld [vmem:[#allocation5 + $0x130] sm:$0xff]  ;;  %v587_v47 = vld [vmem:[#allocation5 + $0x148] sm:$0xff]  ;;  %v589_v48 = vld [vmem:[#allocation5 + $0x158] sm:$0xff] }
 0x124   :  { %4232 = vmatpush1.bf16.msra.mxu0 %v4231_v61  ;;  %v4183_v43 = vpack.c.bf16 %v584_v41, %v582_v40  ;;  %v4185_v49 = vpack.c.bf16 %v589_v48, %v587_v47  ;;  %v588_v51 = vld [vmem:[#allocation5 + $0x150] sm:$0xff]  ;;  %v1222_v52 = vld [vmem:[#allocation10 + $0x188] sm:$0xff]  ;;  %v1221_v54 = vld [vmem:[#allocation10 + $0x180] sm:$0xff] }
 0x125   :  { %4234 = vmatprep.subr.bf16.mxu0 %v4233_v6  ;;  %v591_v55 = vld [vmem:[#allocation5 + $0x168] sm:$0xff]  ;;  %v593_v56 = vld [vmem:[#allocation5 + $0x178] sm:$0xff]  ;;  %v590_v57 = vld [vmem:[#allocation5 + $0x160] sm:$0xff] }
 0x126   :  { %4164 = vmatpush1.bf16.msra.mxu1 %v4163_v46  ;;  %v4247_v46 = vpack.c.bf16 %v1219_v45, %v1217_v44  ;;  %v592_v59 = vld [vmem:[#allocation5 + $0x170] sm:$0xff]  ;;  %v595_v61 = vld [vmem:[#allocation5 + $0x188] sm:$0xff]  ;;  %v594_v62 = vld [vmem:[#allocation5 + $0x180] sm:$0xff] }
 0x127   :  { %4166 = vmatprep.subr.bf16.mxu1 %v4165_v53  ;;  %v4187_v53 = vpack.c.bf16 %v588_v51, %v586_v50  ;;  %v4191_v60 = vpack.c.bf16 %v592_v59, %v590_v57  ;;  %v5455_v3 = vld [vmem:[%s6437_s8] sm:$0x77]  ;;  %vm6086_vm3 = vmpackc.low %vm379_vm2, %vm379_vm2 }
 0x128   :  { %4236 = vmatpush1.bf16.msra.mxu0 %v4235_v10  ;;  %v897_v6 = vrot.slane %v5455_v3, %v5458_v4  ;;  %v5465_v8 = vld [vmem:[#allocation2] sm:$0x77] }
 0x129   :  { %4238 = vmatprep.subr.bf16.mxu0 %v4237_v18 }
 0x12a   :  { %4168 = vmatpush1.bf16.msra.mxu1 %v4167_v58  ;;  %v4189_v58 = vpack.c.bf16 %v593_v56, %v591_v55 }
 0x12b   :  { %4170 = vmatprep.subr.bf16.mxu1 %v4169_v2  ;;  %v5450_v2 = vsub.s32 0, %v5447_v1 }
 0x12c   :  { %4240 = vmatpush1.bf16.msra.mxu0 %v4239_v22 }
 0x12d   :  { %4242 = vmatprep.subr.bf16.mxu0 %v4241_v30  ;;  %6495 = vst [vmem:[#allocation36_spill] sm:$0xff] %v5450_v2  ;;  %v893_v5 = vrot.slane %v5455_v3, %v5450_v2  ;;  %v907_v9 = vrot.slane %v897_v6, %v5450_v2  ;;  %v254_v11 = vrot.slane %v5465_v8, %v5450_v2 }
 0x12e   :  { %4172 = vmatpush1.bf16.msra.mxu1 %v4171_v7 }
 0x12f   :  { %4174 = vmatprep.subr.bf16.mxu1 %v4173_v14  ;;  %v903_v7 = vrot.slane %v893_v5, %v5450_v2  ;;  %v258_v14 = vrot.slane %v5465_v8, %v5458_v4 }
 0x130   :  { %4244 = vmatpush1.bf16.msra.mxu0 %v4243_v34 }
 0x131   :  { %4246 = vmatprep.subr.bf16.mxu0 %v4245_v42  ;;  %v268_v23 = vrot.slane %v258_v14, %v5450_v2 }
 0x132   :  { %4176 = vmatpush1.bf16.msra.mxu1 %v4175_v19  ;;  %v264_v19 = vrot.slane %v254_v11, %v5450_v2 }
 0x133   :  { %4178 = vmatprep.subr.bf16.mxu1 %v4177_v26 }
 0x134   :  { %4248 = vmatpush1.bf16.msra.mxu0 %v4247_v46 }
 0x135   :  { %1296 = vmatprep.subr.mxu0 %v1222_v52 }
 0x136   :  { %4180 = vmatpush1.bf16.msra.mxu1 %v4179_v31 }
 0x137   :  { %4182 = vmatprep.subr.bf16.mxu1 %v4181_v38 }
 0x138   :  { %1297 = vmatpush1.msra.mxu0 %v1221_v54 }
 0x13a   :  { %4184 = vmatpush1.bf16.msra.mxu1 %v4183_v43 }
 0x13b   :  { %4186 = vmatprep.subr.bf16.mxu1 %v4185_v49 }
 0x13e   :  { %4188 = vmatpush1.bf16.msra.mxu1 %v4187_v53 }
 0x13f   :  { %4190 = vmatprep.subr.bf16.mxu1 %v4189_v58 }
 0x142   :  { %4192 = vmatpush1.bf16.msra.mxu1 %v4191_v60 }
 0x143   :  { %669 = vmatprep.subr.mxu1 %v595_v61 }
 0x146   :  { %670 = vmatpush1.msra.mxu1 %v594_v62 }
 0x1da   :  { %v981_v10 = vpop.f32.mrb[0].mxu0 }
 0x1db   :  { %v982_v12 = vadd.f32 %v981_v10, %v903_v7  ;;  %v983_v13 = vpop.f32.mrb[1].mxu0 }
 0x1dc   :  { %v984_v15 = vadd.f32 %v983_v13, %v907_v9 }
 0x1dd   :  { %v5472_v16 = vmax.f32 %v982_v12, 0.0 }
 0x1de   :  { %v5474_v17 = vmax.f32 %v984_v15, 0.0  ;;  %v987_v18 = vpop.f32.mrb[2].mxu0 }
 0x1df   :  { %v1022_v20 = vmul.f32 0.0, %v5472_v16  ;;  %v988_v21 = vadd.f32 %v987_v18, %v903_v7  ;;  %v989_v22 = vpop.f32.mrb[3].mxu0 }
 0x1e0   :  { %v1023_v24 = vmul.f32 0.0, %v5474_v17  ;;  %v990_v25 = vadd.f32 %v989_v22, %v907_v9  ;;  %v1007_v35 = vsel %vm379_vm2, %v5474_v17, 0.0 }
 0x1e1   :  { %v5480_v26 = vmax.f32 %v988_v21, 0.0 }
 0x1e2   :  { %v5482_v28 = vmax.f32 %v990_v25, 0.0  ;;  %v1033_v29 = vsel %vm379_vm2, %v1023_v24, 0.0 }
 0x1e3   :  { %v998_v32 = vmul.f32 0.0, %v5480_v26  ;;  %v1026_v33 = vadd.f32 %v1022_v20, %v5480_v26 }
 0x1e4   :  { %v999_v36 = vmul.f32 0.0, %v5482_v28  ;;  %v1034_v37 = vsel %vm379_vm2, %v5482_v28, 0.0 }
 0x1e5   :  { %v1000_v39 = vadd.f32 %v998_v32, %v5472_v16  ;;  %v1027_v40 = vrot.slane %v1026_v33, 4  ;;  %v1035_v41 = vadd.f32 %v1034_v37, %v1033_v29 }
 0x1e6   :  { %v1008_v44 = vsel %vm379_vm2, %v999_v36, 0.0 }
 0x1e7   :  { %v1001_v48 = vrot.slane %v1000_v39, 4  ;;  %v1028_v49 = vadd.f32 %v1027_v40, %v1026_v33  ;;  %v1009_v50 = vadd.f32 %v1008_v44, %v1007_v35  ;;  %v1036_v51 = vrot.slane %v1035_v41, 4 }
 0x1e8   :  { %v342_v27 = vpop.f32.mrb[0].mxu1 }
 0x1e9   :  { %v343_v30 = vadd.f32 %v342_v27, %v264_v19  ;;  %v344_v31 = vpop.f32.mrb[1].mxu1  ;;  %v1002_v56 = vadd.f32 %v1001_v48, %v1000_v39  ;;  %v1029_v57 = vrot.slane %v1028_v49, 2  ;;  %v1010_v58 = vrot.slane %v1009_v50, 4 }
 0x1ea   :  { %v345_v34 = vadd.f32 %v344_v31, %v268_v23  ;;  %v1037_v59 = vadd.f32 %v1036_v51, %v1035_v41 }
 0x1eb   :  { %v5492_v38 = vmax.f32 %v343_v30, 0.0  ;;  %v1003_v6 = vrot.slane %v1002_v56, 2  ;;  %v1030_v7 = vadd.f32 %v1029_v57, %v1028_v49  ;;  %v1011_v9 = vadd.f32 %v1010_v58, %v1009_v50 }
 0x1ec   :  { %v5495_v42 = vmax.f32 %v345_v34, 0.0  ;;  %v348_v43 = vpop.f32.mrb[2].mxu1  ;;  %v1038_v10 = vrot.slane %v1037_v59, 2 }
 0x1ed   :  { %v395_v45 = vmul.f32 0.0, %v5492_v38  ;;  %v349_v46 = vadd.f32 %v348_v43, %v264_v19  ;;  %v350_v47 = vpop.f32.mrb[3].mxu1  ;;  %v1004_v15 = vadd.f32 %v1003_v6, %v1002_v56  ;;  %v1031_v18 = vrot.slane %v1030_v7, 1 }
 0x1ee   :  { %v380_v52 = vsel %vm379_vm2, %v5495_v42, 0.0  ;;  %v396_v53 = vmul.f32 0.0, %v5495_v42  ;;  %v351_v55 = vadd.f32 %v350_v47, %v268_v23  ;;  %v1012_v19 = vrot.slane %v1011_v9, 2 }
 0x1ef   :  { %v5502_v54 = vmax.f32 %v349_v46, 0.0  ;;  %v1039_v20 = vadd.f32 %v1038_v10, %v1037_v59  ;;  %v1005_v25 = vrot.slane %v1004_v15, 1  ;;  %v1032_v27 = vadd.f32 %v1031_v18, %v1030_v7 }
 0x1f0   :  { %v5506_v62 = vmax.f32 %v351_v55, 0.0  ;;  %v406_v5 = vsel %vm379_vm2, %v396_v53, 0.0  ;;  %v1013_v29 = vadd.f32 %v1012_v19, %v1011_v9 }
 0x1f1   :  { %v370_v60 = vmul.f32 0.0, %v5502_v54  ;;  %v399_v61 = vadd.f32 %v395_v45, %v5502_v54  ;;  %v1040_v30 = vrot.slane %v1039_v20, 1  ;;  %v1006_v35 = vadd.f32 %v1005_v25, %v1004_v15 }
 0x1f2   :  { %v371_v13 = vmul.f32 0.0, %v5506_v62  ;;  %v407_v14 = vsel %vm379_vm2, %v5506_v62, 0.0  ;;  %v1042_v36 = vmul.f32 0.125, %v1032_v27  ;;  %v1014_v37 = vrot.slane %v1013_v29, 1 }
 0x1f3   :  { %v372_v11 = vadd.f32 %v370_v60, %v5492_v38  ;;  %v400_v12 = vrot.slane %v399_v61, 4  ;;  %v408_v24 = vadd.f32 %v407_v14, %v406_v5  ;;  %v1041_v39 = vadd.f32 %v1040_v30, %v1039_v20 }
 0x1f4   :  { %v381_v23 = vsel %vm379_vm2, %v371_v13, 0.0  ;;  %v1016_v45 = vmul.f32 0.125, %v1006_v35  ;;  %v1044_v46 = vmul.f32 0.0, %v1042_v36  ;;  %v1015_v47 = vadd.f32 %v1014_v37, %v1013_v29 }
 0x1f5   :  { %v373_v21 = vrot.slane %v372_v11, 4  ;;  %v401_v22 = vadd.f32 %v400_v12, %v399_v61  ;;  %v382_v33 = vadd.f32 %v381_v23, %v380_v52  ;;  %v409_v34 = vrot.slane %v408_v24, 4 }
 0x1f6   :  { %v1043_v48 = vmul.f32 0.125, %v1041_v39  ;;  %v1020_v55 = vmul.f32 0.0, %v1016_v45  ;;  %v1048_v56 = vadd.f32 %v1044_v46, %v1016_v45  ;;  %v1017_v52 = vmul.f32 0.125, %v1015_v47 }
 0x1f7   :  { %v374_v31 = vadd.f32 %v373_v21, %v372_v11  ;;  %v402_v32 = vrot.slane %v401_v22, 2  ;;  %v383_v43 = vrot.slane %v382_v33, 4  ;;  %v410_v44 = vadd.f32 %v409_v34, %v408_v24 }
 0x1f8   :  { %v1045_v57 = vmul.f32 0.0, %v1043_v48  ;;  %v1050_v5 = vadd.f32 %v1042_v36, %v1020_v55  ;;  %v5515_v6 = vsub.f32 %v5472_v16, %v1048_v56  ;;  %v1021_v7 = vmul.f32 0.0, %v1017_v52 }
 0x1f9   :  { %v375_v40 = vrot.slane %v374_v31, 2  ;;  %v403_v41 = vadd.f32 %v402_v32, %v401_v22  ;;  %v384_v51 = vadd.f32 %v383_v43, %v382_v33  ;;  %v411_v53 = vrot.slane %v410_v44, 2 }
 0x1fa   :  { %v1049_v9 = vadd.f32 %v1045_v57, %v1017_v52  ;;  %v5518_v14 = vsub.f32 %v5480_v26, %v1050_v5  ;;  %v1056_v15 = vmul.f32 %v5515_v6, %v5515_v6  ;;  %v1051_v18 = vadd.f32 %v1043_v48, %v1021_v7 }
 0x1fb   :  { %v376_v49 = vadd.f32 %v375_v40, %v374_v31  ;;  %v404_v50 = vrot.slane %v403_v41, 1  ;;  %v385_v60 = vrot.slane %v384_v51, 2  ;;  %v412_v61 = vadd.f32 %v411_v53, %v410_v44 }
 0x1fc   :  { %v5523_v19 = vsub.f32 %v5474_v17, %v1049_v9  ;;  %v1058_v23 = vmul.f32 %v5518_v14, %v5518_v14  ;;  %v1086_v24 = vmul.f32 0.0, %v1056_v15  ;;  %v5528_v25 = vsub.f32 %v5482_v28, %v1051_v18 }
 0x1fd   :  { %v377_v58 = vrot.slane %v376_v49, 1  ;;  %v405_v59 = vadd.f32 %v404_v50, %v403_v41  ;;  %v386_v12 = vadd.f32 %v385_v60, %v384_v51  ;;  %v413_v13 = vrot.slane %v412_v61, 1 }
 0x1fe   :  { %v1057_v26 = vmul.f32 %v5523_v19, %v5523_v19  ;;  %v1062_v17 = vmul.f32 0.0, %v1058_v23  ;;  %v1090_v32 = vadd.f32 %v1086_v24, %v1058_v23  ;;  %v1059_v33 = vmul.f32 %v5528_v25, %v5528_v25 }
 0x1ff   :  { %v378_v10 = vadd.f32 %v377_v58, %v376_v49  ;;  %v415_v11 = vmul.f32 0.125, %v405_v59  ;;  %v387_v16 = vrot.slane %v386_v12, 1  ;;  %v414_v22 = vadd.f32 %v413_v13, %v412_v61 }
 0x200   :  { %v1071_v34 = vsel %vm379_vm2, %v1057_v26, 0.0  ;;  %v1087_v35 = vmul.f32 0.0, %v1057_v26  ;;  %v1064_v39 = vadd.f32 %v1062_v17, %v1056_v15  ;;  %v1091_v40 = vrot.slane %v1090_v32, 4 }
 0x201   :  { %v389_v20 = vmul.f32 0.125, %v378_v10  ;;  %v417_v21 = vmul.f32 0.0, %v415_v11  ;;  %v388_v30 = vadd.f32 %v387_v16, %v386_v12  ;;  %v416_v31 = vmul.f32 0.125, %v414_v22 }
 0x202   :  { %v1063_v41 = vmul.f32 0.0, %v1059_v33  ;;  %v1098_v43 = vsel %vm379_vm2, %v1059_v33, 0.0  ;;  %v1097_v44 = vsel %vm379_vm2, %v1087_v35, 0.0  ;;  %v1065_v48 = vrot.slane %v1064_v39, 4 }
 0x203   :  { %v393_v27 = vmul.f32 0.0, %v389_v20  ;;  %v421_v29 = vadd.f32 %v417_v21, %v389_v20  ;;  %v390_v28 = vmul.f32 0.125, %v388_v30  ;;  %v1092_v49 = vadd.f32 %v1091_v40, %v1090_v32 }
 0x204   :  { %v1099_v50 = vadd.f32 %v1098_v43, %v1097_v44  ;;  %v418_v56 = vmul.f32 0.0, %v416_v31  ;;  %v1066_v52 = vadd.f32 %v1065_v48, %v1064_v39 }
 0x205   :  { %v423_v36 = vadd.f32 %v415_v11, %v393_v27  ;;  %v5536_v37 = vsub.f32 %v5492_v38, %v421_v29  ;;  %v394_v47 = vmul.f32 0.0, %v390_v28  ;;  %v1072_v38 = vsel %vm379_vm2, %v1063_v41, 0.0 }
 0x206   :  { %v1073_v51 = vadd.f32 %v1072_v38, %v1071_v34  ;;  %v1093_v57 = vrot.slane %v1092_v49, 2  ;;  %v1100_v58 = vrot.slane %v1099_v50, 4  ;;  %v422_v5 = vadd.f32 %v418_v56, %v390_v28 }
 0x207   :  { %v5541_v45 = vsub.f32 %v5502_v54, %v423_v36  ;;  %v429_v46 = vmul.f32 %v5536_v37, %v5536_v37  ;;  %v424_v54 = vadd.f32 %v416_v31, %v394_v47  ;;  %v1067_v7 = vrot.slane %v1066_v52, 2 }
 0x208   :  { %v1074_v59 = vrot.slane %v1073_v51, 4  ;;  %v1094_v9 = vadd.f32 %v1093_v57, %v1092_v49  ;;  %v1101_v10 = vadd.f32 %v1100_v58, %v1099_v50  ;;  %v5552_v18 = vsub.f32 %v5495_v42, %v422_v5 }
 0x209   :  { %v431_v53 = vmul.f32 %v5541_v45, %v5541_v45  ;;  %v459_v55 = vmul.f32 0.0, %v429_v46  ;;  %v5549_v11 = vsub.f32 %v5506_v62, %v424_v54  ;;  %v1068_v20 = vadd.f32 %v1067_v7, %v1066_v52 }
 0x20a   :  { %v1075_v12 = vadd.f32 %v1074_v59, %v1073_v51  ;;  %v1095_v21 = vrot.slane %v1094_v9, 1  ;;  %v1102_v16 = vrot.slane %v1101_v10, 2  ;;  %v430_v27 = vmul.f32 %v5552_v18, %v5552_v18 }
 0x20b   :  { %v435_v60 = vmul.f32 0.0, %v431_v53  ;;  %v463_v61 = vadd.f32 %v459_v55, %v431_v53  ;;  %v432_v22 = vmul.f32 %v5549_v11, %v5549_v11  ;;  %v1069_v62 = vrot.slane %v1068_v20, 1 }
 0x20c   :  { %v1076_v23 = vrot.slane %v1075_v12, 2  ;;  %v1096_v29 = vadd.f32 %v1095_v21, %v1094_v9  ;;  %v1103_v30 = vadd.f32 %v1102_v16, %v1101_v10  ;;  %v444_v33 = vsel %vm379_vm2, %v430_v27, 0.0 }
 0x20d   :  { %v437_v13 = vadd.f32 %v435_v60, %v429_v46  ;;  %v464_v15 = vrot.slane %v463_v61, 4  ;;  %v436_v31 = vmul.f32 0.0, %v432_v22  ;;  %v1070_v34 = vadd.f32 %v1069_v62, %v1068_v20 }
 0x20e   :  { %v1077_v17 = vadd.f32 %v1076_v23, %v1075_v12  ;;  %v1106_v35 = vmul.f32 0.125, %v1096_v29  ;;  %v1104_v36 = vrot.slane %v1103_v30, 1  ;;  %v460_v48 = vmul.f32 0.0, %v430_v27 }
 0x20f   :  { %v438_v24 = vrot.slane %v437_v13, 4  ;;  %v465_v26 = vadd.f32 %v464_v15, %v463_v61  ;;  %v445_v28 = vsel %vm379_vm2, %v436_v31, 0.0  ;;  %v1080_v44 = vmul.f32 0.125, %v1070_v34 }
 0x210   :  { %v1078_v39 = vrot.slane %v1077_v17, 1  ;;  %v446_v43 = vadd.f32 %v445_v28, %v444_v33  ;;  %v1108_v46 = vmul.f32 0.0, %v1106_v35  ;;  %v1105_v47 = vadd.f32 %v1104_v36, %v1103_v30 }
 0x211   :  { %v439_v32 = vadd.f32 %v438_v24, %v437_v13  ;;  %v466_v42 = vrot.slane %v465_v26, 2  ;;  %v1084_v53 = vmul.f32 0.0, %v1080_v44  ;;  %v470_v52 = vsel %vm379_vm2, %v460_v48, 0.0 }
 0x212   :  { %v1079_v49 = vadd.f32 %v1078_v39, %v1077_v17  ;;  %v447_v51 = vrot.slane %v446_v43, 4  ;;  %v1112_v55 = vadd.f32 %v1108_v46, %v1080_v44  ;;  %v1107_v56 = vmul.f32 0.125, %v1105_v47 }
 0x213   :  { %v440_v40 = vrot.slane %v439_v32, 2  ;;  %v467_v41 = vadd.f32 %v466_v42, %v465_v26  ;;  %v1114_v60 = vadd.f32 %v1106_v35, %v1084_v53  ;;  %v471_v7 = vsel %vm379_vm2, %v432_v22, 0.0 }
 0x214   :  { %v1081_v57 = vmul.f32 0.125, %v1079_v49  ;;  %v448_v59 = vadd.f32 %v447_v51, %v446_v43  ;;  %v1116_v61 = vadd.f32 1e-05, %v1112_v55  ;;  %v1109_v5 = vmul.f32 0.0, %v1107_v56 }
 0x215   :  { %v441_v38 = vadd.f32 %v440_v40, %v439_v32  ;;  %v468_v50 = vrot.slane %v467_v41, 1  ;;  %v1118_v15 = vadd.f32 1e-05, %v1114_v60  ;;  %v472_v21 = vadd.f32 %v471_v7, %v470_v52 }
 0x216   :  { %v1085_v9 = vmul.f32 0.0, %v1081_v57  ;;  %v449_v13 = vrot.slane %v448_v59, 2  ;;  %4572 = vrsqrt.f32 %v1116_v61  ;;  %v1113_v20 = vadd.f32 %v1109_v5, %v1081_v57 }
 0x217   :  { %v442_v58 = vrot.slane %v441_v38, 1  ;;  %v469_v54 = vadd.f32 %v468_v50, %v467_v41  ;;  %v5563_v27 = vsub.s32 1, %v5447_v1  ;;  %4574 = vrsqrt.f32 %v1118_v15 }
 0x218   :  { %v1115_v16 = vadd.f32 %v1107_v56, %v1085_v9  ;;  %v450_v26 = vadd.f32 %v449_v13, %v448_v59  ;;  %v1117_v62 = vadd.f32 1e-05, %v1113_v20  ;;  %v473_v29 = vrot.slane %v472_v21, 4 }
 0x219   :  { %v443_v10 = vadd.f32 %v442_v58, %v441_v38  ;;  %v479_v12 = vmul.f32 0.125, %v469_v54  ;;  %v5566_v42 = vsub.s32 5, %v5447_v1  ;;  %v5569_v36 = vsub.s32 2, %v5447_v1 }
 0x21a   :  { %v1119_v30 = vadd.f32 1e-05, %v1115_v16  ;;  %v451_v17 = vrot.slane %v450_v26, 1  ;;  %4576 = vrsqrt.f32 %v1117_v62  ;;  %v474_v32 = vadd.f32 %v473_v29, %v472_v21 }
 0x21b   :  { %v453_v23 = vmul.f32 0.125, %v443_v10  ;;  %v481_v24 = vmul.f32 0.0, %v479_v12  ;;  %v5572_v40 = vsub.s32 6, %v5447_v1  ;;  %v1131_v41 = vrot.slane %v5455_v3, %v5563_v27 }
 0x21c   :  { %4578 = vrsqrt.f32 %v1119_v30  ;;  %v452_v35 = vadd.f32 %v451_v17, %v450_v26  ;;  %v475_v28 = vrot.slane %v474_v32, 2  ;;  %v1135_v46 = vrot.slane %v5455_v3, %v5566_v42 }
 0x21d   :  { %v457_v22 = vmul.f32 0.0, %v453_v23  ;;  %v485_v31 = vadd.f32 %v481_v24, %v453_v23  ;;  %v1157_v49 = vrot.slane %v5455_v3, %v5572_v40  ;;  %v1141_v50 = vrot.slane %v1131_v41, %v5563_v27 }
 0x21e   :  { %v454_v43 = vmul.f32 0.125, %v452_v35  ;;  %v476_v44 = vadd.f32 %v475_v28, %v474_v32  ;;  %v1153_v51 = vrot.slane %v5455_v3, %v5569_v36  ;;  %v1145_v57 = vrot.slane %v1135_v46, %v5563_v27 }
 0x21f   :  { %v487_v33 = vadd.f32 %v479_v12, %v457_v22  ;;  %v489_v34 = vadd.f32 1e-05, %v485_v31  ;;  %v1167_v61 = vrot.slane %v1157_v49, %v5569_v36  ;;  %v508_v29 = vrot.slane %v5465_v8, %v5566_v42 }
 0x220   :  { %v4573_v47 = vpop.eup %4572  ;;  %v477_v48 = vrot.slane %v476_v44, 1  ;;  %v458_v55 = vmul.f32 0.0, %v454_v43  ;;  %v1163_v5 = vrot.slane %v1153_v51, %v5569_v36  ;;  %v526_v31 = vrot.slane %v5465_v8, %v5569_v36  ;;  %v1533_v51 = vld [vmem:[#allocation17 + $0xe0] sm:$0xff] }
 0x221   :  { %v491_v39 = vadd.f32 1e-05, %v487_v33  ;;  %4580 = vrsqrt.f32 %v489_v34  ;;  %v1124_v38 = vmul.f32 %v4573_v47, %v5515_v6  ;;  %v4575_v53 = vpop.eup %4574  ;;  %v518_v32 = vrot.slane %v508_v29, %v5563_v27 }
 0x222   :  { %v478_v56 = vadd.f32 %v477_v48, %v476_v44  ;;  %v1126_v52 = vmul.f32 %v4575_v53, %v5518_v14  ;;  %v536_v41 = vrot.slane %v526_v31, %v5569_v36 }
 0x223   :  { %4582 = vrsqrt.f32 %v491_v39  ;;  %v1146_v6 = vmul.f32 %v1141_v50, %v1124_v38  ;;  %v5083_v38 = vmov 0.0|0.0  }
 0x224   :  { %v4577_v58 = vpop.eup %4576  ;;  %v480_v54 = vmul.f32 0.125, %v478_v56  ;;  %4249 = vmatprep.subr.bf16.mxu1 %v5083_v38  ;;  %4285 = vmatprep.subr.bf16.mxu0 %v5083_v38  ;;  %v1535_v56 = vld [vmem:[#allocation17 + $0xf0] sm:$0xff] }
 0x225   :  { %v1125_v60 = vmul.f32 %v4577_v58, %v5523_v19  ;;  %v1168_v23 = vadd.f32 %v1163_v5, %v1146_v6  ;;  %v1148_v19 = vmul.f32 %v1141_v50, %v1126_v52  ;;  %v1532_v50 = vld [vmem:[#allocation17 + $0xd8] sm:$0xff]  ;;  %v1505_v52 = vld [vmem:[#allocation17] sm:$0xff]  ;;  %v1506_v58 = vld [vmem:[#allocation17 + $0x8] sm:$0xff] }
 0x226   :  { %v4579_v59 = vpop.eup %4578  ;;  %v482_v3 = vmul.f32 0.0, %v480_v54  ;;  %v488_v9 = vadd.f32 %v480_v54, %v458_v55  ;;  %v4253_v53 = vpack.c.bf16 %v1533_v51, %v1532_v50  ;;  %v1534_v55 = vld [vmem:[#allocation17 + $0xe8] sm:$0xff]  ;;  %v4286_v54 = vpack.c.bf16 %v1506_v58, %v1505_v52  ;;  %v1523_v52 = vld [vmem:[#allocation17 + $0x90] sm:$0xff]  ;;  %v1524_v58 = vld [vmem:[#allocation17 + $0x98] sm:$0xff] }
 0x227   :  { %v1127_v7 = vmul.f32 %v4579_v59, %v5528_v25  ;;  %v1147_v12 = vmul.f32 %v1145_v57, %v1125_v60  ;;  %v1170_v25 = vadd.f32 %v1163_v5, %v1148_v19  ;;  %v1536_v59 = vld [vmem:[#allocation17 + $0xf8] sm:$0xff]  ;;  %v1537_v60 = vld [vmem:[#allocation17 + $0x100] sm:$0xff]  ;;  %v1522_v51 = vld [vmem:[#allocation17 + $0x88] sm:$0xff] }
 0x228   :  { %v486_v13 = vadd.f32 %v482_v3, %v454_v43  ;;  %v492_v14 = vadd.f32 1e-05, %v488_v9  ;;  %v4259_v6 = vpack.c.bf16 %v1537_v60, %v1536_v59  ;;  %v1508_v5 = vld [vmem:[#allocation17 + $0x18] sm:$0xff]  ;;  %v1538_v3 = vld [vmem:[#allocation17 + $0x108] sm:$0xff]  ;;  %v1539_v9 = vld [vmem:[#allocation17 + $0x110] sm:$0xff] }
 0x229   :  { %v1149_v15 = vmul.f32 %v1145_v57, %v1127_v7  ;;  %v1169_v16 = vadd.f32 %v1167_v61, %v1147_v12  ;;  %v4256_v57 = vpack.c.bf16 %v1535_v56, %v1534_v55  ;;  %v4262_v12 = vpack.c.bf16 %v1539_v9, %v1538_v3  ;;  %v1552_v55 = vld [vmem:[#allocation17 + $0x178] sm:$0xff]  ;;  %v1553_v56 = vld [vmem:[#allocation17 + $0x180] sm:$0xff]  ;;  %v1526_v60 = vld [vmem:[#allocation17 + $0xa8] sm:$0xff] }
 0x22a   :  { %v490_v26 = vadd.f32 1e-05, %v486_v13  ;;  %4584 = vrsqrt.f32 %v492_v14  ;;  %v1510_v13 = vld [vmem:[#allocation17 + $0x28] sm:$0xff]  ;;  %v1525_v59 = vld [vmem:[#allocation17 + $0xa0] sm:$0xff]  ;;  %v1527_v9 = vld [vmem:[#allocation17 + $0xb0] sm:$0xff] }
 0x22b   :  { %v4581_v10 = vpop.eup %4580  ;;  %v1171_v62 = vadd.f32 %v1167_v61, %v1149_v15  ;;  %4020 = vmatprep.mubr.msk.f32.mxu0 %vm379_vm2, %v1169_v16  ;;  %v1507_v61 = vld [vmem:[#allocation17 + $0x10] sm:$0xff]  ;;  %v1540_v15 = vld [vmem:[#allocation17 + $0x118] sm:$0xff] }
 0x22c   :  { %v497_v20 = vmul.f32 %v4581_v10, %v5536_v37  ;;  %4586 = vrsqrt.f32 %v490_v26  ;;  %1313 = vmatmul.mubr.f32.vlgmr.msra.gmra.mrb[4].mxu0 %v1168_v23  ;;  %v504_v37 = vrot.slane %v5465_v8, %v5563_v27  ;;  %v4289_v7 = vpack.c.bf16 %v1508_v5, %v1507_v61  ;;  %v1509_v10 = vld [vmem:[#allocation17 + $0x20] sm:$0xff]  ;;  %v1512_v23 = vld [vmem:[#allocation17 + $0x38] sm:$0xff]  ;;  %v1543_v26 = vld [vmem:[#allocation17 + $0x130] sm:$0xff] }
 0x22d   :  { %v4583_v21 = vpop.eup %4582  ;;  %4021 = vmatprep.mubr.msk.f32.mxu0 %vm379_vm2, %v1171_v62  ;;  %4287 = vmatpush1.bf16.msra.mxu0 %v4286_v54  ;;  %v4292_v14 = vpack.c.bf16 %v1510_v13, %v1509_v10  ;;  %v1513_v62 = vld [vmem:[#allocation17 + $0x40] sm:$0xff]  ;;  %v4313_v54 = vpack.c.bf16 %v1524_v58, %v1523_v52  ;;  %v4316_v61 = vpack.c.bf16 %v1526_v60, %v1525_v59  ;;  %v1746_v5 = vld [vmem:[#allocation11 + $0x18] sm:$0xff]  ;;  %v1528_v10 = vld [vmem:[#allocation17 + $0xb8] sm:$0xff] }
 0x22e   :  { %v499_v24 = vmul.f32 %v4583_v21, %v5541_v45  ;;  %v530_v45 = vrot.slane %v5465_v8, %v5572_v40  ;;  %v514_v22 = vrot.slane %v504_v37, %v5563_v27  ;;  %4288 = vmatprep.subr.bf16.mxu0 %v5083_v38  ;;  %v1511_v21 = vld [vmem:[#allocation17 + $0x30] sm:$0xff]  ;;  %v1514_v37 = vld [vmem:[#allocation17 + $0x48] sm:$0xff]  ;;  %v1529_v13 = vld [vmem:[#allocation17 + $0xc0] sm:$0xff] }
 0x22f   :  { %v4295_v19 = vpack.c.bf16 %v1512_v23, %v1511_v21  ;;  %v4298_v29 = vpack.c.bf16 %v1514_v37, %v1513_v62  ;;  %v5639_v21 = vld [vmem:[%s6439_s10] sm:$0x77] }
 0x230   :  { %1319 = vmatmul.mubr.f32.gmra.mrb[6].mxu0 %v1170_v25  ;;  %v540_v35 = vrot.slane %v530_v45, %v5569_v36  ;;  %v519_v39 = vmul.f32 %v514_v22, %v497_v20  ;;  %v521_v48 = vmul.f32 %v514_v22, %v499_v24  ;;  %v1541_v20 = vld [vmem:[#allocation17 + $0x120] sm:$0xff]  ;;  %v1542_v24 = vld [vmem:[#allocation17 + $0x128] sm:$0xff]  ;;  %v1544_v45 = vld [vmem:[#allocation17 + $0x138] sm:$0xff] }
 0x231   :  { %4290 = vmatpush1.bf16.msra.mxu0 %v4289_v7  ;;  %v4265_v16 = vpack.c.bf16 %v1541_v20, %v1540_v15  ;;  %v4268_v25 = vpack.c.bf16 %v1543_v26, %v1542_v24  ;;  %v1515_v22 = vld [vmem:[#allocation17 + $0x50] sm:$0xff]  ;;  %v1554_v7 = vld [vmem:[#allocation17 + $0x188] sm:$0xff]  ;;  %v2076_v15 = vld [vmem:[#allocation14 + $0x18] sm:$0xff] }
 0x232   :  { %v541_v47 = vadd.f32 %v536_v41, %v519_v39  ;;  %v543_v8 = vadd.f32 %v536_v41, %v521_v48  ;;  %4291 = vmatprep.subr.bf16.mxu0 %v5083_v38  ;;  %v1518_v39 = vld [vmem:[#allocation17 + $0x68] sm:$0xff]  ;;  %v1520_v48 = vld [vmem:[#allocation17 + $0x78] sm:$0xff] }
 0x234   :  { %v4585_v30 = vpop.eup %4584 }
 0x235   :  { %v500_v17 = vmul.f32 %v4585_v30, %v5549_v11  ;;  %v1530_v11 = vld [vmem:[#allocation17 + $0xc8] sm:$0xff]  ;;  %4293 = vmatpush1.bf16.msra.mxu0 %v4292_v14  ;;  %v1545_v30 = vld [vmem:[#allocation17 + $0x140] sm:$0xff]  ;;  %v2074_v14 = vld [vmem:[#allocation14 + $0x8] sm:$0xff] }
 0x236   :  { %v4587_v33 = vpop.eup %4586  ;;  %4294 = vmatprep.subr.bf16.mxu0 %v5083_v38  ;;  %v4271_v31 = vpack.c.bf16 %v1545_v30, %v1544_v45  ;;  %v4369_v20 = vpack.c.bf16 %v2076_v15, %v2074_v14 }
 0x237   :  { %v498_v34 = vmul.f32 %v4587_v33, %v5552_v18  ;;  %v522_v28 = vmul.f32 %v518_v32, %v500_v17  ;;  %v1531_v18 = vld [vmem:[#allocation17 + $0xd0] sm:$0xff]  ;;  %v1516_v17 = vld [vmem:[#allocation17 + $0x58] sm:$0xff]  ;;  %v1546_v33 = vld [vmem:[#allocation17 + $0x148] sm:$0xff] }
 0x238   :  { %v4250_v49 = vpack.c.bf16 %v1531_v18, %v1530_v11  ;;  %v1550_v11 = vld [vmem:[#allocation17 + $0x168] sm:$0xff]  ;;  %v1551_v18 = vld [vmem:[#allocation17 + $0x170] sm:$0xff] }
 0x239   :  { %v520_v43 = vmul.f32 %v518_v32, %v498_v34  ;;  %v544_v46 = vadd.f32 %v540_v35, %v522_v28  ;;  %4296 = vmatpush1.bf16.msra.mxu0 %v4295_v19  ;;  %v4301_v32 = vpack.c.bf16 %v1516_v17, %v1515_v22  ;;  %v1547_v34 = vld [vmem:[#allocation17 + $0x150] sm:$0xff]  ;;  %v4280_v50 = vpack.c.bf16 %v1551_v18, %v1550_v11 }
 0x23a   :  { %4297 = vmatprep.subr.bf16.mxu0 %v5083_v38  ;;  %v4274_v28 = vpack.c.bf16 %v1547_v34, %v1546_v33 }
 0x23b   :  { %v542_v44 = vadd.f32 %v540_v35, %v520_v43  ;;  %v1517_v35 = vld [vmem:[#allocation17 + $0x60] sm:$0xff]  ;;  %v1548_v43 = vld [vmem:[#allocation17 + $0x158] sm:$0xff] }
 0x23c   :  { %v4304_v41 = vpack.c.bf16 %v1518_v39, %v1517_v35  ;;  %v5659_v39 = vld [vmem:[#allocation7] sm:$0x77] }
 0x23d   :  { %4016 = vmatprep.mubr.msk.f32.mxu1 %vm379_vm2, %v542_v44  ;;  %4299 = vmatpush1.bf16.msra.mxu0 %v4298_v29  ;;  %v1549_v44 = vld [vmem:[#allocation17 + $0x160] sm:$0xff]  ;;  %v600_v18 = vrot.slane %v5659_v39, %v5450_v2 }
 0x23e   :  { %686 = vmatmul.mubr.f32.vlgmr.msra.gmra.mrb[4].mxu1 %v541_v47  ;;  %4300 = vmatprep.subr.bf16.mxu0 %v5083_v38  ;;  %v4277_v47 = vpack.c.bf16 %v1549_v44, %v1548_v43 }
 0x23f   :  { %4017 = vmatprep.mubr.msk.f32.mxu1 %vm379_vm2, %v544_v46  ;;  %4251 = vmatpush1.bf16.msra.mxu1 %v4250_v49  ;;  %v1519_v46 = vld [vmem:[#allocation17 + $0x70] sm:$0xff]  ;;  %v1521_v49 = vld [vmem:[#allocation17 + $0x80] sm:$0xff] }
 0x240   :  { %4252 = vmatprep.subr.bf16.mxu1 %v5083_v38 }
 0x241   :  { %4302 = vmatpush1.bf16.msra.mxu0 %v4301_v32 }
 0x242   :  { %692 = vmatmul.mubr.f32.gmra.mrb[6].mxu1 %v543_v8  ;;  %4303 = vmatprep.subr.bf16.mxu0 %v5083_v38  ;;  %v4307_v8 = vpack.c.bf16 %v1520_v48, %v1519_v46 }
 0x243   :  { %4254 = vmatpush1.bf16.msra.mxu1 %v4253_v53  ;;  %v4310_v53 = vpack.c.bf16 %v1522_v51, %v1521_v49  ;;  %v604_v49 = vrot.slane %v5659_v39, %v5458_v4 }
 0x244   :  { %4255 = vmatprep.subr.bf16.mxu1 %v5083_v38 }
 0x245   :  { %4305 = vmatpush1.bf16.msra.mxu0 %v4304_v41  ;;  %v614_v59 = vrot.slane %v604_v49, %v5450_v2 }
 0x246   :  { %4306 = vmatprep.subr.bf16.mxu0 %v5083_v38 }
 0x247   :  { %4257 = vmatpush1.bf16.msra.mxu1 %v4256_v57  ;;  %v4283_v57 = vpack.c.bf16 %v1553_v56, %v1552_v55 }
 0x248   :  { %4258 = vmatprep.subr.bf16.mxu1 %v5083_v38 }
 0x249   :  { %4308 = vmatpush1.bf16.msra.mxu0 %v4307_v8 }
 0x24a   :  { %4309 = vmatprep.subr.bf16.mxu0 %v5083_v38 }
 0x24b   :  { %4260 = vmatpush1.bf16.msra.mxu1 %v4259_v6  ;;  %v1744_v6 = vld [vmem:[#allocation11 + $0x8] sm:$0xff] }
 0x24c   :  { %4261 = vmatprep.subr.bf16.mxu1 %v5083_v38  ;;  %v4321_v3 = vpack.c.bf16 %v1746_v5, %v1744_v6 }
 0x24d   :  { %4311 = vmatpush1.bf16.msra.mxu0 %v4310_v53 }
 0x24e   :  { %4312 = vmatprep.subr.bf16.mxu0 %v5083_v38 }
 0x24f   :  { %4263 = vmatpush1.bf16.msra.mxu1 %v4262_v12  ;;  %v4319_v12 = vpack.c.bf16 %v1528_v10, %v1527_v9 }
 0x250   :  { %4264 = vmatprep.subr.bf16.mxu1 %v5083_v38 }
 0x251   :  { %4314 = vmatpush1.bf16.msra.mxu0 %v4313_v54  ;;  %v610_v54 = vrot.slane %v600_v18, %v5450_v2 }
 0x252   :  { %4315 = vmatprep.subr.bf16.mxu0 %v5083_v38 }
 0x253   :  { %4266 = vmatpush1.bf16.msra.mxu1 %v4265_v16  ;;  %v1227_v16 = vrot.slane %v5639_v21, %v5450_v2 }
 0x254   :  { %4267 = vmatprep.subr.bf16.mxu1 %v5083_v38 }
 0x255   :  { %4317 = vmatpush1.bf16.msra.mxu0 %v4316_v61  ;;  %v1237_v23 = vrot.slane %v1227_v16, %v5450_v2 }
 0x256   :  { %4318 = vmatprep.subr.bf16.mxu0 %v5083_v38 }
 0x257   :  { %4269 = vmatpush1.bf16.msra.mxu1 %v4268_v25 }
 0x258   :  { %4270 = vmatprep.subr.bf16.mxu1 %v5083_v38 }
 0x259   :  { %4320 = vmatpush1.bf16.msra.mxu0 %v4319_v12 }
 0x25a   :  { %1679 = vmatprep.subr.mxu0 %v6457_v0 }
 0x25b   :  { %4272 = vmatpush1.bf16.msra.mxu1 %v4271_v31 }
 0x25c   :  { %4273 = vmatprep.subr.bf16.mxu1 %v5083_v38 }
 0x25d   :  { %1680 = vmatpush1.msra.mxu0 %v1529_v13 }
 0x25e   :  { %4370 = vmatprep.subr.bf16.mxu0 %v4369_v20 }
 0x25f   :  { %4275 = vmatpush1.bf16.msra.mxu1 %v4274_v28 }
 0x260   :  { %4276 = vmatprep.subr.bf16.mxu1 %v5083_v38 }
 0x263   :  { %4278 = vmatpush1.bf16.msra.mxu1 %v4277_v47 }
 0x264   :  { %4279 = vmatprep.subr.bf16.mxu1 %v5083_v38 }
 0x267   :  { %4281 = vmatpush1.bf16.msra.mxu1 %v4280_v50 }
 0x268   :  { %4282 = vmatprep.subr.bf16.mxu1 %v5083_v38  ;;  %v1231_v38 = vrot.slane %v5639_v21, %v5458_v4 }
 0x26a   :  { %v1241_v19 = vrot.slane %v1231_v38, %v5450_v2 }
 0x26b   :  { %4284 = vmatpush1.bf16.msra.mxu1 %v4283_v57 }
 0x26c   :  { %1606 = vmatprep.subr.mxu1 %v6457_v0 }
 0x26f   :  { %1607 = vmatpush1.msra.mxu1 %v1554_v7 }
 0x270   :  { %4322 = vmatprep.subr.bf16.mxu1 %v4321_v3 }
 0x2ff   :  { %v1314_v24 = vpop.f32.mrb[4].mxu0 }
 0x300   :  { %v1315_v26 = vadd.f32 %v1314_v24, %v1237_v23  ;;  %v1316_v62 = vpop.f32.mrb[5].mxu0 }
 0x301   :  { %v1317_v25 = vadd.f32 %v1316_v62, %v1241_v19 }
 0x302   :  { %v5647_v37 = vmax.f32 %v1315_v26, 0.0 }
 0x303   :  { %v5649_v29 = vmax.f32 %v1317_v25, 0.0  ;;  %v1320_v45 = vpop.f32.mrb[6].mxu0 }
 0x304   :  { %v1321_v30 = vadd.f32 %v1320_v45, %v1237_v23  ;;  %v1322_v22 = vpop.f32.mrb[7].mxu0  ;;  %v1355_v32 = vmul.f32 0.0, %v5647_v37 }
 0x305   :  { %v1356_v31 = vmul.f32 0.0, %v5649_v29  ;;  %v1323_v17 = vadd.f32 %v1322_v22, %v1241_v19  ;;  %v1340_v8 = vsel %vm379_vm2, %v5649_v29, 0.0 }
 0x306   :  { %v5653_v33 = vmax.f32 %v1321_v30, 0.0 }
 0x307   :  { %v5655_v34 = vmax.f32 %v1323_v17, 0.0  ;;  %v1366_v43 = vsel %vm379_vm2, %v1356_v31, 0.0 }
 0x308   :  { %v1331_v35 = vmul.f32 0.0, %v5653_v33  ;;  %v1359_v28 = vadd.f32 %v1355_v32, %v5653_v33 }
 0x309   :  { %v1332_v41 = vmul.f32 0.0, %v5655_v34  ;;  %v1367_v44 = vsel %vm379_vm2, %v5655_v34, 0.0 }
 0x30a   :  { %v1333_v46 = vadd.f32 %v1331_v35, %v5647_v37  ;;  %v1360_v47 = vrot.slane %v1359_v28, 4  ;;  %v1368_v48 = vadd.f32 %v1367_v44, %v1366_v43 }
 0x30b   :  { %v1341_v11 = vsel %vm379_vm2, %v1332_v41, 0.0 }
 0x30c   :  { %v1334_v50 = vrot.slane %v1333_v46, 4  ;;  %v1361_v51 = vadd.f32 %v1360_v47, %v1359_v28  ;;  %v1342_v53 = vadd.f32 %v1341_v11, %v1340_v8  ;;  %v1369_v55 = vrot.slane %v1368_v48, 4 }
 0x30e   :  { %v1335_v56 = vadd.f32 %v1334_v50, %v1333_v46  ;;  %v1362_v52 = vrot.slane %v1361_v51, 2  ;;  %v1343_v57 = vrot.slane %v1342_v53, 4  ;;  %v1370_v58 = vadd.f32 %v1369_v55, %v1368_v48 }
 0x310   :  { %v1336_v60 = vrot.slane %v1335_v56, 2  ;;  %v1363_v61 = vadd.f32 %v1362_v52, %v1361_v51  ;;  %v1344_v6 = vadd.f32 %v1343_v57, %v1342_v53  ;;  %v1371_v5 = vrot.slane %v1370_v58, 2 }
 0x311   :  { %v687_v7 = vpop.f32.mrb[4].mxu1 }
 0x312   :  { %v1337_v3 = vadd.f32 %v1336_v60, %v1335_v56  ;;  %v1364_v9 = vrot.slane %v1363_v61, 1  ;;  %v1345_v10 = vrot.slane %v1344_v6, 2  ;;  %v1372_v12 = vadd.f32 %v1371_v5, %v1370_v58  ;;  %v689_v13 = vpop.f32.mrb[5].mxu1 }
 0x313   :  { %v688_v14 = vadd.f32 %v687_v7, %v610_v54  ;;  %v690_v15 = vadd.f32 %v689_v13, %v614_v59 }
 0x314   :  { %v1338_v20 = vrot.slane %v1337_v3, 1  ;;  %v1365_v16 = vadd.f32 %v1364_v9, %v1363_v61  ;;  %v1346_v38 = vadd.f32 %v1345_v10, %v1344_v6  ;;  %v1373_v23 = vrot.slane %v1372_v12, 1 }
 0x315   :  { %v5675_v19 = vmax.f32 %v688_v14, 0.0  ;;  %v5677_v24 = vmax.f32 %v690_v15, 0.0  ;;  %v693_v26 = vpop.f32.mrb[6].mxu1 }
 0x316   :  { %v1339_v62 = vadd.f32 %v1338_v20, %v1337_v3  ;;  %v1375_v25 = vmul.f32 0.125, %v1365_v16  ;;  %v1347_v45 = vrot.slane %v1346_v38, 1  ;;  %v1374_v30 = vadd.f32 %v1373_v23, %v1372_v12  ;;  %v695_v22 = vpop.f32.mrb[7].mxu1 }
 0x317   :  { %v729_v31 = vmul.f32 0.0, %v5677_v24  ;;  %v694_v17 = vadd.f32 %v693_v26, %v610_v54  ;;  %v728_v43 = vmul.f32 0.0, %v5675_v19  ;;  %v713_v44 = vsel %vm379_vm2, %v5677_v24, 0.0 }
 0x318   :  { %v1349_v32 = vmul.f32 0.125, %v1339_v62  ;;  %v1377_v35 = vmul.f32 0.0, %v1375_v25  ;;  %v1348_v28 = vadd.f32 %v1347_v45, %v1346_v38  ;;  %v1376_v41 = vmul.f32 0.125, %v1374_v30 }
 0x319   :  { %v5683_v46 = vmax.f32 %v694_v17, 0.0  ;;  %v696_v47 = vadd.f32 %v695_v22, %v614_v59  ;;  %v739_v53 = vsel %vm379_vm2, %v729_v31, 0.0 }
 0x31a   :  { %v1353_v48 = vmul.f32 0.0, %v1349_v32  ;;  %v1381_v8 = vadd.f32 %v1377_v35, %v1349_v32  ;;  %v1350_v11 = vmul.f32 0.125, %v1348_v28  ;;  %v1378_v18 = vmul.f32 0.0, %v1376_v41 }
 0x31b   :  { %v704_v49 = vmul.f32 0.0, %v5683_v46  ;;  %v732_v50 = vadd.f32 %v728_v43, %v5683_v46  ;;  %v5687_v51 = vmax.f32 %v696_v47, 0.0 }
 0x31c   :  { %v1383_v55 = vadd.f32 %v1375_v25, %v1353_v48  ;;  %v5691_v56 = vsub.f32 %v5647_v37, %v1381_v8  ;;  %v1354_v52 = vmul.f32 0.0, %v1350_v11  ;;  %v1382_v57 = vadd.f32 %v1378_v18, %v1350_v11 }
 0x31d   :  { %v706_v58 = vadd.f32 %v704_v49, %v5675_v19  ;;  %v733_v54 = vrot.slane %v732_v50, 4  ;;  %v705_v59 = vmul.f32 0.0, %v5687_v51  ;;  %v740_v60 = vsel %vm379_vm2, %v5687_v51, 0.0 }
 0x31e   :  { %v5698_v61 = vsub.f32 %v5653_v33, %v1383_v55  ;;  %v1389_v6 = vmul.f32 %v5691_v56, %v5691_v56  ;;  %v1384_v5 = vadd.f32 %v1376_v41, %v1354_v52  ;;  %v5703_v37 = vsub.f32 %v5649_v29, %v1382_v57 }
 0x31f   :  { %v707_v7 = vrot.slane %v706_v58, 4  ;;  %v734_v3 = vadd.f32 %v733_v54, %v732_v50  ;;  %v714_v9 = vsel %vm379_vm2, %v705_v59, 0.0  ;;  %v741_v10 = vadd.f32 %v740_v60, %v739_v53 }
 0x320   :  { %v1391_v12 = vmul.f32 %v5698_v61, %v5698_v61  ;;  %v1419_v13 = vmul.f32 0.0, %v1389_v6  ;;  %v5709_v14 = vsub.f32 %v5655_v34, %v1384_v5  ;;  %v1390_v33 = vmul.f32 %v5703_v37, %v5703_v37 }
 0x321   :  { %v708_v15 = vadd.f32 %v707_v7, %v706_v58  ;;  %v735_v20 = vrot.slane %v734_v3, 2  ;;  %v715_v16 = vadd.f32 %v714_v9, %v713_v44  ;;  %v742_v29 = vrot.slane %v741_v10, 4 }
 0x322   :  { %v1395_v38 = vmul.f32 0.0, %v1391_v12  ;;  %v1423_v23 = vadd.f32 %v1419_v13, %v1391_v12  ;;  %v1392_v26 = vmul.f32 %v5709_v14, %v5709_v14  ;;  %v1404_v62 = vsel %vm379_vm2, %v1390_v33, 0.0 }
 0x323   :  { %v1420_v25 = vmul.f32 0.0, %v1390_v33  ;;  %v709_v45 = vrot.slane %v708_v15, 2  ;;  %v736_v30 = vadd.f32 %v735_v20, %v734_v3  ;;  %v716_v22 = vrot.slane %v715_v16, 4 }
 0x324   :  { %v1397_v34 = vadd.f32 %v1395_v38, %v1389_v6  ;;  %v1424_v31 = vrot.slane %v1423_v23, 4  ;;  %v1396_v17 = vmul.f32 0.0, %v1392_v26  ;;  %v1431_v32 = vsel %vm379_vm2, %v1392_v26, 0.0 }
 0x325   :  { %v1430_v35 = vsel %vm379_vm2, %v1420_v25, 0.0  ;;  %v710_v28 = vadd.f32 %v709_v45, %v708_v15  ;;  %v737_v41 = vrot.slane %v736_v30, 1  ;;  %v717_v43 = vadd.f32 %v716_v22, %v715_v16 }
 0x326   :  { %v1398_v44 = vrot.slane %v1397_v34, 4  ;;  %v1425_v47 = vadd.f32 %v1424_v31, %v1423_v23  ;;  %v1405_v48 = vsel %vm379_vm2, %v1396_v17, 0.0  ;;  %v1432_v8 = vadd.f32 %v1431_v32, %v1430_v35 }
 0x327   :  { %v1406_v11 = vadd.f32 %v1405_v48, %v1404_v62  ;;  %v711_v18 = vrot.slane %v710_v28, 1  ;;  %v738_v49 = vadd.f32 %v737_v41, %v736_v30  ;;  %v718_v50 = vrot.slane %v717_v43, 2 }
 0x328   :  { %v1399_v53 = vadd.f32 %v1398_v44, %v1397_v34  ;;  %v1426_v55 = vrot.slane %v1425_v47, 2  ;;  %v1433_v52 = vrot.slane %v1432_v8, 4  ;;  %v743_v57 = vadd.f32 %v742_v29, %v741_v10 }
 0x329   :  { %v1407_v58 = vrot.slane %v1406_v11, 4  ;;  %v712_v54 = vadd.f32 %v711_v18, %v710_v28  ;;  %v748_v59 = vmul.f32 0.125, %v738_v49  ;;  %v719_v60 = vadd.f32 %v718_v50, %v717_v43 }
 0x32a   :  { %v1400_v6 = vrot.slane %v1399_v53, 2  ;;  %v1427_v5 = vadd.f32 %v1426_v55, %v1425_v47  ;;  %v1434_v7 = vadd.f32 %v1433_v52, %v1432_v8  ;;  %v744_v3 = vrot.slane %v743_v57, 2 }
 0x32b   :  { %v1408_v9 = vadd.f32 %v1407_v58, %v1406_v11  ;;  %v722_v12 = vmul.f32 0.125, %v712_v54  ;;  %v750_v13 = vmul.f32 0.0, %v748_v59  ;;  %v720_v33 = vrot.slane %v719_v60, 1 }
 0x32c   :  { %v1401_v15 = vadd.f32 %v1400_v6, %v1399_v53  ;;  %v1428_v20 = vrot.slane %v1427_v5, 1  ;;  %v1435_v16 = vrot.slane %v1434_v7, 2  ;;  %v745_v38 = vadd.f32 %v744_v3, %v743_v57 }
 0x32d   :  { %v1409_v23 = vrot.slane %v1408_v9, 2  ;;  %v726_v26 = vmul.f32 0.0, %v722_v12  ;;  %v754_v62 = vadd.f32 %v750_v13, %v722_v12  ;;  %v721_v10 = vadd.f32 %v720_v33, %v719_v60 }
 0x32e   :  { %v1402_v29 = vrot.slane %v1401_v15, 1  ;;  %v1429_v25 = vadd.f32 %v1428_v20, %v1427_v5  ;;  %v1436_v45 = vadd.f32 %v1435_v16, %v1434_v7  ;;  %v746_v30 = vrot.slane %v745_v38, 1 }
 0x32f   :  { %v1410_v22 = vadd.f32 %v1409_v23, %v1408_v9  ;;  %v756_v34 = vadd.f32 %v748_v59, %v726_v26  ;;  %v5720_v31 = vsub.f32 %v5675_v19, %v754_v62  ;;  %v723_v17 = vmul.f32 0.125, %v721_v10 }
 0x330   :  { %v1403_v32 = vadd.f32 %v1402_v29, %v1401_v15  ;;  %v1439_v35 = vmul.f32 0.125, %v1429_v25  ;;  %v1437_v28 = vrot.slane %v1436_v45, 1  ;;  %v747_v41 = vadd.f32 %v746_v30, %v745_v38 }
 0x331   :  { %v1411_v43 = vrot.slane %v1410_v22, 1  ;;  %v5723_v44 = vsub.f32 %v5683_v46, %v756_v34  ;;  %v762_v47 = vmul.f32 %v5720_v31, %v5720_v31  ;;  %v727_v48 = vmul.f32 0.0, %v723_v17 }
 0x332   :  { %v1413_v8 = vmul.f32 0.125, %v1403_v32  ;;  %v1441_v11 = vmul.f32 0.0, %v1439_v35  ;;  %v1438_v18 = vadd.f32 %v1437_v28, %v1436_v45  ;;  %v749_v49 = vmul.f32 0.125, %v747_v41 }
 0x333   :  { %v1412_v50 = vadd.f32 %v1411_v43, %v1410_v22  ;;  %v764_v19 = vmul.f32 %v5723_v44, %v5723_v44  ;;  %v792_v53 = vmul.f32 0.0, %v762_v47 }
 0x334   :  { %v1417_v55 = vmul.f32 0.0, %v1413_v8  ;;  %v1445_v52 = vadd.f32 %v1441_v11, %v1413_v8  ;;  %v1440_v57 = vmul.f32 0.125, %v1438_v18  ;;  %v751_v58 = vmul.f32 0.0, %v749_v49 }
 0x335   :  { %v1414_v54 = vmul.f32 0.125, %v1412_v50  ;;  %v768_v46 = vmul.f32 0.0, %v764_v19  ;;  %v796_v59 = vadd.f32 %v792_v53, %v764_v19  ;;  %v757_v60 = vadd.f32 %v749_v49, %v727_v48 }
 0x336   :  { %v1447_v6 = vadd.f32 %v1439_v35, %v1417_v55  ;;  %v1449_v5 = vadd.f32 1e-05, %v1445_v52  ;;  %v1442_v7 = vmul.f32 0.0, %v1440_v57  ;;  %v755_v3 = vadd.f32 %v751_v58, %v723_v17 }
 0x337   :  { %v1418_v9 = vmul.f32 0.0, %v1414_v54  ;;  %v770_v12 = vadd.f32 %v768_v46, %v762_v47  ;;  %v797_v13 = vrot.slane %v796_v59, 4  ;;  %v5730_v33 = vsub.f32 %v5687_v51, %v757_v60 }
 0x338   :  { %v1451_v15 = vadd.f32 1e-05, %v1447_v6  ;;  %4588 = vrsqrt.f32 %v1449_v5  ;;  %v1446_v20 = vadd.f32 %v1442_v7, %v1414_v54  ;;  %v5733_v16 = vsub.f32 %v5677_v24, %v755_v3 }
 0x339   :  { %v1448_v38 = vadd.f32 %v1440_v57, %v1418_v9  ;;  %v771_v23 = vrot.slane %v770_v12, 4  ;;  %v798_v26 = vadd.f32 %v797_v13, %v796_v59  ;;  %v765_v62 = vmul.f32 %v5730_v33, %v5730_v33 }
 0x33a   :  { %4590 = vrsqrt.f32 %v1451_v15  ;;  %v1450_v10 = vadd.f32 1e-05, %v1446_v20  ;;  %v763_v29 = vmul.f32 %v5733_v16, %v5733_v16  ;;  %v1468_v11 = vrot.slane %v5639_v21, %v5566_v42 }
 0x33b   :  { %v1452_v25 = vadd.f32 1e-05, %v1448_v38  ;;  %v772_v51 = vadd.f32 %v771_v23, %v770_v12  ;;  %v799_v45 = vrot.slane %v798_v26, 2  ;;  %v769_v30 = vmul.f32 0.0, %v765_v62 }
 0x33c   :  { %4592 = vrsqrt.f32 %v1450_v10  ;;  %v777_v22 = vsel %vm379_vm2, %v763_v29, 0.0  ;;  %v793_v24 = vmul.f32 0.0, %v763_v29  ;;  %v804_v34 = vsel %vm379_vm2, %v765_v62, 0.0  ;;  %v1743_v29 = vld [vmem:[#allocation11] sm:$0xff] }
 0x33d   :  { %4594 = vrsqrt.f32 %v1452_v25  ;;  %v773_v17 = vrot.slane %v772_v51, 2  ;;  %v800_v32 = vadd.f32 %v799_v45, %v798_v26  ;;  %v778_v35 = vsel %vm379_vm2, %v769_v30, 0.0  ;;  %v1745_v25 = vld [vmem:[#allocation11 + $0x10] sm:$0xff] }
 0x33e   :  { %v779_v28 = vadd.f32 %v778_v35, %v777_v22  ;;  %v803_v41 = vsel %vm379_vm2, %v793_v24, 0.0  ;;  %v1464_v18 = vrot.slane %v5639_v21, %v5563_v27  ;;  %v1490_v52 = vrot.slane %v5639_v21, %v5572_v40  ;;  %v1750_v35 = vld [vmem:[#allocation11 + $0x38] sm:$0xff] }
 0x33f   :  { %v774_v43 = vadd.f32 %v773_v17, %v772_v51  ;;  %v801_v47 = vrot.slane %v800_v32, 1  ;;  %v805_v48 = vadd.f32 %v804_v34, %v803_v41  ;;  %v1486_v57 = vrot.slane %v5639_v21, %v5569_v36 }
 0x340   :  { %v780_v8 = vrot.slane %v779_v28, 4  ;;  %v1478_v5 = vrot.slane %v1468_v11, %v5563_v27  ;;  %v1474_v7 = vrot.slane %v1464_v18, %v5563_v27  ;;  %v1500_v21 = vrot.slane %v1490_v52, %v5569_v36  ;;  %v1754_v52 = vld [vmem:[#allocation11 + $0x58] sm:$0xff] }
 0x341   :  { %v775_v49 = vrot.slane %v774_v43, 1  ;;  %v802_v50 = vadd.f32 %v801_v47, %v800_v32  ;;  %v806_v19 = vrot.slane %v805_v48, 4  ;;  %v1496_v38 = vrot.slane %v1486_v57, %v5569_v36  ;;  %v1748_v32 = vld [vmem:[#allocation11 + $0x28] sm:$0xff] }
 0x342   :  { %v4589_v53 = vpop.eup %4588  ;;  %v781_v55 = vadd.f32 %v780_v8, %v779_v28  ;;  %v4323_v41 = vpack.c.bf16 %v1745_v25, %v1743_v29  ;;  %v4325_v18 = vpack.c.bf16 %v1750_v35, %v1748_v32  ;;  %v1765_v32 = vld [vmem:[#allocation11 + $0xb0] sm:$0xff] }
 0x343   :  { %v776_v58 = vadd.f32 %v775_v49, %v774_v43  ;;  %v812_v54 = vmul.f32 0.125, %v802_v50  ;;  %v807_v46 = vadd.f32 %v806_v19, %v805_v48  ;;  %v1457_v59 = vmul.f32 %v4589_v53, %v5691_v56  ;;  %v1747_v49 = vld [vmem:[#allocation11 + $0x20] sm:$0xff]  ;;  %v1749_v50 = vld [vmem:[#allocation11 + $0x30] sm:$0xff] }
 0x344   :  { %v4591_v60 = vpop.eup %4590  ;;  %v782_v6 = vrot.slane %v781_v55, 2 }
 0x345   :  { %v1459_v3 = vmul.f32 %v4591_v60, %v5698_v61  ;;  %v786_v9 = vmul.f32 0.125, %v776_v58  ;;  %v814_v12 = vmul.f32 0.0, %v812_v54  ;;  %v808_v13 = vrot.slane %v807_v46, 2  ;;  %v1751_v60 = vld [vmem:[#allocation11 + $0x40] sm:$0xff] }
 0x346   :  { %v4593_v15 = vpop.eup %4592  ;;  %v783_v20 = vadd.f32 %v782_v6, %v781_v55  ;;  %v1479_v45 = vmul.f32 %v1474_v7, %v1457_v59  ;;  %v1752_v55 = vld [vmem:[#allocation11 + $0x48] sm:$0xff]  ;;  %v1753_v6 = vld [vmem:[#allocation11 + $0x50] sm:$0xff] }
 0x347   :  { %v4595_v23 = vpop.eup %4594  ;;  %v790_v26 = vmul.f32 0.0, %v786_v9  ;;  %v818_v56 = vadd.f32 %v814_v12, %v786_v9  ;;  %v809_v62 = vadd.f32 %v808_v13, %v807_v46  ;;  %v1458_v10 = vmul.f32 %v4593_v15, %v5703_v37 }
 0x348   :  { %v1460_v51 = vmul.f32 %v4595_v23, %v5709_v14  ;;  %v784_v61 = vrot.slane %v783_v20, 1  ;;  %v1481_v30 = vmul.f32 %v1474_v7, %v1459_v3  ;;  %v5763_v11 = vadd.f32 %v1496_v38, %v1479_v45  ;;  %v1756_v7 = vld [vmem:[#allocation11 + $0x68] sm:$0xff]  ;;  %v1758_v3 = vld [vmem:[#allocation11 + $0x78] sm:$0xff] }
 0x349   :  { %v820_v22 = vadd.f32 %v812_v54, %v790_v26  ;;  %v822_v24 = vadd.f32 1e-05, %v818_v56  ;;  %v810_v34 = vrot.slane %v809_v62, 1  ;;  %v1480_v17 = vmul.f32 %v1478_v5, %v1458_v10  ;;  %v1760_v23 = vld [vmem:[#allocation11 + $0x88] sm:$0xff]  ;;  %v1762_v26 = vld [vmem:[#allocation11 + $0x98] sm:$0xff] }
 0x34a   :  { %v785_v28 = vadd.f32 %v784_v61, %v783_v20  ;;  %v1482_v43 = vmul.f32 %v1478_v5, %v1460_v51  ;;  %v5759_v47 = vadd.f32 %v1496_v38, %v1481_v30  ;;  %v4327_v54 = vpack.c.bf16 %v1749_v50, %v1747_v49  ;;  %v1755_v20 = vld [vmem:[#allocation11 + $0x60] sm:$0xff]  ;;  %v1761_v61 = vld [vmem:[#allocation11 + $0x90] sm:$0xff]  ;;  %v1764_v30 = vld [vmem:[#allocation11 + $0xa8] sm:$0xff] }
 0x34b   :  { %v824_v48 = vadd.f32 1e-05, %v820_v22  ;;  %4596 = vrsqrt.f32 %v822_v24  ;;  %v811_v37 = vadd.f32 %v810_v34, %v809_v62  ;;  %v5761_v8 = vadd.f32 %v1500_v21, %v1480_v17  ;;  %v1759_v51 = vld [vmem:[#allocation11 + $0x80] sm:$0xff]  ;;  %v1766_v22 = vld [vmem:[#allocation11 + $0xb8] sm:$0xff] }
 0x34c   :  { %v787_v14 = vmul.f32 0.125, %v785_v28  ;;  %v5765_v19 = vadd.f32 %v1500_v21, %v1482_v43  ;;  %v4329_v59 = vpack.c.bf16 %v1754_v52, %v1752_v55  ;;  %v4331_v13 = vpack.c.bf16 %v1753_v6, %v1751_v60  ;;  %v1757_v21 = vld [vmem:[#allocation11 + $0x70] sm:$0xff]  ;;  %v1763_v17 = vld [vmem:[#allocation11 + $0xa0] sm:$0xff]  ;;  %v1770_v43 = vld [vmem:[#allocation11 + $0xd8] sm:$0xff] }
 0x34d   :  { %4598 = vrsqrt.f32 %v824_v48  ;;  %v813_v53 = vmul.f32 0.125, %v811_v37  ;;  %4022 = vmatprep.mubr.msk.f32.mxu1 %vm379_vm2, %v5761_v8  ;;  %v4333_v15 = vpack.c.bf16 %v1758_v3, %v1756_v7  ;;  %v4335_v10 = vpack.c.bf16 %v1757_v21, %v1755_v20  ;;  %v1769_v52 = vld [vmem:[#allocation11 + $0xd0] sm:$0xff]  ;;  %v1772_v6 = vld [vmem:[#allocation11 + $0xe8] sm:$0xff] }
 0x34e   :  { %v791_v57 = vmul.f32 0.0, %v787_v14  ;;  %1623 = vmatmul.mubr.f32.vlgmr.msra.gmra.mrb[8].mxu1 %v5763_v11  ;;  %v4337_v25 = vpack.c.bf16 %v1762_v26, %v1760_v23  ;;  %v837_v45 = vrot.slane %v5659_v39, %v5563_v27  ;;  %v841_v24 = vrot.slane %v5659_v39, %v5566_v42  ;;  %v2080_v60 = vld [vmem:[#allocation14 + $0x38] sm:$0xff]  ;;  %v2079_v21 = vld [vmem:[#allocation14 + $0x30] sm:$0xff]  ;;  %v1778_v26 = vld [vmem:[#allocation11 + $0x118] sm:$0xff] }
 0x34f   :  { %v815_v58 = vmul.f32 0.0, %v813_v53  ;;  %4324 = vmatpush1.bf16.msra.mxu1 %v4323_v41  ;;  %v863_v34 = vrot.slane %v5659_v39, %v5572_v40  ;;  %v859_v28 = vrot.slane %v5659_v39, %v5569_v36  ;;  %v1768_v41 = vld [vmem:[#allocation11 + $0xc8] sm:$0xff]  ;;  %v4343_v49 = vpack.c.bf16 %v1765_v32, %v1763_v17  ;;  %v1767_v39 = vld [vmem:[#allocation11 + $0xc0] sm:$0xff]  ;;  %v2088_v17 = vld [vmem:[#allocation14 + $0x78] sm:$0xff] }
 0x350   :  { %v821_v46 = vadd.f32 %v813_v53, %v791_v57  ;;  %4326 = vmatprep.subr.bf16.mxu1 %v4325_v18  ;;  %v5781_v35 = vrot.slane %v837_v45, %v5563_v27  ;;  %v5786_v37 = vrot.slane %v841_v24, %v5563_v27  ;;  %v4345_v55 = vpack.c.bf16 %v1770_v43, %v1768_v41  ;;  %v1776_v23 = vld [vmem:[#allocation11 + $0x108] sm:$0xff]  ;;  %v1775_v45 = vld [vmem:[#allocation11 + $0x100] sm:$0xff]  ;;  %v2085_v41 = vld [vmem:[#allocation14 + $0x60] sm:$0xff] }
 0x351   :  { %v819_v5 = vadd.f32 %v815_v58, %v787_v14  ;;  %v5793_v53 = vrot.slane %v863_v34, %v5569_v36  ;;  %v5797_v58 = vrot.slane %v859_v28, %v5569_v36  ;;  %v2083_v24 = vld [vmem:[#allocation14 + $0x50] sm:$0xff]  ;;  %v1782_v34 = vld [vmem:[#allocation11 + $0x138] sm:$0xff] }
 0x352   :  { %v825_v9 = vadd.f32 1e-05, %v821_v46  ;;  %v2075_v46 = vld [vmem:[#allocation14 + $0x10] sm:$0xff] }
 0x353   :  { %v823_v12 = vadd.f32 1e-05, %v819_v5  ;;  %4328 = vmatpush1.bf16.msra.mxu1 %v4327_v54  ;;  %v2073_v54 = vld [vmem:[#allocation14] sm:$0xff]  ;;  %v4347_v5 = vpack.c.bf16 %v1769_v52, %v1767_v39  ;;  %v2090_v52 = vld [vmem:[#allocation14 + $0x88] sm:$0xff] }
 0x354   :  { %4600 = vrsqrt.f32 %v825_v9  ;;  %4330 = vmatprep.subr.bf16.mxu1 %v4329_v59  ;;  %v4371_v3 = vpack.c.bf16 %v2075_v46, %v2073_v54  ;;  %v2077_v9 = vld [vmem:[#allocation14 + $0x20] sm:$0xff] }
 0x355   :  { %v4597_v38 = vpop.eup %4596  ;;  %4602 = vrsqrt.f32 %v823_v12  ;;  %v1771_v12 = vld [vmem:[#allocation11 + $0xe0] sm:$0xff]  ;;  %v1786_v39 = vld [vmem:[#allocation11 + $0x158] sm:$0xff] }
 0x356   :  { %v830_v56 = vmul.f32 %v4597_v38, %v5720_v31  ;;  %v4339_v31 = vpack.c.bf16 %v1761_v61, %v1759_v51  ;;  %v2081_v51 = vld [vmem:[#allocation14 + $0x40] sm:$0xff]  ;;  %v4353_v61 = vpack.c.bf16 %v1778_v26, %v1776_v23  ;;  %v1787_v23 = vld [vmem:[#allocation11 + $0x160] sm:$0xff]  ;;  %v1789_v26 = vld [vmem:[#allocation11 + $0x170] sm:$0xff] }
 0x357   :  { %v4599_v62 = vpop.eup %4598  ;;  %4332 = vmatpush1.bf16.msra.mxu1 %v4331_v13  ;;  %v1773_v13 = vld [vmem:[#allocation11 + $0xf0] sm:$0xff]  ;;  %v4379_v28 = vpack.c.bf16 %v2083_v24, %v2081_v51  ;;  %v2099_v24 = vld [vmem:[#allocation14 + $0xd0] sm:$0xff] }
 0x358   :  { %v5772_v29 = vmul.f32 %v4599_v62, %v5723_v44  ;;  %4334 = vmatprep.subr.bf16.mxu1 %v4333_v15  ;;  %v4341_v44 = vpack.c.bf16 %v1766_v22, %v1764_v30  ;;  %v852_v57 = vmul.f32 %v5781_v35, %v830_v56  ;;  %v2082_v56 = vld [vmem:[#allocation14 + $0x48] sm:$0xff]  ;;  %v2084_v62 = vld [vmem:[#allocation14 + $0x58] sm:$0xff] }
 0x359   :  { %v1777_v30 = vld [vmem:[#allocation11 + $0x110] sm:$0xff]  ;;  %v4377_v22 = vpack.c.bf16 %v2084_v62, %v2082_v56  ;;  %v2093_v62 = vld [vmem:[#allocation14 + $0xa0] sm:$0xff] }
 0x35a   :  { %v5804_v15 = vadd.f32 %v5797_v58, %v852_v57  ;;  %v4355_v32 = vpack.c.bf16 %v1777_v30, %v1775_v45  ;;  %v2092_v57 = vld [vmem:[#allocation14 + $0x98] sm:$0xff] }
 0x35b   :  { %4336 = vmatpush1.bf16.msra.mxu1 %v4335_v10  ;;  %v4351_v10 = vpack.c.bf16 %v1773_v13, %v1771_v12  ;;  %v2094_v12 = vld [vmem:[#allocation14 + $0xa8] sm:$0xff]  ;;  %v2096_v13 = vld [vmem:[#allocation14 + $0xb8] sm:$0xff] }
 0x35c   :  { %4338 = vmatprep.subr.bf16.mxu1 %v4337_v25  ;;  %v4375_v25 = vpack.c.bf16 %v2079_v21, %v2077_v9  ;;  %v1790_v9 = vld [vmem:[#allocation11 + $0x178] sm:$0xff]  ;;  %v4389_v56 = vpack.c.bf16 %v2096_v13, %v2094_v12  ;;  %v2100_v51 = vld [vmem:[#allocation14 + $0xd8] sm:$0xff] }
 0x35d   :  { %v2120_v12 = vld [vmem:[#allocation14 + $0x178] sm:$0xff] }
 0x35e   :  { %v4601_v48 = vpop.eup %4600 }
 0x35f   :  { %v4603_v14 = vpop.eup %4602  ;;  %v5789_v18 = vmul.f32 %v4601_v48, %v5730_v33  ;;  %4340 = vmatpush1.bf16.msra.mxu1 %v4339_v31  ;;  %v2078_v33 = vld [vmem:[#allocation14 + $0x28] sm:$0xff]  ;;  %v1780_v31 = vld [vmem:[#allocation11 + $0x128] sm:$0xff] }
 0x360   :  { %v831_v50 = vmul.f32 %v4603_v14, %v5733_v16  ;;  %4342 = vmatprep.subr.bf16.mxu1 %v4341_v44  ;;  %v1774_v16 = vld [vmem:[#allocation11 + $0xf8] sm:$0xff]  ;;  %v4373_v20 = vpack.c.bf16 %v2080_v60, %v2078_v33  ;;  %v2086_v44 = vld [vmem:[#allocation14 + $0x68] sm:$0xff]  ;;  %v4357_v43 = vpack.c.bf16 %v1782_v34, %v1780_v31  ;;  %v1781_v14 = vld [vmem:[#allocation11 + $0x130] sm:$0xff] }
 0x361   :  { %v4349_v38 = vpack.c.bf16 %v1774_v16, %v1772_v6  ;;  %v1779_v48 = vld [vmem:[#allocation11 + $0x120] sm:$0xff]  ;;  %v2089_v33 = vld [vmem:[#allocation14 + $0x80] sm:$0xff]  ;;  %v1785_v6 = vld [vmem:[#allocation11 + $0x150] sm:$0xff]  ;;  %v4385_v16 = vpack.c.bf16 %v2092_v57, %v2090_v52 }
 0x362   :  { %v853_v59 = vmul.f32 %v5786_v37, %v831_v50  ;;  %v2087_v50 = vld [vmem:[#allocation14 + $0x70] sm:$0xff]  ;;  %v4359_v54 = vpack.c.bf16 %v1781_v14, %v1779_v48  ;;  %v1783_v60 = vld [vmem:[#allocation11 + $0x140] sm:$0xff] }
 0x363   :  { %4344 = vmatpush1.bf16.msra.mxu1 %v4343_v49  ;;  %v4381_v49 = vpack.c.bf16 %v2088_v17, %v2086_v44  ;;  %v4383_v46 = vpack.c.bf16 %v2087_v50, %v2085_v41  ;;  %v1792_v31 = vld [vmem:[#allocation11 + $0x188] sm:$0xff]  ;;  %v2102_v34 = vld [vmem:[#allocation14 + $0xe8] sm:$0xff]  ;;  %v2104_v44 = vld [vmem:[#allocation14 + $0xf8] sm:$0xff]  ;;  %v855_v17 = vmul.f32 %v5786_v37, %v5789_v18  ;;  %v854_v50 = vmul.f32 %v5781_v35, %v5772_v29 }
 0x364   :  { %v5801_v7 = vadd.f32 %v5793_v53, %v853_v59  ;;  %4346 = vmatprep.subr.bf16.mxu1 %v4345_v55  ;;  %v1784_v55 = vld [vmem:[#allocation11 + $0x148] sm:$0xff]  ;;  %v4397_v41 = vpack.c.bf16 %v2104_v44, %v2102_v34  ;;  %v2106_v14 = vld [vmem:[#allocation14 + $0x108] sm:$0xff]  ;;  %v2105_v18 = vld [vmem:[#allocation14 + $0x100] sm:$0xff] }
 0x365   :  { %v4361_v59 = vpack.c.bf16 %v1786_v39, %v1784_v55  ;;  %v2103_v48 = vld [vmem:[#allocation14 + $0xf0] sm:$0xff]  ;;  %v877_v55 = vadd.f32 %v5793_v53, %v855_v17  ;;  %v2110_v57 = vld [vmem:[#allocation14 + $0x128] sm:$0xff]  ;;  %v2109_v35 = vld [vmem:[#allocation14 + $0x120] sm:$0xff] }
 0x366   :  { %4023 = vmatprep.mubr.msk.f32.mxu0 %vm379_vm2, %v5801_v7  ;;  %4026 = vmatprep.mubr.msk.f32.mxu1 %vm379_vm2, %v5801_v7  ;;  %v2107_v52 = vld [vmem:[#allocation14 + $0x110] sm:$0xff]  ;;  %v2544_v34 = vld [vmem:[#allocation20 + $0x58] sm:$0xff] }
 0x367   :  { %1696 = vmatmul.mubr.f32.vlgmr.msra.gmra.mrb[8].mxu0 %v5804_v15  ;;  %4348 = vmatpush1.bf16.msra.mxu1 %v4347_v5  ;;  %v2091_v5 = vld [vmem:[#allocation14 + $0x90] sm:$0xff] }
 0x368   :  { %4372 = vmatpush1.bf16.msra.mxu0 %v4371_v3  ;;  %4028 = vmatprep.mubr.msk.f32.mxu0 %vm379_vm2, %v5761_v8  ;;  %v1788_v3 = vld [vmem:[#allocation11 + $0x168] sm:$0xff]  ;;  %v4387_v21 = vpack.c.bf16 %v2091_v5, %v2089_v33  ;;  %v4403_v33 = vpack.c.bf16 %v2107_v52, %v2105_v18  ;;  %v2113_v5 = vld [vmem:[#allocation14 + $0x140] sm:$0xff] }
 0x369   :  { %4374 = vmatprep.subr.bf16.mxu0 %v4373_v20  ;;  %4350 = vmatprep.subr.bf16.mxu1 %v4349_v38  ;;  %v4363_v20 = vpack.c.bf16 %v1785_v6, %v1783_v60  ;;  %v4365_v38 = vpack.c.bf16 %v1790_v9, %v1788_v3  ;;  %v2111_v53 = vld [vmem:[#allocation14 + $0x130] sm:$0xff]  ;;  %v2116_v60 = vld [vmem:[#allocation14 + $0x158] sm:$0xff]  ;;  %v2118_v9 = vld [vmem:[#allocation14 + $0x168] sm:$0xff] }
 0x36a   :  { %v4407_v6 = vpack.c.bf16 %v2111_v53, %v2109_v35  ;;  %v2115_v3 = vld [vmem:[#allocation14 + $0x150] sm:$0xff]  ;;  %v2551_v52 = vld [vmem:[#allocation20 + $0x90] sm:$0xff] }
 0x36b   :  { %4352 = vmatpush1.bf16.msra.mxu1 %v4351_v10  ;;  %v2095_v10 = vld [vmem:[#allocation14 + $0xb0] sm:$0xff]  ;;  %v4411_v13 = vpack.c.bf16 %v2115_v3, %v2113_v5 }
 0x36c   :  { %4376 = vmatpush1.bf16.msra.mxu0 %v4375_v25  ;;  %4354 = vmatprep.subr.bf16.mxu1 %v4353_v61  ;;  %v2098_v25 = vld [vmem:[#allocation14 + $0xc8] sm:$0xff]  ;;  %v4367_v61 = vpack.c.bf16 %v1789_v26, %v1787_v23  ;;  %v4391_v45 = vpack.c.bf16 %v2095_v10, %v2093_v62  ;;  %v2121_v26 = vld [vmem:[#allocation14 + $0x180] sm:$0xff] }
 0x36d   :  { %4378 = vmatprep.subr.bf16.mxu0 %v4377_v22  ;;  %v4393_v30 = vpack.c.bf16 %v2100_v51, %v2098_v25  ;;  %v2097_v22 = vld [vmem:[#allocation14 + $0xc0] sm:$0xff]  ;;  %v2122_v23 = vld [vmem:[#allocation14 + $0x188] sm:$0xff] }
 0x36e   :  { %v2536_v62 = vld [vmem:[#allocation20 + $0x18] sm:$0xff]  ;;  %v2533_v25 = vld [vmem:[#allocation20] sm:$0xff]  ;;  %v2535_v51 = vld [vmem:[#allocation20 + $0x10] sm:$0xff] }
 0x36f   :  { %4356 = vmatpush1.bf16.msra.mxu1 %v4355_v32  ;;  %v4395_v32 = vpack.c.bf16 %v2099_v24, %v2097_v22  ;;  %v2537_v24 = vld [vmem:[#allocation20 + $0x20] sm:$0xff] }
 0x370   :  { %4380 = vmatpush1.bf16.msra.mxu0 %v4379_v28  ;;  %4358 = vmatprep.subr.bf16.mxu1 %v4357_v43  ;;  %v1791_v28 = vld [vmem:[#allocation11 + $0x180] sm:$0xff]  ;;  %v2101_v43 = vld [vmem:[#allocation14 + $0xe0] sm:$0xff] }
 0x371   :  { %4382 = vmatprep.subr.bf16.mxu0 %v4381_v49  ;;  %v2108_v49 = vld [vmem:[#allocation14 + $0x118] sm:$0xff]  ;;  %v4399_v39 = vpack.c.bf16 %v2103_v48, %v2101_v43  ;;  %v2541_v17 = vld [vmem:[#allocation20 + $0x40] sm:$0xff]  ;;  %v2548_v43 = vld [vmem:[#allocation20 + $0x78] sm:$0xff] }
 0x372   :  { %v4401_v37 = vpack.c.bf16 %v2108_v49, %v2106_v14  ;;  %v2545_v14 = vld [vmem:[#allocation20 + $0x60] sm:$0xff]  ;;  %v2547_v49 = vld [vmem:[#allocation20 + $0x70] sm:$0xff] }
 0x373   :  { %4360 = vmatpush1.bf16.msra.mxu1 %v4359_v54  ;;  %v2112_v54 = vld [vmem:[#allocation14 + $0x138] sm:$0xff]  ;;  %v2549_v18 = vld [vmem:[#allocation20 + $0x80] sm:$0xff] }
 0x374   :  { %4384 = vmatpush1.bf16.msra.mxu0 %v4383_v46  ;;  %4362 = vmatprep.subr.bf16.mxu1 %v4361_v59  ;;  %v876_v46 = vadd.f32 %v5797_v58, %v854_v50  ;;  %v4405_v29 = vpack.c.bf16 %v2112_v54, %v2110_v57  ;;  %v2114_v59 = vld [vmem:[#allocation14 + $0x148] sm:$0xff]  ;;  %v4413_v58 = vpack.c.bf16 %v2120_v12, %v2118_v9  ;;  %v2559_v9 = vld [vmem:[#allocation20 + $0xd0] sm:$0xff] }
 0x375   :  { %4386 = vmatprep.subr.bf16.mxu0 %v4385_v16  ;;  %v4409_v16 = vpack.c.bf16 %v2116_v60, %v2114_v59  ;;  %v5845_v50 = vpack.c.bf16 %v2547_v49, %v2545_v14  ;;  %v5851_v57 = vpack.c.bf16 %v2551_v52, %v2549_v18  ;;  %v2553_v53 = vld [vmem:[#allocation20 + $0xa0] sm:$0xff]  ;;  %v2555_v59 = vld [vmem:[#allocation20 + $0xb0] sm:$0xff]  ;;  %v2580_v18 = vld [vmem:[#allocation20 + $0x178] sm:$0xff] }
 0x376   :  { %v5857_v60 = vpack.c.bf16 %v2555_v59, %v2553_v53  ;;  %v2557_v3 = vld [vmem:[#allocation20 + $0xc0] sm:$0xff]  ;;  %v2575_v49 = vld [vmem:[#allocation20 + $0x150] sm:$0xff] }
 0x377   :  { %4364 = vmatpush1.bf16.msra.mxu1 %v4363_v20  ;;  %v2117_v20 = vld [vmem:[#allocation14 + $0x160] sm:$0xff]  ;;  %v5863_v12 = vpack.c.bf16 %v2559_v9, %v2557_v3  ;;  %v2573_v14 = vld [vmem:[#allocation20 + $0x140] sm:$0xff]  ;;  %v5895_v3 = vld [vmem:[#allocation20 + $0x188] sm:$0xff] }
 0x378   :  { %4388 = vmatpush1.bf16.msra.mxu0 %v4387_v21  ;;  %4366 = vmatprep.subr.bf16.mxu1 %v4365_v38  ;;  %v2119_v21 = vld [vmem:[#allocation14 + $0x170] sm:$0xff]  ;;  %6497 = vst [vmem:[#allocation38_spill] sm:$0xff] %v5857_v60  ;;  %v2579_v53 = vld [vmem:[#allocation20 + $0x170] sm:$0xff]  ;;  %6510 = vst [vmem:[#allocation51_spill] sm:$0xff] %v5895_v3 }
 0x379   :  { %4390 = vmatprep.subr.bf16.mxu0 %v4389_v56  ;;  %v4415_v38 = vpack.c.bf16 %v2119_v21, %v2117_v20  ;;  %v2534_v56 = vld [vmem:[#allocation20 + $0x8] sm:$0xff]  ;;  %6499 = vst [vmem:[#allocation40_spill] sm:$0xff] %v5863_v12  ;;  %v2561_v21 = vld [vmem:[#allocation20 + $0xe0] sm:$0xff] }
 0x37a   :  { %v5825_v10 = vpack.c.bf16 %v2536_v62, %v2534_v56  ;;  %v2568_v56 = vld [vmem:[#allocation20 + $0x118] sm:$0xff]  ;;  %v2577_v52 = vld [vmem:[#allocation20 + $0x160] sm:$0xff] }
 0x37b   :  { %4368 = vmatpush1.bf16.msra.mxu1 %v4367_v61  ;;  %v5827_v61 = vpack.c.bf16 %v2535_v51, %v2533_v25  ;;  %v2565_v25 = vld [vmem:[#allocation20 + $0x100] sm:$0xff]  ;;  %v2567_v51 = vld [vmem:[#allocation20 + $0x110] sm:$0xff] }
 0x37c   :  { %4392 = vmatpush1.bf16.msra.mxu0 %v4391_v45  ;;  %1863 = vmatprep.subr.mxu1 %v1792_v31  ;;  %v2538_v45 = vld [vmem:[#allocation20 + $0x28] sm:$0xff] }
 0x37d   :  { %4394 = vmatprep.subr.bf16.mxu0 %v4393_v30  ;;  %v2540_v30 = vld [vmem:[#allocation20 + $0x38] sm:$0xff] }
 0x37e   :  { %v5831_v22 = vpack.c.bf16 %v2540_v30, %v2538_v45  ;;  %v5875_v45 = vpack.c.bf16 %v2567_v51, %v2565_v25  ;;  %v2570_v30 = vld [vmem:[#allocation20 + $0x128] sm:$0xff] }
 0x37f   :  { %1864 = vmatpush1.msra.mxu1 %v1791_v28 }
 0x380   :  { %4396 = vmatpush1.bf16.msra.mxu0 %v4395_v32  ;;  %1880 = vmatmul.mubr.f32.vlgmr.msra.gmra.mrb[10].mxu1 %v5804_v15  ;;  %v2543_v32 = vld [vmem:[#allocation20 + $0x50] sm:$0xff]  ;;  %6503 = vst [vmem:[#allocation44_spill] sm:$0xff] %v5875_v45 }
 0x381   :  { %4398 = vmatprep.subr.bf16.mxu0 %v4397_v41  ;;  %4027 = vmatprep.mubr.msk.f32.mxu1 %vm379_vm2, %v877_v55  ;;  %v5839_v28 = vpack.c.bf16 %v2543_v32, %v2541_v17  ;;  %v2546_v41 = vld [vmem:[#allocation20 + $0x68] sm:$0xff] }
 0x382   :  { %v5843_v48 = vpack.c.bf16 %v2548_v43, %v2546_v41  ;;  %v2550_v55 = vld [vmem:[#allocation20 + $0x88] sm:$0xff]  ;;  %v2576_v41 = vld [vmem:[#allocation20 + $0x158] sm:$0xff] }
 0x383   :  { %v2574_v32 = vld [vmem:[#allocation20 + $0x148] sm:$0xff] }
 0x384   :  { %4400 = vmatpush1.bf16.msra.mxu0 %v4399_v39  ;;  %1886 = vmatmul.mubr.f32.gmra.mrb[12].mxu1 %v876_v46  ;;  %v2552_v39 = vld [vmem:[#allocation20 + $0x98] sm:$0xff]  ;;  %v2554_v46 = vld [vmem:[#allocation20 + $0xa8] sm:$0xff]  ;;  %v5885_v43 = vpack.c.bf16 %v2576_v41, %v2574_v32 }
 0x385   :  { %4402 = vmatprep.subr.bf16.mxu0 %v4401_v37  ;;  %v5849_v37 = vpack.c.bf16 %v2552_v39, %v2550_v55  ;;  %v5887_v55 = vpack.c.bf16 %v2575_v49, %v2573_v14  ;;  %v2578_v39 = vld [vmem:[#allocation20 + $0x168] sm:$0xff] }
 0x386   :  { %6506 = vst [vmem:[#allocation47_spill] sm:$0xff] %v5885_v43 }
 0x387   :  { %6507 = vst [vmem:[#allocation48_spill] sm:$0xff] %v5887_v55 }
 0x388   :  { %4404 = vmatpush1.bf16.msra.mxu0 %v4403_v33  ;;  %v2556_v33 = vld [vmem:[#allocation20 + $0xb8] sm:$0xff] }
 0x389   :  { %4406 = vmatprep.subr.bf16.mxu0 %v4405_v29  ;;  %v5855_v35 = vpack.c.bf16 %v2556_v33, %v2554_v46  ;;  %v4024_v33 = vld [vmem:[#allocation19] ss:$0 sm:$0xff] }
 0x38c   :  { %4408 = vmatpush1.bf16.msra.mxu0 %v4407_v6  ;;  %v2558_v6 = vld [vmem:[#allocation20 + $0xc8] sm:$0xff] }
 0x38d   :  { %4410 = vmatprep.subr.bf16.mxu0 %v4409_v16  ;;  %v2560_v16 = vld [vmem:[#allocation20 + $0xd8] sm:$0xff] }
 0x38e   :  { %v5861_v5 = vpack.c.bf16 %v2560_v16, %v2558_v6  ;;  %v5893_v16 = vpack.c.bf16 %v2579_v53, %v2577_v52 }
 0x390   :  { %4412 = vmatpush1.bf16.msra.mxu0 %v4411_v13  ;;  %6498 = vst [vmem:[#allocation39_spill] sm:$0xff] %v5861_v5  ;;  %v2562_v13 = vld [vmem:[#allocation20 + $0xe8] sm:$0xff]  ;;  %6509 = vst [vmem:[#allocation50_spill] sm:$0xff] %v5893_v16 }
 0x391   :  { %4414 = vmatprep.subr.bf16.mxu0 %v4413_v58  ;;  %v2564_v58 = vld [vmem:[#allocation20 + $0xf8] sm:$0xff] }
 0x392   :  { %v5867_v20 = vpack.c.bf16 %v2564_v58, %v2562_v13  ;;  %v5900_v13 = vld [vmem:[#allocation20 + $0x180] sm:$0xff] }
 0x393   :  { %6511 = vst [vmem:[#allocation52_spill] sm:$0xff] %v5900_v13 }
 0x394   :  { %4416 = vmatpush1.bf16.msra.mxu0 %v4415_v38  ;;  %6500 = vst [vmem:[#allocation41_spill] sm:$0xff] %v5867_v20  ;;  %v2563_v38 = vld [vmem:[#allocation20 + $0xf0] sm:$0xff] }
 0x395   :  { %2193 = vmatprep.subr.mxu0 %v2122_v23  ;;  %v5869_v23 = vpack.c.bf16 %v2563_v38, %v2561_v21 }
 0x397   :  { %6501 = vst [vmem:[#allocation42_spill] sm:$0xff] %v5869_v23 }
 0x398   :  { %2194 = vmatpush1.msra.mxu0 %v2121_v26  ;;  %v2566_v26 = vld [vmem:[#allocation20 + $0x108] sm:$0xff] }
 0x399   :  { %2210 = vmatmul.mubr.f32.vlgmr.msra.gmra.mrb[10].mxu0 %v5763_v11  ;;  %4471 = vmatprep.subr.bf16.mxu0 %v5825_v10  ;;  %v5873_v62 = vpack.c.bf16 %v2568_v56, %v2566_v26 }
 0x39a   :  { %4029 = vmatprep.mubr.msk.f32.mxu0 %vm379_vm2, %v5765_v19  ;;  %4473 = vmatpush1.bf16.msra.mxu0 %v5827_v61  ;;  %v2539_v19 = vld [vmem:[#allocation20 + $0x30] sm:$0xff] }
 0x39b   :  { %v5833_v31 = vpack.c.bf16 %v2539_v19, %v2537_v24  ;;  %4475 = vmatprep.subr.bf16.mxu0 %v5831_v22  ;;  %6502 = vst [vmem:[#allocation43_spill] sm:$0xff] %v5873_v62  ;;  %v2572_v24 = vld [vmem:[#allocation20 + $0x138] sm:$0xff] }
 0x39c   :  { %v5879_v19 = vpack.c.bf16 %v2572_v24, %v2570_v30 }
 0x39d   :  { %2216 = vmatmul.mubr.f32.gmra.mrb[12].mxu0 %v5759_v47  ;;  %v2542_v47 = vld [vmem:[#allocation20 + $0x48] sm:$0xff] }
 0x39e   :  { %4477 = vmatpush1.bf16.msra.mxu0 %v5833_v31  ;;  %v5837_v44 = vpack.c.bf16 %v2544_v34, %v2542_v47  ;;  %6504 = vst [vmem:[#allocation45_spill] sm:$0xff] %v5879_v19  ;;  %v2569_v47 = vld [vmem:[#allocation20 + $0x120] sm:$0xff]  ;;  %v2571_v34 = vld [vmem:[#allocation20 + $0x130] sm:$0xff] }
 0x39f   :  { %v5881_v17 = vpack.c.bf16 %v2571_v34, %v2569_v47 }
 0x3a0   :  { %4479 = vmatprep.subr.bf16.mxu0 %v5837_v44 }
 0x3a1   :  { %6505 = vst [vmem:[#allocation46_spill] sm:$0xff] %v5881_v17 }
 0x3a2   :  { %4481 = vmatpush1.bf16.msra.mxu0 %v5839_v28 }
 0x3a3   :  { %4483 = vmatprep.subr.bf16.mxu0 %v5843_v48 }
 0x3a6   :  { %4485 = vmatpush1.bf16.msra.mxu0 %v5845_v50 }
 0x3a7   :  { %4487 = vmatprep.subr.bf16.mxu0 %v5849_v37 }
 0x3aa   :  { %4489 = vmatpush1.bf16.msra.mxu0 %v5851_v57 }
 0x3ab   :  { %4491 = vmatprep.subr.bf16.mxu0 %v5855_v35 }
 0x3ae   :  { %4493 = vmatpush1.bf16.msra.mxu0 %v5857_v60 }
 0x3af   :  { %4495 = vmatprep.subr.bf16.mxu0 %v5861_v5 }
 0x3b2   :  { %4497 = vmatpush1.bf16.msra.mxu0 %v5863_v12 }
 0x3b3   :  { %4499 = vmatprep.subr.bf16.mxu0 %v5867_v20 }
 0x3b6   :  { %4501 = vmatpush1.bf16.msra.mxu0 %v5869_v23 }
 0x3b7   :  { %4503 = vmatprep.subr.bf16.mxu0 %v5873_v62 }
 0x3ba   :  { %4505 = vmatpush1.bf16.msra.mxu0 %v5875_v45 }
 0x3bb   :  { %4507 = vmatprep.subr.bf16.mxu0 %v5879_v19 }
 0x3be   :  { %4509 = vmatpush1.bf16.msra.mxu0 %v5881_v17 }
 0x3bf   :  { %4511 = vmatprep.subr.bf16.mxu0 %v5885_v43 }
 0x3c2   :  { %4513 = vmatpush1.bf16.msra.mxu0 %v5887_v55 }
 0x421   :  { %v1624_v54 = vpop.f32.mrb[8].mxu1 }
 0x422   :  { %v1626_v29 = vpop.f32.mrb[9].mxu1 }
 0x423   :  { %v5891_v29 = vpack.c.bf16 %v2580_v18, %v2578_v39 }
 0x425   :  { %6508 = vst [vmem:[#allocation49_spill] sm:$0xff] %v5891_v29  ;;  %4515 = vmatprep.subr.bf16.mxu0 %v5891_v29 }
 0x426   :  { %4517 = vmatpush1.bf16.msra.mxu0 %v5893_v16 }
 0x427   :  { %2768 = vmatprep.subr.mxu0 %v5895_v3 }
 0x42a   :  { %2769 = vmatpush1.msra.mxu0 %v5900_v13 }
 0x43a   :  { %v1697_v46 = vpop.f32.mrb[8].mxu0 }
 0x43b   :  { %v1698_v59 = vadd.f32 %v1697_v46, %v1624_v54  ;;  %v1699_v6 = vpop.f32.mrb[9].mxu0  ;;  %v5903_v54 = vld [vmem:[#allocation13] sm:$0x77] }
 0x43c   :  { %v1797_v38 = vrot.slane %v5903_v54, %v5450_v2  ;;  %v1801_v56 = vrot.slane %v5903_v54, %v5458_v4 }
 0x43d   :  { %v1708_v9 = vadd.f32 %v4024_v33, %v1698_v59 }
 0x43e   :  { %v1807_v51 = vrot.slane %v1797_v38, %v5450_v2  ;;  %v1811_v30 = vrot.slane %v1801_v56, %v5450_v2 }
 0x43f   :  { %1709 = vst [vmem:[#allocation23] sm:$0xff] %v1708_v9  ;;  %v1710_v58 = vmul.f32 0.5, %v1708_v9 }
 0x441   :  { %4604 = vtanh.f32 %v1710_v58 }
 0x44b   :  { %v4605_v21 = vpop.eup %4604 }
 0x44c   :  { %v1712_v26 = vadd.f32 1.0, %v4605_v21 }
 0x44e   :  { %v1713_v25 = vmul.f32 0.5, %v1712_v26 }
 0x450   :  { %1714 = vst [vmem:[#allocation24] sm:$0xff] %v1713_v25 }
 0x453   :  { %v1881_v24 = vpop.f32.mrb[10].mxu1 }
 0x454   :  { %v1882_v47 = vadd.f32 %v1881_v24, %v1807_v51  ;;  %v1883_v34 = vpop.f32.mrb[11].mxu1 }
 0x455   :  { %v1884_v32 = vadd.f32 %v1883_v34, %v1811_v30 }
 0x456   :  { %v5911_v41 = vmax.f32 %v1882_v47, 0.0 }
 0x457   :  { %v5913_v14 = vmax.f32 %v1884_v32, 0.0  ;;  %v1887_v49 = vpop.f32.mrb[12].mxu1 }
 0x458   :  { %v1888_v39 = vadd.f32 %v1887_v49, %v1807_v51  ;;  %v1889_v18 = vpop.f32.mrb[13].mxu1  ;;  %v1922_v33 = vmul.f32 0.0, %v5911_v41 }
 0x459   :  { %v1923_v52 = vmul.f32 0.0, %v5913_v14  ;;  %v1890_v46 = vadd.f32 %v1889_v18, %v1811_v30  ;;  %v1907_v51 = vsel %vm379_vm2, %v5913_v14, 0.0 }
 0x45a   :  { %v5917_v53 = vmax.f32 %v1888_v39, 0.0 }
 0x45b   :  { %v5919_v59 = vmax.f32 %v1890_v46, 0.0  ;;  %v1933_v21 = vsel %vm379_vm2, %v1923_v52, 0.0  ;;  %v5931_v46 = vld [vmem:[#allocation16] sm:$0x77] }
 0x45c   :  { %v1898_v6 = vmul.f32 0.0, %v5917_v53  ;;  %v1926_v9 = vadd.f32 %v1922_v33, %v5917_v53 }
 0x45d   :  { %v1899_v58 = vmul.f32 0.0, %v5919_v59  ;;  %v1934_v38 = vsel %vm379_vm2, %v5919_v59, 0.0 }
 0x45e   :  { %v1900_v26 = vadd.f32 %v1898_v6, %v5911_v41  ;;  %v1927_v56 = vrot.slane %v1926_v9, 4  ;;  %v1935_v25 = vadd.f32 %v1934_v38, %v1933_v21  ;;  %v2127_v21 = vrot.slane %v5931_v46, %v5450_v2 }
 0x45f   :  { %v1908_v30 = vsel %vm379_vm2, %v1899_v58, 0.0 }
 0x460   :  { %v1901_v24 = vrot.slane %v1900_v26, 4  ;;  %v1928_v47 = vadd.f32 %v1927_v56, %v1926_v9  ;;  %v1909_v34 = vadd.f32 %v1908_v30, %v1907_v51  ;;  %v1936_v32 = vrot.slane %v1935_v25, 4 }
 0x461   :  { %v2131_v9 = vrot.slane %v5931_v46, %v5458_v4  ;;  %v2137_v30 = vrot.slane %v2127_v21, %v5450_v2 }
 0x462   :  { %v1902_v49 = vadd.f32 %v1901_v24, %v1900_v26  ;;  %v1929_v39 = vrot.slane %v1928_v47, 2  ;;  %v1910_v18 = vrot.slane %v1909_v34, 4  ;;  %v1937_v52 = vadd.f32 %v1936_v32, %v1935_v25 }
 0x464   :  { %v1903_v33 = vrot.slane %v1902_v49, 2  ;;  %v1930_v0 = vadd.f32 %v1929_v39, %v1928_v47  ;;  %v1911_v6 = vadd.f32 %v1910_v18, %v1909_v34  ;;  %v1938_v63 = vrot.slane %v1937_v52, 2 }
 0x465   :  { %v2141_v39 = vrot.slane %v2131_v9, %v5450_v2 }
 0x466   :  { %v1904_v38 = vadd.f32 %v1903_v33, %v1902_v49  ;;  %v1931_v1 = vrot.slane %v1930_v0, 1  ;;  %v1912_v58 = vrot.slane %v1911_v6, 2  ;;  %v1939_v13 = vadd.f32 %v1938_v63, %v1937_v52 }
 0x468   :  { %v1905_v26 = vrot.slane %v1904_v38, 1  ;;  %v1932_v56 = vadd.f32 %v1931_v1, %v1930_v0  ;;  %v1913_v51 = vadd.f32 %v1912_v58, %v1911_v6  ;;  %v1940_v25 = vrot.slane %v1939_v13, 1 }
 0x46a   :  { %v1906_v24 = vadd.f32 %v1905_v26, %v1904_v38  ;;  %v1942_v47 = vmul.f32 0.125, %v1932_v56  ;;  %v1914_v34 = vrot.slane %v1913_v51, 1  ;;  %v1941_v32 = vadd.f32 %v1940_v25, %v1939_v13 }
 0x46c   :  { %v1916_v18 = vmul.f32 0.125, %v1906_v24  ;;  %v1944_v49 = vmul.f32 0.0, %v1942_v47  ;;  %v1915_v33 = vadd.f32 %v1914_v34, %v1913_v51  ;;  %v1943_v3 = vmul.f32 0.125, %v1941_v32  ;;  %v2211_v63 = vpop.f32.mrb[10].mxu0 }
 0x46d   :  { %v2212_v52 = vadd.f32 %v2211_v63, %v2137_v30  ;;  %v2213_v16 = vpop.f32.mrb[11].mxu0 }
 0x46e   :  { %v1920_v4 = vmul.f32 0.0, %v1916_v18  ;;  %v1948_v29 = vadd.f32 %v1944_v49, %v1916_v18  ;;  %v1917_v0 = vmul.f32 0.125, %v1915_v33  ;;  %v1945_v1 = vmul.f32 0.0, %v1943_v3 }
 0x46f   :  { %v5939_v6 = vmax.f32 %v2212_v52, 0.0  ;;  %v2214_v21 = vadd.f32 %v2213_v16, %v2141_v39 }
 0x470   :  { %v1950_v38 = vadd.f32 %v1942_v47, %v1920_v4  ;;  %v5942_v58 = vsub.f32 %v5911_v41, %v1948_v29  ;;  %v1921_v13 = vmul.f32 0.0, %v1917_v0  ;;  %v1949_v9 = vadd.f32 %v1945_v1, %v1917_v0  ;;  %v2217_v26 = vpop.f32.mrb[12].mxu0 }
 0x471   :  { %v2252_v56 = vmul.f32 0.0, %v5939_v6  ;;  %v5945_v51 = vmax.f32 %v2214_v21, 0.0  ;;  %v2218_v25 = vadd.f32 %v2217_v26, %v2137_v30  ;;  %v2219_v24 = vpop.f32.mrb[13].mxu0 }
 0x472   :  { %v5948_v34 = vsub.f32 %v5917_v53, %v1950_v38  ;;  %v1956_v32 = vmul.f32 %v5942_v58, %v5942_v58  ;;  %v1951_v16 = vadd.f32 %v1943_v3, %v1921_v13  ;;  %v5953_v4 = vsub.f32 %v5913_v14, %v1949_v9 }
 0x473   :  { %v2237_v29 = vsel %vm379_vm2, %v5945_v51, 0.0  ;;  %v2253_v41 = vmul.f32 0.0, %v5945_v51  ;;  %v5958_v47 = vmax.f32 %v2218_v25, 0.0  ;;  %v2220_v18 = vadd.f32 %v2219_v24, %v2141_v39 }
 0x474   :  { %v1958_v30 = vmul.f32 %v5948_v34, %v5948_v34  ;;  %v1986_v53 = vmul.f32 0.0, %v1956_v32  ;;  %v5963_v49 = vsub.f32 %v5919_v59, %v1951_v16  ;;  %v1957_v3 = vmul.f32 %v5953_v4, %v5953_v4 }
 0x475   :  { %v2228_v14 = vmul.f32 0.0, %v5958_v47  ;;  %v2256_v33 = vadd.f32 %v2252_v56, %v5958_v47  ;;  %v5969_v63 = vmax.f32 %v2220_v18, 0.0  ;;  %v2263_v52 = vsel %vm379_vm2, %v2253_v41, 0.0 }
 0x476   :  { %v1962_v0 = vmul.f32 0.0, %v1958_v30  ;;  %v1990_v39 = vadd.f32 %v1986_v53, %v1958_v30  ;;  %v1959_v1 = vmul.f32 %v5963_v49, %v5963_v49  ;;  %v1971_v21 = vsel %vm379_vm2, %v1957_v3, 0.0 }
 0x477   :  { %v1987_v59 = vmul.f32 0.0, %v1957_v3  ;;  %v2230_v38 = vadd.f32 %v2228_v14, %v5939_v6  ;;  %v2257_v13 = vrot.slane %v2256_v33, 4  ;;  %v2229_v9 = vmul.f32 0.0, %v5969_v63 }
 0x478   :  { %v1964_v26 = vadd.f32 %v1962_v0, %v1956_v32  ;;  %v1991_v25 = vrot.slane %v1990_v39, 4  ;;  %v1963_v56 = vmul.f32 0.0, %v1959_v1  ;;  %v1998_v24 = vsel %vm379_vm2, %v1959_v1, 0.0 }
 0x479   :  { %v1997_v16 = vsel %vm379_vm2, %v1987_v59, 0.0  ;;  %v2231_v41 = vrot.slane %v2230_v38, 4  ;;  %v2258_v18 = vadd.f32 %v2257_v13, %v2256_v33  ;;  %v2238_v30 = vsel %vm379_vm2, %v2229_v9, 0.0 }
 0x47a   :  { %v1965_v53 = vrot.slane %v1964_v26, 4  ;;  %v1992_v2 = vadd.f32 %v1991_v25, %v1990_v39  ;;  %v1972_v3 = vsel %vm379_vm2, %v1963_v56, 0.0  ;;  %v1999_v55 = vadd.f32 %v1998_v24, %v1997_v16 }
 0x47b   :  { %v1973_v14 = vadd.f32 %v1972_v3, %v1971_v21  ;;  %v2232_v43 = vadd.f32 %v2231_v41, %v2230_v38  ;;  %v2259_v17 = vrot.slane %v2258_v18, 2  ;;  %v2239_v19 = vadd.f32 %v2238_v30, %v2237_v29 }
 0x47c   :  { %v1966_v32 = vadd.f32 %v1965_v53, %v1964_v26  ;;  %v1993_v0 = vrot.slane %v1992_v2, 2  ;;  %v2000_v45 = vrot.slane %v1999_v55, 4  ;;  %v2264_v1 = vsel %vm379_vm2, %v5969_v63, 0.0 }
 0x47d   :  { %v1974_v59 = vrot.slane %v1973_v14, 4  ;;  %v2233_v62 = vrot.slane %v2232_v43, 2  ;;  %v2260_v33 = vadd.f32 %v2259_v17, %v2258_v18  ;;  %v2240_v13 = vrot.slane %v2239_v19, 4 }
 0x47e   :  { %v1967_v9 = vrot.slane %v1966_v32, 2  ;;  %v1994_v23 = vadd.f32 %v1993_v0, %v1992_v2  ;;  %v2001_v39 = vadd.f32 %v2000_v45, %v1999_v55  ;;  %v2265_v25 = vadd.f32 %v2264_v1, %v2263_v52 }
 0x47f   :  { %v1975_v56 = vadd.f32 %v1974_v59, %v1973_v14  ;;  %v2234_v24 = vadd.f32 %v2233_v62, %v2232_v43  ;;  %v2261_v21 = vrot.slane %v2260_v33, 1  ;;  %v2241_v38 = vadd.f32 %v2240_v13, %v2239_v19 }
 0x480   :  { %v1968_v16 = vadd.f32 %v1967_v9, %v1966_v32  ;;  %v1995_v29 = vrot.slane %v1994_v23, 1  ;;  %v2002_v26 = vrot.slane %v2001_v39, 2  ;;  %v2266_v41 = vrot.slane %v2265_v25, 4 }
 0x481   :  { %v1976_v30 = vrot.slane %v1975_v56, 2  ;;  %v2235_v53 = vrot.slane %v2234_v24, 1  ;;  %v2262_v3 = vadd.f32 %v2261_v21, %v2260_v33  ;;  %v2242_v20 = vrot.slane %v2241_v38, 2 }
 0x482   :  { %v1969_v12 = vrot.slane %v1968_v16, 1  ;;  %v1996_v5 = vadd.f32 %v1995_v29, %v1994_v23  ;;  %v2003_v17 = vadd.f32 %v2002_v26, %v2001_v39  ;;  %v2267_v18 = vadd.f32 %v2266_v41, %v2265_v25 }
 0x483   :  { %v1977_v60 = vadd.f32 %v1976_v30, %v1975_v56  ;;  %v2236_v2 = vadd.f32 %v2235_v53, %v2234_v24  ;;  %v2272_v45 = vmul.f32 0.125, %v2262_v3  ;;  %v2243_v55 = vadd.f32 %v2242_v20, %v2241_v38 }
 0x484   :  { %v1970_v52 = vadd.f32 %v1969_v12, %v1968_v16  ;;  %v2006_v62 = vmul.f32 0.125, %v1996_v5  ;;  %v2004_v43 = vrot.slane %v2003_v17, 1  ;;  %v2268_v19 = vrot.slane %v2267_v18, 2 }
 0x485   :  { %v1978_v14 = vrot.slane %v1977_v60, 1  ;;  %v2246_v32 = vmul.f32 0.125, %v2236_v2  ;;  %v2274_v0 = vmul.f32 0.0, %v2272_v45  ;;  %v2244_v1 = vrot.slane %v2243_v55, 1 }
 0x486   :  { %v1980_v59 = vmul.f32 0.125, %v1970_v52  ;;  %v2008_v13 = vmul.f32 0.0, %v2006_v62  ;;  %v2005_v33 = vadd.f32 %v2004_v43, %v2003_v17  ;;  %v2269_v9 = vadd.f32 %v2268_v19, %v2267_v18 }
 0x487   :  { %v1979_v21 = vadd.f32 %v1978_v14, %v1977_v60  ;;  %v2250_v23 = vmul.f32 0.0, %v2246_v32  ;;  %v2278_v39 = vadd.f32 %v2274_v0, %v2246_v32  ;;  %v2245_v25 = vadd.f32 %v2244_v1, %v2243_v55 }
 0x488   :  { %v1984_v56 = vmul.f32 0.0, %v1980_v59  ;;  %v2012_v24 = vadd.f32 %v2008_v13, %v1980_v59  ;;  %v2007_v29 = vmul.f32 0.125, %v2005_v33  ;;  %v2270_v20 = vrot.slane %v2269_v9, 1 }
 0x489   :  { %v1981_v12 = vmul.f32 0.125, %v1979_v21  ;;  %v2280_v5 = vadd.f32 %v2272_v45, %v2250_v23  ;;  %v5984_v38 = vsub.f32 %v5939_v6, %v2278_v39  ;;  %v2247_v16 = vmul.f32 0.125, %v2245_v25 }
 0x48a   :  { %v2014_v26 = vadd.f32 %v2006_v62, %v1984_v56  ;;  %v2016_v41 = vadd.f32 1e-05, %v2012_v24  ;;  %v2009_v30 = vmul.f32 0.0, %v2007_v29  ;;  %v2271_v53 = vadd.f32 %v2270_v20, %v2269_v9 }
 0x48b   :  { %v1985_v3 = vmul.f32 0.0, %v1981_v12  ;;  %v5987_v60 = vsub.f32 %v5958_v47, %v2280_v5  ;;  %v2286_v17 = vmul.f32 %v5984_v38, %v5984_v38  ;;  %v2251_v18 = vmul.f32 0.0, %v2247_v16 }
 0x48c   :  { %v2018_v2 = vadd.f32 1e-05, %v2014_v26  ;;  %4606 = vrsqrt.f32 %v2016_v41  ;;  %v2013_v55 = vadd.f32 %v2009_v30, %v1981_v12  ;;  %v2273_v45 = vmul.f32 0.125, %v2271_v53 }
 0x48d   :  { %v2015_v52 = vadd.f32 %v2007_v29, %v1985_v3  ;;  %v2288_v6 = vmul.f32 %v5987_v60, %v5987_v60  ;;  %v2316_v62 = vmul.f32 0.0, %v2286_v17  ;;  %v2031_v1 = vrot.slane %v5903_v54, %v5563_v27 }
 0x48e   :  { %4608 = vrsqrt.f32 %v2018_v2  ;;  %v2017_v43 = vadd.f32 1e-05, %v2013_v55  ;;  %v2275_v19 = vmul.f32 0.0, %v2273_v45  ;;  %v2281_v14 = vadd.f32 %v2273_v45, %v2251_v18 }
 0x48f   :  { %v2019_v32 = vadd.f32 1e-05, %v2015_v52  ;;  %v2292_v47 = vmul.f32 0.0, %v2288_v6  ;;  %v2320_v0 = vadd.f32 %v2316_v62, %v2288_v6  ;;  %v2041_v56 = vrot.slane %v2031_v1, %v5563_v27 }
 0x490   :  { %4610 = vrsqrt.f32 %v2017_v43  ;;  %v2279_v59 = vadd.f32 %v2275_v19, %v2247_v16  ;;  %v5996_v13 = vsub.f32 %v5969_v63, %v2281_v14  ;;  %v2035_v63 = vrot.slane %v5903_v54, %v5566_v42 }
 0x491   :  { %4612 = vrsqrt.f32 %v2019_v32  ;;  %v2294_v33 = vadd.f32 %v2292_v47, %v2286_v17  ;;  %v2321_v9 = vrot.slane %v2320_v0, 4  ;;  %v2057_v45 = vrot.slane %v5903_v54, %v5572_v40 }
 0x492   :  { %v5999_v21 = vsub.f32 %v5945_v51, %v2279_v59  ;;  %v2289_v23 = vmul.f32 %v5996_v13, %v5996_v13  ;;  %v2053_v51 = vrot.slane %v5903_v54, %v5569_v36  ;;  %v2045_v14 = vrot.slane %v2035_v63, %v5563_v27 }
 0x493   :  { %v2295_v39 = vrot.slane %v2294_v33, 4  ;;  %v2322_v25 = vadd.f32 %v2321_v9, %v2320_v0 }
 0x494   :  { %v2287_v24 = vmul.f32 %v5999_v21, %v5999_v21  ;;  %v2293_v29 = vmul.f32 0.0, %v2289_v23  ;;  %v2328_v30 = vsel %vm379_vm2, %v2289_v23, 0.0  ;;  %v2063_v47 = vrot.slane %v2053_v51, %v5569_v36 }
 0x495   :  { %v2296_v20 = vadd.f32 %v2295_v39, %v2294_v33  ;;  %v2323_v12 = vrot.slane %v2322_v25, 2 }
 0x496   :  { %v4607_v5 = vpop.eup %4606  ;;  %v2301_v16 = vsel %vm379_vm2, %v2287_v24, 0.0  ;;  %v2302_v26 = vsel %vm379_vm2, %v2293_v29, 0.0  ;;  %v2317_v41 = vmul.f32 0.0, %v2287_v24 }
 0x497   :  { %v2297_v53 = vrot.slane %v2296_v20, 2  ;;  %v2324_v3 = vadd.f32 %v2323_v12, %v2322_v25  ;;  %v2303_v17 = vadd.f32 %v2302_v26, %v2301_v16  ;;  %v2024_v18 = vmul.f32 %v4607_v5, %v5942_v58 }
 0x498   :  { %v4609_v2 = vpop.eup %4608  ;;  %v2327_v55 = vsel %vm379_vm2, %v2317_v41, 0.0 }
 0x499   :  { %v2026_v52 = vmul.f32 %v4609_v2, %v5948_v34  ;;  %v2298_v6 = vadd.f32 %v2297_v53, %v2296_v20  ;;  %v2325_v62 = vrot.slane %v2324_v3, 1  ;;  %v2304_v43 = vrot.slane %v2303_v17, 4 }
 0x49a   :  { %v4611_v19 = vpop.eup %4610  ;;  %v2329_v32 = vadd.f32 %v2328_v30, %v2327_v55  ;;  %v2046_v33 = vmul.f32 %v2041_v56, %v2024_v18  ;;  %v2067_v34 = vrot.slane %v2057_v45, %v5569_v36 }
 0x49b   :  { %v4613_v0 = vpop.eup %4612  ;;  %v2299_v1 = vrot.slane %v2298_v6, 1  ;;  %v2326_v58 = vadd.f32 %v2325_v62, %v2324_v3  ;;  %v2305_v59 = vadd.f32 %v2304_v43, %v2303_v17  ;;  %v2025_v54 = vmul.f32 %v4611_v19, %v5953_v4 }
 0x49c   :  { %v2027_v9 = vmul.f32 %v4613_v0, %v5963_v49  ;;  %v2330_v23 = vrot.slane %v2329_v32, 4  ;;  %v2048_v29 = vmul.f32 %v2041_v56, %v2026_v52  ;;  %v6023_v26 = vadd.f32 %v2063_v47, %v2046_v33 }
 0x49d   :  { %v2300_v39 = vadd.f32 %v2299_v1, %v2298_v6  ;;  %v2336_v25 = vmul.f32 0.125, %v2326_v58  ;;  %v2306_v24 = vrot.slane %v2305_v59, 2  ;;  %v2047_v12 = vmul.f32 %v2045_v14, %v2025_v54 }
 0x49e   :  { %v2049_v63 = vmul.f32 %v2045_v14, %v2027_v9  ;;  %v2331_v20 = vadd.f32 %v2330_v23, %v2329_v32  ;;  %v6031_v18 = vadd.f32 %v2063_v47, %v2048_v29  ;;  %v2402_v6 = vmul.f32 %v6023_v26, %v6023_v26 }
 0x49f   :  { %v2310_v51 = vmul.f32 0.125, %v2300_v39  ;;  %v2338_v5 = vmul.f32 0.0, %v2336_v25  ;;  %v2307_v16 = vadd.f32 %v2306_v24, %v2305_v59  ;;  %v6025_v30 = vadd.f32 %v2067_v34, %v2047_v12 }
 0x4a0   :  { %v2332_v41 = vrot.slane %v2331_v20, 2  ;;  %v6027_v49 = vadd.f32 %v2067_v34, %v2049_v63  ;;  %v3057_v1 = vmul.f32 %v5761_v8, %v5761_v8  ;;  %v2404_v59 = vmul.f32 %v6031_v18, %v6031_v18 }
 0x4a1   :  { %v2314_v4 = vmul.f32 0.0, %v2310_v51  ;;  %v2342_v53 = vadd.f32 %v2338_v5, %v2310_v51  ;;  %v2308_v3 = vrot.slane %v2307_v16, 1  ;;  %v2403_v56 = vmul.f32 %v6025_v30, %v6025_v30 }
 0x4a2   :  { %v2333_v17 = vadd.f32 %v2332_v41, %v2331_v20  ;;  %v2405_v2 = vmul.f32 %v6027_v49, %v6027_v49  ;;  %v3058_v34 = vsel %vm379_vm2, %v3057_v1, 0.0  ;;  %v3056_v39 = vmul.f32 %v5763_v11, %v5763_v11 }
 0x4a3   :  { %v2344_v55 = vadd.f32 %v2336_v25, %v2314_v4  ;;  %v2346_v45 = vadd.f32 1e-05, %v2342_v53  ;;  %v2309_v52 = vadd.f32 %v2308_v3, %v2307_v16  ;;  %v2406_v43 = vsel %vm379_vm2, %v2403_v56, 0.0 }
 0x4a4   :  { %v2334_v62 = vrot.slane %v2333_v17, 1  ;;  %v2407_v32 = vadd.f32 %v2406_v43, %v2402_v6  ;;  %v2410_v47 = vsel %vm379_vm2, %v2405_v2, 0.0  ;;  %v3059_v29 = vadd.f32 %v3058_v34, %v3056_v39 }
 0x4a5   :  { %v2348_v19 = vadd.f32 1e-05, %v2344_v55  ;;  %4614 = vrsqrt.f32 %v2346_v45  ;;  %v2311_v14 = vmul.f32 0.125, %v2309_v52  ;;  %v2411_v9 = vadd.f32 %v2410_v47, %v2404_v59 }
 0x4a6   :  { %v2335_v0 = vadd.f32 %v2334_v62, %v2333_v17  ;;  %2408 = vadd.xlane.f32.xlu1 %v2407_v32  ;;  %v2361_v16 = vrot.slane %v5931_v46, %v5563_v27  ;;  %v2365_v41 = vrot.slane %v5931_v46, %v5566_v42  ;;  %v2383_v53 = vrot.slane %v5931_v46, %v5569_v36 }
 0x4a7   :  { %4616 = vrsqrt.f32 %v2348_v19  ;;  %v2315_v58 = vmul.f32 0.0, %v2311_v14  ;;  %v2387_v3 = vrot.slane %v5931_v46, %v5572_v40 }
 0x4a8   :  { %v2337_v33 = vmul.f32 0.125, %v2335_v0  ;;  %v2371_v4 = vrot.slane %v2361_v16, %v5563_v27  ;;  %v2375_v56 = vrot.slane %v2365_v41, %v5563_v27  ;;  %v2393_v55 = vrot.slane %v2383_v53, %v5569_v36 }
 0x4a9   :  { %v2397_v52 = vrot.slane %v2387_v3, %v5569_v36 }
 0x4aa   :  { %v2339_v23 = vmul.f32 0.0, %v2337_v33  ;;  %v2345_v54 = vadd.f32 %v2337_v33, %v2315_v58  ;;  %2412 = vadd.xlane.f32.xlu1 %v2411_v9  ;;  %v3051_v58 = vmul.f32 %v5801_v7, %v5801_v7 }
 0x4ac   :  { %v2343_v25 = vadd.f32 %v2339_v23, %v2311_v14  ;;  %v2349_v24 = vadd.f32 1e-05, %v2345_v54  ;;  %v3052_v9 = vsel %vm379_vm2, %v3051_v58, 0.0  ;;  %v3050_v23 = vmul.f32 %v5804_v15, %v5804_v15 }
 0x4ae   :  { %v2347_v63 = vadd.f32 1e-05, %v2343_v25  ;;  %4618 = vrsqrt.f32 %v2349_v24  ;;  %3060 = vadd.xlane.f32.xlu1 %v3059_v29  ;;  %v3053_v54 = vadd.f32 %v3052_v9, %v3050_v23 }
 0x4af   :  { %v4615_v20 = vpop.eup %4614 }
 0x4b0   :  { %4620 = vrsqrt.f32 %v2347_v63  ;;  %v2354_v12 = vmul.f32 %v4615_v20, %v5984_v38 }
 0x4b1   :  { %v4617_v51 = vpop.eup %4616 }
 0x4b2   :  { %v2356_v5 = vmul.f32 %v4617_v51, %v5987_v60  ;;  %v2376_v2 = vmul.f32 %v2371_v4, %v2354_v12 }
 0x4b4   :  { %v2398_v19 = vadd.f32 %v2393_v55, %v2376_v2  ;;  %v2378_v14 = vmul.f32 %v2371_v4, %v2356_v5 }
 0x4b6   :  { %v2400_v0 = vadd.f32 %v2393_v55, %v2378_v14 }
 0x4b8   :  { %v4619_v17 = vpop.eup %4618  ;;  %v2424_v59 = vmul.f32 %v2400_v0, %v2400_v0 }
 0x4b9   :  { %v2357_v38 = vmul.f32 %v4619_v17, %v5996_v13  ;;  %v2422_v13 = vmul.f32 %v2398_v19, %v2398_v19 }
 0x4ba   :  { %v4621_v60 = vpop.eup %4620 }
 0x4bb   :  { %v2355_v45 = vmul.f32 %v4621_v60, %v5999_v21  ;;  %v2379_v6 = vmul.f32 %v2375_v56, %v2357_v38 }
 0x4bd   :  { %v2377_v62 = vmul.f32 %v2375_v56, %v2355_v45  ;;  %v2401_v43 = vadd.f32 %v2397_v52, %v2379_v6 }
 0x4bf   :  { %v2399_v32 = vadd.f32 %v2397_v52, %v2377_v62  ;;  %v2425_v46 = vmul.f32 %v2401_v43, %v2401_v43 }
 0x4c1   :  { %4036 = vmatprep.mubr.msk.f32.mxu0 %vm379_vm2, %v2399_v32  ;;  %v2423_v40 = vmul.f32 %v2399_v32, %v2399_v32  ;;  %v2430_v1 = vsel %vm379_vm2, %v2425_v46, 0.0 }
 0x4c2   :  { %2785 = vmatmul.mubr.f32.vlgmr.msra.gmra.mrb[14].mxu0 %v2398_v19  ;;  %v2431_v33 = vadd.f32 %v2430_v1, %v2424_v59  ;;  %v6528_v1 = vld [vmem:[#allocation52_spill] sm:$0xff] }
 0x4c3   :  { %4037 = vmatprep.mubr.msk.f32.mxu0 %vm379_vm2, %v2401_v43  ;;  %v2426_v47 = vsel %vm379_vm2, %v2423_v40, 0.0 }
 0x4c4   :  { %v2427_v21 = vadd.f32 %v2426_v47, %v2422_v13  ;;  %v6526_v47 = vld [vmem:[#allocation50_spill] sm:$0xff] }
 0x4c6   :  { %2428 = vadd.xlane.f32.xlu0 %v2427_v21  ;;  %2791 = vmatmul.mubr.f32.gmra.mrb[16].mxu0 %v2400_v0  ;;  %v6527_v21 = vld [vmem:[#allocation51_spill] sm:$0xff] }
 0x4ca   :  { %2432 = vadd.xlane.f32.xlu0 %v2431_v33 }
 0x4ce   :  { %3054 = vadd.xlane.f32.xlu0 %v3053_v54 }
 0x533   :  { %v2409_v34 = vpop.xlane.xlu1 %2408 }
 0x534   :  { %v2414_v39 = vmax.f32 %v2409_v34, 1e-30  ;;  %v6529_v34 = vlaneseq }
 0x536   :  { %4622 = vrsqrt.f32 %v2414_v39  ;;  %v6142_v39 = vand.u32 127, %v6529_v34 }
 0x537   :  { %v2413_v25 = vpop.xlane.xlu1 %2412 }
 0x538   :  { %v2415_v24 = vmax.f32 %v2413_v25, 1e-30  ;;  %vm1718_vm9 = vcmp.lt.s32.totalorder %v6142_v39, 6  ;;  %vm3959_vm15 = vcmp.eq.s32.totalorder %v6142_v39, 1  ;;  %vm3955_vm0 = vcmp.eq.s32.totalorder %v6142_v39, 0 }
 0x53a   :  { %4624 = vrsqrt.f32 %v2415_v24 }
 0x53b   :  { %v3061_v3 = vpop.xlane.xlu1 %3060 }
 0x540   :  { %v4623_v29 = vpop.eup %4622 }
 0x541   :  { %v6072_v63 = vmul.f32 %v4623_v29, %v6025_v30  ;;  %v6077_v12 = vmul.f32 %v4623_v29, %v6023_v26 }
 0x543   :  { %4032 = vmatprep.mubr.msk.f32.mxu1 %vm379_vm2, %v6072_v63 }
 0x544   :  { %v4625_v20 = vpop.eup %4624 }
 0x545   :  { %v6080_v51 = vmul.f32 %v4625_v20, %v6031_v18 }
 0x547   :  { %v4526_v5 = vpack.c.bf16 %v6080_v51, %v6077_v12 }
 0x553   :  { %v2429_v16 = vpop.xlane.xlu0 %2428 }
 0x554   :  { %v2434_v41 = vmax.f32 %v2429_v16, 1e-30 }
 0x556   :  { %4626 = vrsqrt.f32 %v2434_v41 }
 0x557   :  { %v2433_v4 = vpop.xlane.xlu0 %2432 }
 0x558   :  { %v2435_v53 = vmax.f32 %v2433_v4, 1e-30 }
 0x55a   :  { %4628 = vrsqrt.f32 %v2435_v53 }
 0x55b   :  { %v3055_v17 = vpop.xlane.xlu0 %3054 }
 0x55c   :  { %v3062_v38 = vadd.f32 %v3061_v3, %v3055_v17 }
 0x55e   :  { %v3063_v56 = vmax.f32 %v3062_v38, 1e-30 }
 0x560   :  { %4630 = vrsqrt.f32 %v3063_v56  ;;  %v4627_v60 = vpop.eup %4626  ;;  %v2583_v56 = vld [vmem:[#allocation22] sm:$0x3] }
 0x561   :  { %v2439_v55 = vmul.f32 %v4627_v60, %v2399_v32  ;;  %v2438_v52 = vmul.f32 %v4627_v60, %v2398_v19  ;;  %v2421_v19 = vmul.f32 %v4625_v20, %v6027_v49  ;;  %v2592_v60 = vrot.slane %v2583_v56, %v5563_v27 }
 0x563   :  { %v4523_v58 = vpack.c.bf16 %v2421_v19, %v6072_v63  ;;  %v6531_v63 = vmov 0.0  }
 0x564   :  { %v4629_v2 = vpop.eup %4628 }
 0x565   :  { %v2441_v45 = vmul.f32 %v4629_v2, %v2401_v43  ;;  %v2440_v6 = vmul.f32 %v4629_v2, %v2400_v0  ;;  %v6525_v0 = vld [vmem:[#allocation49_spill] sm:$0xff]  ;;  %v6532_v2 = vld [vmem:[#allocation36_spill] sm:$0xff] }
 0x567   :  { %v4417_v14 = vpack.c.bf16 %v2441_v45, %v2439_v55  ;;  %v4420_v40 = vpack.c.bf16 %v2440_v6, %v2438_v52  ;;  %v2588_v55 = vrot.slane %v2583_v56, %v6532_v2 }
 0x569   :  { %4419 = vmatprep.subr.msk.bf16.mxu1 %vm6086_vm3, %v4417_v14 }
 0x56a   :  { %v4631_v46 = vpop.eup %4630  ;;  %4421 = vmatpush1.bf16.xpose.msra.mxu1 %v4420_v40 }
 0x56b   :  { %v3068_v13 = vmul.f32 %v4631_v46, %v5761_v8  ;;  %v3067_v32 = vmul.f32 %v4631_v46, %v5763_v11  ;;  %4423 = vmatprep.subr.bf16.mxu1 %v5825_v10  ;;  %v3066_v43 = vmul.f32 %v4631_v46, %v5801_v7  ;;  %v3065_v8 = vmul.f32 %v4631_v46, %v5804_v15  ;;  %v6514_v11 = vld [vmem:[#allocation38_spill] sm:$0xff]  ;;  %v6515_v7 = vld [vmem:[#allocation39_spill] sm:$0xff]  ;;  %v6516_v15 = vld [vmem:[#allocation40_spill] sm:$0xff] }
 0x56c   :  { %v6517_v10 = vld [vmem:[#allocation41_spill] sm:$0xff] }
 0x56d   :  { %4049 = vmatprep.subr.msk.mxu0 %vm379_vm2, %v3068_v13  ;;  %4050 = vmatprep.mubr.msk.f32.mxu0 %vm379_vm2, %v3068_v13 }
 0x56e   :  { %3073 = vmatpush1.xpose.msra.mxu0 %v3067_v32 }
 0x56f   :  { %4051 = vmatprep.subr.msk.mxu0 %vm379_vm2, %v3066_v43 }
 0x571   :  { %2519 = vmatmul.mubr.f32.vlgmr.msra.gmra.mrb[14].mxu1 %v6077_v12  ;;  %3137 = vmatmul.mubr.f32.vlgmr.msra.gmra.mrb[18].mxu0 %v3067_v32 }
 0x572   :  { %4033 = vmatprep.mubr.msk.f32.mxu1 %vm379_vm2, %v2421_v19  ;;  %4425 = vmatpush1.bf16.msra.mxu1 %v5827_v61  ;;  %v6518_v61 = vld [vmem:[#allocation42_spill] sm:$0xff] }
 0x573   :  { %3146 = vmatpush1.xpose.msra.mxu0 %v3065_v8  ;;  %4052 = vmatprep.mubr.msk.f32.mxu0 %vm379_vm2, %v3066_v43 }
 0x574   :  { %4427 = vmatprep.subr.bf16.mxu1 %v5831_v22  ;;  %v6519_v22 = vld [vmem:[#allocation43_spill] sm:$0xff] }
 0x575   :  { %2524 = vmatmul.mubr.f32.gmra.mrb[16].mxu1 %v6080_v51 }
 0x576   :  { %4429 = vmatpush1.bf16.msra.mxu1 %v5833_v31  ;;  %4034 = vmatprep.mubr.msk.f32.mxu1 %vm379_vm2, %v6025_v30  ;;  %v6520_v31 = vld [vmem:[#allocation44_spill] sm:$0xff] }
 0x577   :  { %4431 = vmatprep.subr.bf16.mxu1 %v5837_v44  ;;  %v6521_v44 = vld [vmem:[#allocation45_spill] sm:$0xff] }
 0x579   :  { %3210 = vmatmul.mubr.f32.vlgmr.msra.gmra.mrb[18].mxu0 %v3065_v8 }
 0x57a   :  { %4433 = vmatpush1.bf16.msra.mxu1 %v5839_v28 }
 0x57b   :  { %4435 = vmatprep.subr.bf16.mxu1 %v5843_v48  ;;  %v6522_v48 = vld [vmem:[#allocation46_spill] sm:$0xff] }
 0x57e   :  { %4437 = vmatpush1.bf16.msra.mxu1 %v5845_v50 }
 0x57f   :  { %4439 = vmatprep.subr.bf16.mxu1 %v5849_v37  ;;  %v6523_v37 = vld [vmem:[#allocation47_spill] sm:$0xff] }
 0x582   :  { %4441 = vmatpush1.bf16.msra.mxu1 %v5851_v57 }
 0x583   :  { %4443 = vmatprep.subr.bf16.mxu1 %v5855_v35  ;;  %v6524_v35 = vld [vmem:[#allocation48_spill] sm:$0xff] }
 0x586   :  { %4445 = vmatpush1.bf16.msra.mxu1 %v6514_v11 }
 0x587   :  { %4447 = vmatprep.subr.bf16.mxu1 %v6515_v7 }
 0x58a   :  { %4449 = vmatpush1.bf16.msra.mxu1 %v6516_v15 }
 0x58b   :  { %4451 = vmatprep.subr.bf16.mxu1 %v6517_v10 }
 0x58e   :  { %4453 = vmatpush1.bf16.msra.mxu1 %v6518_v61 }
 0x58f   :  { %4455 = vmatprep.subr.bf16.mxu1 %v6519_v22 }
 0x592   :  { %4457 = vmatpush1.bf16.msra.mxu1 %v6520_v31 }
 0x593   :  { %4459 = vmatprep.subr.bf16.mxu1 %v6521_v44 }
 0x595   :  { %v2786_v28 = vpop.f32.mrb[14].mxu0 }
 0x596   :  { %4461 = vmatpush1.bf16.msra.mxu1 %v6522_v48  ;;  %v2788_v50 = vpop.f32.mrb[15].mxu0  ;;  %v2787_v52 = vadd.f32 %v2786_v28, %v2588_v55 }
 0x597   :  { %4463 = vmatprep.subr.bf16.mxu1 %v6523_v37  ;;  %v2789_v45 = vadd.f32 %v2788_v50, %v2592_v60 }
 0x599   :  { %v2792_v57 = vpop.f32.mrb[16].mxu0  ;;  %v2798_v6 = vmul.f32 0.5, %v2789_v45 }
 0x59a   :  { %4465 = vmatpush1.bf16.msra.mxu1 %v6524_v35  ;;  %v2794_v30 = vpop.f32.mrb[17].mxu0 }
 0x59b   :  { %4467 = vmatprep.subr.bf16.mxu1 %v6525_v0  ;;  %v2795_v62 = vadd.f32 %v2794_v30, %v2592_v60 }
 0x59d   :  { %v2800_v46 = vmul.f32 0.5, %v2795_v62 }
 0x59e   :  { %4469 = vmatpush1.bf16.msra.mxu1 %v6526_v47 }
 0x59f   :  { %2649 = vmatprep.subr.mxu1 %v6527_v21 }
 0x5a2   :  { %2650 = vmatpush1.msra.mxu1 %v6528_v1 }
 0x5a3   :  { %2666 = vmatmul.mubr.f32.vlgmr.msra.gmra.mrb[18].mxu1 %v6023_v26  ;;  %4520 = vmatprep.subr.msk.bf16.mxu1 %vm6086_vm3, %v4417_v14  ;;  %v2797_v14 = vmul.f32 0.5, %v2787_v52 }
 0x5a4   :  { %4035 = vmatprep.mubr.msk.f32.mxu1 %vm379_vm2, %v6027_v49  ;;  %v6530_v49 = vld [vmem:[#allocation35_spill] sm:$0xff] }
 0x5a5   :  { %v359_v25 = vadd.s32 8, %v6530_v49  ;;  %vm3013_vm4 = vcmp.eq.s32.totalorder %v6530_v49, %v6142_v39 }
 0x5a6   :  { %v4046_v20 = vsel %vm3013_vm4, 1.0, %v6531_v63 }
 0x5a7   :  { %2672 = vmatmul.mubr.f32.gmra.mrb[20].mxu1 %v6031_v18  ;;  %vm3014_vm5 = vcmp.eq.s32.totalorder %v359_v25, %v6142_v39 }
 0x5a8   :  { %v4047_v16 = vsel %vm3014_vm5, 1.0, %v6531_v63 }
 0x5a9   :  { %4522 = vmatpush1.bf16.xpose.msra.mxu1 %v4420_v40  ;;  %v2793_v40 = vadd.f32 %v2792_v57, %v2588_v55 }
 0x5aa   :  { %4525 = vmatprep.subr.msk.bf16.mxu1 %vm6086_vm3, %v4523_v58 }
 0x5ab   :  { %v2799_v11 = vmul.f32 0.5, %v2793_v40 }
 0x644   :  { %v2520_v59 = vpop.f32.mrb[14].mxu1 }
 0x645   :  { %v2529_v33 = vmul.f32 1.442695, %v2520_v59  ;;  %v2522_v9 = vpop.f32.mrb[15].mxu1 }
 0x647   :  { %4632 = vpow2.f32 %v2529_v33 }
 0x648   :  { %v2525_v23 = vpop.f32.mrb[16].mxu1 }
 0x649   :  { %v2531_v26 = vmul.f32 1.442695, %v2525_v23  ;;  %v2527_v54 = vpop.f32.mrb[17].mxu1 }
 0x64b   :  { %4634 = vpow2.f32 %v2531_v26 }
 0x64c   :  { %v6145_v18 = vpop.f32.mrb[18].mxu0  ;;  %4636 = vtanh.f32 %v2798_v6 }
 0x64d   :  { %v3213_v24 = vpop.f32.mrb[19].mxu0  ;;  %4638 = vtanh.f32 %v2797_v14 }
 0x64e   :  { %4640 = vtanh.f32 %v2800_v46 }
 0x651   :  { %v6150_v29 = vpop.eup %4632 }
 0x652   :  { %v3029_v41 = vmul.f32 %v6150_v29, %v4046_v20 }
 0x654   :  { %v3031_v3 = vsel %vm3019_vm6, %v3029_v41, 0.0 }
 0x655   :  { %v6155_v4 = vpop.eup %4634 }
 0x656   :  { %v3030_v53 = vmul.f32 %v6155_v4, %v4047_v16  ;;  %v4637_v28 = vpop.eup %4636 }
 0x657   :  { %v4639_v48 = vpop.eup %4638  ;;  %v2806_v50 = vadd.f32 1.0, %v4637_v28 }
 0x658   :  { %v3032_v17 = vsel %vm3019_vm6, %v3030_v53, 0.0  ;;  %v4641_v37 = vpop.eup %4640  ;;  %v2805_v58 = vadd.f32 1.0, %v4639_v48 }
 0x659   :  { %v6160_v38 = vadd.f32 %v3032_v17, %v3031_v3  ;;  %v6164_v0 = vmul.f32 0.5, %v2806_v50  ;;  %v2808_v47 = vadd.f32 1.0, %v4641_v37 }
 0x65a   :  { %v6176_v20 = vmul.f32 0.5, %v2805_v58 }
 0x65b   :  { %v6170_v54 = vmul.f32 0.5, %v2808_v47  ;;  %v2814_v24 = vmul.f32 %v6164_v0, %v6164_v0 }
 0x65c   :  { %v2813_v62 = vmul.f32 %v6176_v20, %v6176_v20 }
 0x65d   :  { %v2816_v45 = vmul.f32 %v6170_v54, %v6170_v54 }
 0x676   :  { %v2667_v13 = vpop.f32.mrb[18].mxu1 }
 0x677   :  { %v2668_v32 = vadd.f32 %v2667_v13, %v2588_v55  ;;  %v2669_v43 = vpop.f32.mrb[19].mxu1  ;;  %v2821_v13 = vsel %vm379_vm2, %v2816_v45, 0.0 }
 0x678   :  { %v2670_v19 = vadd.f32 %v2669_v43, %v2592_v60 }
 0x679   :  { %v2678_v8 = vmul.f32 0.5, %v2668_v32 }
 0x67a   :  { %v2679_v7 = vmul.f32 0.5, %v2670_v19  ;;  %v2673_v15 = vpop.f32.mrb[20].mxu1  ;;  %v6199_v19 = vld [vmem:[%s6533_s25] sm:$0xff] }
 0x67b   :  { %4642 = vtanh.f32 %v2678_v8  ;;  %v2674_v10 = vadd.f32 %v2673_v15, %v2588_v55  ;;  %v2675_v61 = vpop.f32.mrb[21].mxu1  ;;  %v2817_v55 = vsel %vm379_vm2, %v2814_v24, 0.0  ;;  %v5084_v8 = vmov 1  }
 0x67c   :  { %4644 = vtanh.f32 %v2679_v7  ;;  %v2676_v22 = vadd.f32 %v2675_v61, %v2592_v60  ;;  %v2818_v46 = vadd.f32 %v2817_v55, %v2813_v62  ;;  %4565 = vset.pattern.permute.xlu1 %v5084_v8  ;;  %v5086_v7 = vmov 3  }
 0x67d   :  { %v2680_v31 = vmul.f32 0.5, %v2674_v10  ;;  %4646 = vtanh.f32 %v2799_v11  ;;  %v5085_v11 = vmov 2   ;;  %v5087_v15 = vmov 4  }
 0x67e   :  { %v2681_v44 = vmul.f32 0.5, %v2676_v22  ;;  %v5088_v10 = vmov 5   ;;  %v5089_v61 = vmov 0   ;;  %v3217_v51 = vsub.f32 1.0, %v6199_v19 }
 0x67f   :  { %4648 = vtanh.f32 %v2680_v31 }
 0x680   :  { %4650 = vtanh.f32 %v2681_v44 }
 0x685   :  { %v4643_v57 = vpop.eup %4642 }
 0x686   :  { %v4645_v35 = vpop.eup %4644  ;;  %v2686_v30 = vadd.f32 1.0, %v4643_v57 }
 0x687   :  { %v2687_v21 = vadd.f32 1.0, %v4645_v35  ;;  %v4647_v1 = vpop.eup %4646 }
 0x688   :  { %v6166_v59 = vmul.f32 0.5, %v2686_v30  ;;  %v2807_v16 = vadd.f32 1.0, %v4647_v1 }
 0x689   :  { %v4649_v33 = vpop.eup %4648  ;;  %v6168_v9 = vmul.f32 0.5, %v2687_v21 }
 0x68a   :  { %v4651_v23 = vpop.eup %4650  ;;  %v2688_v26 = vadd.f32 1.0, %v4649_v33  ;;  %v2694_v53 = vmul.f32 %v6166_v59, %v6166_v59  ;;  %v6186_v52 = vmul.f32 0.5, %v2807_v16 }
 0x68b   :  { %v2689_v34 = vadd.f32 1.0, %v4651_v23  ;;  %v2695_v25 = vmul.f32 %v6168_v9, %v6168_v9 }
 0x68c   :  { %v6178_v41 = vmul.f32 0.5, %v2688_v26  ;;  %v2815_v32 = vmul.f32 %v6186_v52, %v6186_v52 }
 0x68d   :  { %v2693_v3 = vmul.f32 0.5, %v2689_v34  ;;  %v2698_v17 = vsel %vm379_vm2, %v2695_v25, 0.0 }
 0x68e   :  { %v2699_v56 = vadd.f32 %v2698_v17, %v2694_v53  ;;  %v2696_v6 = vmul.f32 %v6178_v41, %v6178_v41  ;;  %v2822_v43 = vadd.f32 %v2821_v13, %v2815_v32 }
 0x68f   :  { %v2697_v60 = vmul.f32 %v2693_v3, %v2693_v3 }
 0x690   :  { %2700 = vadd.xlane.f32.xlu0 %v2699_v56 }
 0x691   :  { %v2702_v14 = vsel %vm379_vm2, %v2697_v60, 0.0 }
 0x692   :  { %v2703_v40 = vadd.f32 %v2702_v14, %v2696_v6  ;;  %v3215_v14 = vmul.f32 1.442695, %v6145_v18  ;;  %v3034_v18 = vrot.slane %v6160_v38, 4 }
 0x694   :  { %2704 = vadd.xlane.f32.xlu1 %v2703_v40  ;;  %2819 = vadd.xlane.f32.xlu0 %v2818_v46 }
 0x698   :  { %2823 = vadd.xlane.f32.xlu1 %v2822_v43 }
 0x6a9   :  { %3651 = vperm.xlu1 %4565, %v6199_v19  }
 0x6ad   :  { %4566 = vset.pattern.permute.xlu1 %v5085_v11 }
 0x6ae   :  { %3712 = vperm.xlu1 %4566, %v6199_v19  }
 0x6b2   :  { %4567 = vset.pattern.permute.xlu1 %v5086_v7 }
 0x6b3   :  { %3773 = vperm.xlu1 %4567, %v6199_v19  }
 0x6b7   :  { %4568 = vset.pattern.permute.xlu1 %v5087_v15 }
 0x6b8   :  { %3834 = vperm.xlu1 %4568, %v6199_v19  }
 0x6bc   :  { %4569 = vset.pattern.permute.xlu1 %v5088_v10 }
 0x6bd   :  { %3895 = vperm.xlu1 %4569, %v6199_v19  }
 0x6c1   :  { %3365 = vxpose.xlu0.b32.start.end [1/1] (short) %v6199_v19, 128  ;;  %4570 = vset.pattern.permute.xlu1 %v5089_v61 }
 0x6c2   :  { %3594 = vperm.xlu1 %4570, %v6199_v19  }
 0x6ea   :  { %4571 = vset.pattern.permute.xlu0 %v5089_v61 }
 0x71d   :  { %v2701_v22 = vpop.xlane.xlu0 %2700 }
 0x71e   :  { %v2706_v31 = vmax.f32 %v2701_v22, 1e-30 }
 0x720   :  { %4652 = vrsqrt.f32 %v2706_v31 }
 0x721   :  { %v2820_v44 = vpop.xlane.xlu0 %2819  ;;  %v2705_v28 = vpop.xlane.xlu1 %2704 }
 0x722   :  { %v2825_v48 = vmax.f32 %v2820_v44, 1e-30  ;;  %v2707_v50 = vmax.f32 %v2705_v28, 1e-30 }
 0x724   :  { %4654 = vrsqrt.f32 %v2825_v48 }
 0x725   :  { %4656 = vrsqrt.f32 %v2707_v50  ;;  %v2824_v37 = vpop.xlane.xlu1 %2823 }
 0x726   :  { %v2826_v57 = vmax.f32 %v2824_v37, 1e-30  ;;  %v3035_v37 = vadd.f32 %v3034_v18, %v6160_v38 }
 0x728   :  { %4658 = vrsqrt.f32 %v2826_v57 }
 0x729   :  { %v6248_v32 = vpop.permute.xlu1 %3651 }
 0x72a   :  { %v4653_v35 = vpop.eup %4652 }
 0x72b   :  { %v2711_v30 = vmul.f32 %v4653_v35, %v6168_v9  ;;  %v2710_v47 = vmul.f32 %v4653_v35, %v6166_v59 }
 0x72d   :  { %4040 = vmatprep.mubr.msk.f32.mxu1 %vm379_vm2, %v2711_v30  ;;  %v6252_v10 = vpop.permute.xlu1 %3712 }
 0x72e   :  { %v4655_v21 = vpop.eup %4654  ;;  %2904 = vmatmul.mubr.f32.vlgmr.msra.gmra.mrb[22].mxu1 %v2710_v47 }
 0x72f   :  { %v4657_v1 = vpop.eup %4656  ;;  %4527 = vmatpush1.bf16.xpose.msra.mxu1 %v4526_v5  ;;  %v2830_v9 = vmul.f32 %v4655_v21, %v6164_v0  ;;  %v2829_v59 = vmul.f32 %v4655_v21, %v6176_v20 }
 0x730   :  { %v2713_v58 = vmul.f32 %v4657_v1, %v2693_v3  ;;  %v2712_v33 = vmul.f32 %v4657_v1, %v6178_v41  ;;  %4093 = vmatprep.subr.mxu1 %v6531_v63 }
 0x732   :  { %4041 = vmatprep.mubr.msk.f32.mxu1 %vm379_vm2, %v2713_v58  ;;  %v4659_v23 = vpop.eup %4658  ;;  %v6257_v48 = vpop.permute.xlu1 %3773 }
 0x733   :  { %2909 = vmatmul.mubr.f32.gmra.mrb[24].mxu1 %v2712_v33  ;;  %v2832_v26 = vmul.f32 %v4659_v23, %v6170_v54  ;;  %v2831_v12 = vmul.f32 %v4659_v23, %v6186_v52 }
 0x734   :  { %4044 = vmatprep.mubr.msk.f32.mxu1 %vm379_vm2, %v2830_v9 }
 0x737   :  { %2991 = vmatmul.mubr.f32.vlgmr.msra.gmra.mrb[26].mxu1 %v2829_v59 }
 0x738   :  { %4045 = vmatprep.mubr.msk.f32.mxu1 %vm379_vm2, %v2832_v26  ;;  %4094 = vmatpush3.xpose.msra.mxu1 %v6199_v19  ;;  %v3036_v26 = vrot.slane %v3035_v37, 2 }
 0x739   :  { %4098 = vmatprep.subr.mxu1 %v6531_v63 }
 0x73b   :  { %2996 = vmatmul.mubr.f32.gmra.mrb[28].mxu1 %v2831_v12 }
 0x73c   :  { %4095 = vmatprep.mubr.msk.f32.mxu1 %vm5090_vm7, %v6531_v63 }
 0x73f   :  { %4096 = vmatmul.mubr.f32.vlgmr.msra.gmra.mrb[30].mxu1 %v3217_v51 }
 0x740   :  { %4099 = vmatpush3.xpose.msra.mxu1 %v3217_v51  ;;  %4100 = vmatprep.mubr.msk.f32.mxu1 %vm5090_vm7, %v6531_v63 }
 0x741   :  { %v6229_v5 = vpop.trf.xlu0 }
 0x742   :  { %v3397_v0 = vsub.f32 1.0, %v6229_v5 }
 0x744   :  { %4105 = vmatprep.mubr.msk.f32.mxu0 %vm3413_vm8, %v3397_v0 }
 0x745   :  { %v3382_v54 = vpop.trf.xlu0 }
 0x746   :  { %v3398_v47 = vsub.f32 1.0, %v3382_v54  ;;  %v6268_v54 = vpop.permute.xlu1 %3834 }
 0x747   :  { %4101 = vmatmul.mubr.f32.vlgmr.msra.gmra.mrb[30].mxu1 %v6199_v19 }
 0x749   :  { %v6233_v34 = vpop.trf.xlu0 }
 0x74a   :  { %v3399_v58 = vsub.f32 1.0, %v6233_v34 }
 0x74d   :  { %v6235_v25 = vpop.trf.xlu0 }
 0x74e   :  { %v3400_v38 = vsub.f32 1.0, %v6235_v25 }
 0x751   :  { %v6237_v24 = vpop.trf.xlu0 }
 0x752   :  { %v3401_v34 = vsub.f32 1.0, %v6237_v24 }
 0x755   :  { %v6239_v20 = vpop.trf.xlu0 }
 0x759   :  { %v6241_v41 = vpop.trf.xlu0 }
 0x75a   :  { %v3403_v25 = vsub.f32 1.0, %v6241_v41 }
 0x75d   :  { %v6243_v60 = vpop.trf.xlu0 }
 0x761   :  { %v6246_v46 = vpop.trf.xlu0 }
 0x765   :  { %v6250_v15 = vpop.trf.xlu0 }
 0x769   :  { %v6255_v31 = vpop.trf.xlu0 }
 0x76d   :  { %v6266_v51 = vpop.trf.xlu0 }
 0x771   :  { %v3393_v24 = vpop.trf.xlu0 }
 0x801   :  { %v2905_v16 = vpop.f32.mrb[22].mxu1 }
 0x802   :  { %v2907_v53 = vpop.f32.mrb[23].mxu1  ;;  %v2914_v3 = vsub.f32 1.0, %v2905_v16 }
 0x803   :  { %v3037_v53 = vadd.f32 %v3036_v26, %v3035_v37 }
 0x804   :  { %v2916_v55 = vmul.f32 1.442695, %v2914_v3  ;;  %v3402_v3 = vsub.f32 1.0, %v6239_v20  ;;  %v3778_v20 = vsub.s32 3, %v6530_v49 }
 0x806   :  { %v2910_v17 = vpop.f32.mrb[24].mxu1  ;;  %4660 = vpow2.f32 %v2916_v55  ;;  %v3779_v18 = vrot.slane %v6229_v5, %v3778_v20 }
 0x807   :  { %v2912_v56 = vpop.f32.mrb[25].mxu1  ;;  %v2915_v45 = vsub.f32 1.0, %v2910_v17 }
 0x809   :  { %v2918_v13 = vmul.f32 1.442695, %v2915_v45  ;;  %v3896_v45 = vpop.permute.xlu1 %3895 }
 0x80a   :  { %v2992_v52 = vpop.f32.mrb[26].mxu1 }
 0x80b   :  { %v3001_v6 = vsub.f32 1.0, %v2992_v52  ;;  %v2994_v62 = vpop.f32.mrb[27].mxu1  ;;  %v3038_v52 = vrot.slane %v3037_v53, 1 }
 0x80c   :  { %v3405_v62 = vsub.f32 1.0, %v6246_v46 }
 0x80d   :  { %v3003_v40 = vmul.f32 1.442695, %v3001_v6 }
 0x80e   :  { %v2997_v43 = vpop.f32.mrb[28].mxu1 }
 0x80f   :  { %4662 = vpow2.f32 %v3003_v40  ;;  %v3002_v8 = vsub.f32 1.0, %v2997_v43  ;;  %v2999_v11 = vpop.f32.mrb[29].mxu1  ;;  %v3718_v40 = vrot.slane %v6229_v5, %v5569_v36  ;;  %v3600_v43 = vrot.slane %v6229_v5, %v6532_v2 }
 0x810   :  { %4664 = vpow2.f32 %v3215_v14  ;;  %v4661_v61 = vpop.eup %4660  ;;  %v3657_v14 = vrot.slane %v6229_v5, %v5563_v27  ;;  %v3394_v11 = vpop.trf.xlu0 }
 0x811   :  { %v3005_v7 = vmul.f32 1.442695, %v3002_v8  ;;  %4666 = vpow2.f32 %v2918_v13  ;;  %v3039_v13 = vadd.f32 %v3038_v52, %v3037_v53  ;;  %v3406_v8 = vsub.f32 1.0, %v6250_v15 }
 0x812   :  { %v6304_v15 = vmul.f32 %v3718_v40, %v6252_v10  ;;  %v3408_v10 = vsub.f32 1.0, %v6266_v51 }
 0x813   :  { %4668 = vpow2.f32 %v3005_v7  ;;  %v3595_v7 = vpop.permute.xlu1 %3594 }
 0x819   :  { %v4663_v22 = vpop.eup %4662 }
 0x81a   :  { %v4665_v44 = vpop.eup %4664  ;;  %v3007_v28 = vadd.f32 %v4663_v22, %v4661_v61  ;;  %v3354_v50 = vpop.f32.mrb[30].mxu1  ;;  %v3407_v61 = vsub.f32 1.0, %v6255_v31 }
 0x81b   :  { %v3358_v57 = vmul.f32 0.16666667, %v3354_v50  ;;  %v3361_v35 = vmul.f32 %v4665_v44, %v3354_v50  ;;  %v4102_v30 = vpop.f32.mrb[31].mxu1  ;;  %v4667_v21 = vpop.eup %4666  ;;  %v6301_v50 = vmul.f32 %v3657_v14, %v6248_v32  ;;  %v6316_v32 = vmul.f32 %v3779_v18, %v6257_v48 }
 0x81c   :  { %v3009_v1 = vmul.f32 0.5, %v3007_v28 }
 0x81d   :  { %v4669_v33 = vpop.eup %4668  ;;  %v3359_v9 = vsub.f32 1.0, %v3358_v57  ;;  %4103 = vmatprep.subr.mxu0 %v3361_v35  ;;  %v6308_v57 = vmul.f32 %v3600_v43, %v3595_v7 }
 0x81e   :  { %v3008_v23 = vadd.f32 %v4669_v33, %v4667_v21  ;;  %4104 = vmatpush3.msra.mxu0 %v3361_v35  ;;  %v3011_v59 = vmul.f32 %v6150_v29, %v3009_v1  ;;  %v6534_v35 = vld [vmem:[#allocation37_spill] sm:$0xff]  ;;  %v3409_v1 = vsub.f32 1.0, %v3393_v24 }
 0x81f   :  { %v6262_v12 = vmul.f32 %v4665_v44, %v3359_v9  ;;  %4106 = vmatmul.mubr.msk.f32.vlgmr.msra.gmra.mrb[20].mxu0 %vm3413_vm8, %v3398_v47  ;;  %v3840_v30 = vrot.slane %v6229_v5, %v6534_v35  ;;  %v6346_v24 = vld [vmem:[#allocation23] sm:$0xff] }
 0x820   :  { %v3010_v0 = vmul.f32 0.5, %v3008_v23  ;;  %4108 = vmatprep.mubr.msk.f32.mxu0 %vm3413_vm8, %v3399_v58  ;;  %v3020_v17 = vsel %vm3019_vm6, %v3011_v59, 0.0  ;;  %v3395_v58 = vpop.trf.xlu0 }
 0x821   :  { %v3362_v16 = vadd.f32 1e-30, %v6262_v12  ;;  %v6330_v26 = vmul.f32 %v3840_v30, %v6268_v54  ;;  %v3411_v51 = vsub.f32 1.0, %v3395_v58 }
 0x822   :  { %v3012_v29 = vmul.f32 %v6155_v4, %v3010_v0  ;;  %v3404_v4 = vsub.f32 1.0, %v6243_v60  ;;  %v3901_v60 = vrot.slane %v6229_v5, %v5566_v42 }
 0x823   :  { %4670 = vlog2.f32 %v3362_v16  ;;  %4109 = vmatmul.mubr.msk.f32.gmra.mrb[22].mxu0 %vm3413_vm8, %v3400_v38  ;;  %v3410_v38 = vsub.f32 1.0, %v3394_v11 }
 0x824   :  { %v3021_v56 = vsel %vm3019_vm6, %v3012_v29, 0.0  ;;  %4111 = vmatprep.mubr.msk.f32.mxu0 %vm3413_vm8, %v3401_v34  ;;  %4672 = vlog2.f32 %v3039_v13  ;;  %v6306_v37 = vmul.f32 %v3901_v60, %v3896_v45  ;;  %v3396_v16 = vpop.trf.xlu0 }
 0x825   :  { %v3022_v55 = vadd.f32 %v3021_v56, %v3020_v17  ;;  %v3412_v53 = vsub.f32 1.0, %v3396_v16 }
 0x827   :  { %v3023_v6 = vrot.slane %v3022_v55, 4  ;;  %4112 = vmatmul.mubr.msk.f32.gmra.mrb[24].mxu0 %vm3413_vm8, %v3402_v3 }
 0x828   :  { %4114 = vmatprep.mubr.msk.f32.mxu0 %vm3413_vm8, %v3403_v25 }
 0x829   :  { %v3024_v41 = vadd.f32 %v3023_v6, %v3022_v55  ;;  %v1724_v55 = vand.u32 2147483647, %v6346_v24 }
 0x82b   :  { %v3025_v46 = vrot.slane %v3024_v41, 2  ;;  %4115 = vmatmul.mubr.msk.f32.gmra.mrb[26].mxu0 %vm3413_vm8, %v3404_v4  ;;  %v1725_v40 = vsub.f32 0.0, %v1724_v55 }
 0x82c   :  { %4117 = vmatprep.mubr.msk.f32.mxu0 %vm3413_vm8, %v3405_v62 }
 0x82d   :  { %v4671_v22 = vpop.eup %4670  ;;  %v3026_v44 = vadd.f32 %v3025_v46, %v3024_v41  ;;  %v1726_v18 = vmul.f32 1.442695, %v1725_v40 }
 0x82e   :  { %v3364_v28 = vmul.f32 0.6931472, %v4671_v22  ;;  %v4673_v29 = vpop.eup %4672 }
 0x82f   :  { %v3027_v31 = vrot.slane %v3026_v44, 1  ;;  %4118 = vmatmul.mubr.msk.f32.gmra.mrb[28].mxu0 %vm3413_vm8, %v3406_v8  ;;  %v6342_v17 = vmul.f32 0.6931472, %v4673_v29 }
 0x830   :  { %v3677_v47 = vmul.f32 %v6301_v50, %v3364_v28  ;;  %v3738_v21 = vmul.f32 %v6304_v15, %v3364_v28  ;;  %4120 = vmatprep.mubr.msk.f32.mxu0 %vm3413_vm8, %v3407_v61  ;;  %v6321_v33 = vmul.f32 %v6306_v37, %v3364_v28  ;;  %v6324_v5 = vmul.f32 %v6308_v57, %v3364_v28 }
 0x831   :  { %v3028_v9 = vadd.f32 %v3027_v31, %v3026_v44  ;;  %v3799_v48 = vmul.f32 %v6316_v32, %v3364_v28  ;;  %v3860_v34 = vmul.f32 %v6330_v26, %v3364_v28 }
 0x832   :  { %v3678_v23 = vsel %vm3413_vm8, %v3677_v47, 0.0  ;;  %v3739_v59 = vsel %vm3413_vm8, %v3738_v21, 0.0 }
 0x833   :  { %3679 = vadd.xlane.f32.xlu0 %v3678_v23  ;;  %3740 = vadd.xlane.f32.xlu1 %v3739_v59  ;;  %4674 = vlog2.f32 %v3028_v9  ;;  %v3800_v0 = vsel %vm3413_vm8, %v3799_v48, 0.0  ;;  %v3861_v54 = vsel %vm3413_vm8, %v3860_v34, 0.0 }
 0x834   :  { %4121 = vmatmul.mubr.msk.f32.gmra.mrb[30].mxu0 %vm3413_vm8, %v3408_v10 }
 0x835   :  { %4123 = vmatprep.mubr.msk.f32.mxu0 %vm3413_vm8, %v3409_v1 }
 0x837   :  { %3801 = vadd.xlane.f32.xlu1 %v3800_v0 }
 0x838   :  { %4124 = vmatmul.mubr.msk.f32.gmra.mrb[32].mxu0 %vm3413_vm8, %v3410_v38 }
 0x839   :  { %4126 = vmatprep.mubr.msk.f32.mxu0 %vm3413_vm8, %v3411_v51 }
 0x83b   :  { %3862 = vadd.xlane.f32.xlu1 %v3861_v54 }
 0x83c   :  { %4127 = vmatmul.mubr.msk.f32.gmra.mrb[34].mxu0 %vm3413_vm8, %v3412_v53 }
 0x83d   :  { %v4675_v3 = vpop.eup %4674 }
 0x83e   :  { %v6340_v25 = vmul.f32 0.6931472, %v4675_v3 }
 0x840   :  { %v3044_v56 = vsub.f32 %v6340_v25, %v6342_v17 }
 0x8f2   :  { %v4107_v45 = vpop.f32.mrb[20].mxu0 }
 0x8f3   :  { %v3528_v52 = vpop.f32.mrb[21].mxu0 }
 0x8f4   :  { %v3662_v4 = vrot.slane %v3528_v52, %v5563_v27  ;;  %v3723_v6 = vrot.slane %v3528_v52, %v5569_v36  ;;  %v3784_v62 = vrot.slane %v3528_v52, %v3778_v20  ;;  %v3845_v41 = vrot.slane %v3528_v52, %v6534_v35 }
 0x8f5   :  { %v3906_v14 = vrot.slane %v3528_v52, %v5566_v42  ;;  %v3605_v13 = vrot.slane %v3528_v52, %v6532_v2 }
 0x8f6   :  { %v3663_v60 = vadd.f32 %v3662_v4, %v6262_v12  ;;  %v3724_v43 = vadd.f32 %v3723_v6, %v6262_v12  ;;  %v3785_v8 = vadd.f32 %v3784_v62, %v6262_v12  ;;  %v4110_v11 = vpop.f32.mrb[22].mxu0  ;;  %v3846_v42 = vadd.f32 %v3845_v41, %v6262_v12 }
 0x8f7   :  { %v3907_v27 = vadd.f32 %v3906_v14, %v6262_v12  ;;  %v3606_v36 = vadd.f32 %v3605_v13, %v6262_v12  ;;  %v3537_v49 = vpop.f32.mrb[23].mxu0 }
 0x8f8   :  { %v3664_v20 = vadd.f32 1e-30, %v3663_v60  ;;  %v3725_v46 = vadd.f32 1e-30, %v3724_v43  ;;  %v3786_v7 = vadd.f32 1e-30, %v3785_v8 }
 0x8f9   :  { %v3908_v2 = vadd.f32 1e-30, %v3907_v27  ;;  %v3607_v22 = vadd.f32 1e-30, %v3606_v36  ;;  %v3847_v28 = vadd.f32 1e-30, %v3846_v42 }
 0x8fa   :  { %4676 = vlog2.f32 %v3664_v20  ;;  %v4113_v61 = vpop.f32.mrb[24].mxu0  ;;  %v1721_v60 = vmax.f32 %v6346_v24, 0.0  ;;  %v3922_v8 = vsel %vm3413_vm8, %v6321_v33, 0.0  ;;  %v3621_v27 = vsel %vm3413_vm8, %v6324_v5, 0.0 }
 0x8fb   :  { %4678 = vlog2.f32 %v3725_v46  ;;  %v3545_v44 = vpop.f32.mrb[25].mxu0  ;;  %v4025_v36 = vsel %vm1718_vm9, 1.0, %v6531_v63  ;;  %v3688_v20 = vsel %vm3687_vm10, %v6199_v19, 0.0  ;;  %v3749_v5 = vsel %vm3748_vm11, %v6199_v19, 0.0 }
 0x8fc   :  { %4680 = vlog2.f32 %v3786_v7  ;;  %v3689_v46 = vrot.slane %v3688_v20, 4  ;;  %v3750_v7 = vrot.slane %v3749_v5, 4 }
 0x8fd   :  { %4682 = vpow2.f32 %v1726_v18  ;;  %v3810_v18 = vsel %vm3809_vm12, %v6199_v19, 0.0 }
 0x8fe   :  { %4684 = vlog2.f32 %v3908_v2  ;;  %v4116_v35 = vpop.f32.mrb[26].mxu0  ;;  %v3690_v42 = vadd.f32 %v3689_v46, %v3688_v20  ;;  %v3751_v25 = vadd.f32 %v3750_v7, %v3749_v5  ;;  %v3811_v17 = vrot.slane %v3810_v18, 4 }
 0x8ff   :  { %4686 = vlog2.f32 %v3607_v22  ;;  %v3553_v30 = vpop.f32.mrb[27].mxu0  ;;  %v3871_v2 = vsel %vm3870_vm13, %v6199_v19, 0.0 }
 0x900   :  { %4688 = vlog2.f32 %v3847_v28  ;;  %v3752_v61 = vrot.slane %v3751_v25, 2  ;;  %v3812_v22 = vadd.f32 %v3811_v17, %v3810_v18  ;;  %v3872_v44 = vrot.slane %v3871_v2, 4 }
 0x902   :  { %v4119_v31 = vpop.f32.mrb[28].mxu0  ;;  %v3753_v35 = vadd.f32 %v3752_v61, %v3751_v25  ;;  %v3813_v30 = vrot.slane %v3812_v22, 2 }
 0x903   :  { %v3561_v47 = vpop.f32.mrb[29].mxu0  ;;  %v3873_v31 = vadd.f32 %v3872_v44, %v3871_v2 }
 0x904   :  { %v4677_v21 = vpop.eup %4676 }
 0x905   :  { %v4679_v10 = vpop.eup %4678  ;;  %v3666_v12 = vmul.f32 0.6931472, %v4677_v21  ;;  %v3932_v21 = vsel %vm3931_vm14, %v6199_v19, 0.0 }
 0x906   :  { %v4681_v1 = vpop.eup %4680  ;;  %v3727_v58 = vmul.f32 0.6931472, %v4679_v10  ;;  %v3754_v10 = vrot.slane %v3753_v35, 1 }
 0x907   :  { %v4683_v9 = vpop.eup %4682  ;;  %v3667_v23 = vmul.f32 %v3666_v12, %v6301_v50  ;;  %v4122_v59 = vpop.f32.mrb[30].mxu0  ;;  %v3788_v16 = vmul.f32 0.6931472, %v4681_v1  ;;  %v3814_v12 = vadd.f32 %v3813_v30, %v3812_v22  ;;  %v3874_v1 = vrot.slane %v3873_v31, 2 }
 0x908   :  { %v4685_v48 = vpop.eup %4684  ;;  %v3569_v38 = vpop.f32.mrb[31].mxu0  ;;  %v3728_v34 = vmul.f32 %v3727_v58, %v6304_v15  ;;  %v1728_v55 = vadd.f32 1.0, %v4683_v9  ;;  %v3933_v9 = vrot.slane %v3932_v21, 4  ;;  %v3755_v59 = vadd.f32 %v3754_v10, %v3753_v35 }
 0x909   :  { %v4687_v51 = vpop.eup %4686  ;;  %v3668_v0 = vsel %vm3413_vm8, %v3667_v23, 0.0  ;;  %v3910_v29 = vmul.f32 0.6931472, %v4685_v48  ;;  %v3789_v6 = vmul.f32 %v3788_v16, %v6316_v32  ;;  %v1722_v32 = vmul.f32 %v6346_v24, %v6199_v19  ;;  %v3741_v23 = vpop.xlane.xlu1 %3740 }
 0x90a   :  { %v4689_v53 = vpop.eup %4688  ;;  %3669 = vadd.xlane.f32.xlu1 %v3668_v0  ;;  %v3609_v54 = vmul.f32 0.6931472, %v4687_v51  ;;  %v3729_v4 = vsel %vm3413_vm8, %v3728_v34, 0.0  ;;  %4690 = vlog2.f32 %v1728_v55  ;;  %v3045_v24 = vsel %vm3019_vm6, %v3044_v56, 0.0  ;;  %v3680_v34 = vpop.xlane.xlu0 %3679 }
 0x90b   :  { %v3911_v3 = vmul.f32 %v3910_v29, %v6306_v37  ;;  %v4125_v45 = vpop.f32.mrb[32].mxu0  ;;  %v3849_v62 = vmul.f32 0.6931472, %v4689_v53  ;;  %v3790_v14 = vsel %vm3413_vm8, %v3789_v6, 0.0  ;;  %v3691_v56 = vrot.slane %v3690_v42, 2 }
 0x90c   :  { %v3610_v52 = vmul.f32 %v3609_v54, %v6308_v57  ;;  %v3577_v50 = vpop.f32.mrb[33].mxu0  ;;  %v3815_v48 = vrot.slane %v3814_v12, 1  ;;  %v3875_v38 = vadd.f32 %v3874_v1, %v3873_v31  ;;  %v3934_v0 = vadd.f32 %v3933_v9, %v3932_v21 }
 0x90d   :  { %v3850_v40 = vmul.f32 %v3849_v62, %v6330_v26  ;;  %v3912_v57 = vsel %vm3413_vm8, %v3911_v3, 0.0  ;;  %v1723_v26 = vsub.f32 %v1721_v60, %v1722_v32  ;;  %v3692_v28 = vadd.f32 %v3691_v56, %v3690_v42  ;;  %v3802_v3 = vpop.xlane.xlu1 %3801 }
 0x90e   :  { %3730 = vadd.xlane.f32.xlu1 %v3729_v4  ;;  %v3611_v33 = vsel %vm3413_vm8, %v3610_v52, 0.0  ;;  %v3757_v16 = vsub.f32 8.0, %v3755_v59  ;;  %v3816_v29 = vadd.f32 %v3815_v48, %v3814_v12  ;;  %v3876_v53 = vrot.slane %v3875_v38, 1 }
 0x90f   :  { %v4128_v15 = vpop.f32.mrb[34].mxu0  ;;  %v3851_v37 = vsel %vm3413_vm8, %v3850_v40, 0.0  ;;  %v3693_v47 = vrot.slane %v3692_v28, 1  ;;  %v3681_v54 = vrot.slane %v3680_v34, 4  ;;  %v3935_v45 = vrot.slane %v3934_v0, 2 }
 0x910   :  { %v3585_v41 = vpop.f32.mrb[35].mxu0  ;;  %v3742_v52 = vrot.slane %v3741_v23, 4  ;;  %v3758_v50 = vadd.f32 1.0, %v3757_v16  ;;  %v3818_v4 = vsub.f32 8.0, %v3816_v29  ;;  %v3877_v6 = vadd.f32 %v3876_v53, %v3875_v38 }
 0x911   :  { %v3694_v58 = vadd.f32 %v3693_v47, %v3692_v28  ;;  %v3682_v62 = vadd.f32 %v3681_v54, %v3680_v34  ;;  %v3936_v15 = vadd.f32 %v3935_v45, %v3934_v0  ;;  %v3863_v40 = vpop.xlane.xlu1 %3862  ;;  %v3817_v25 = vmul.f32 %v3816_v29, %v3816_v29 }
 0x912   :  { %3791 = vadd.xlane.f32.xlu1 %v3790_v14  ;;  %v3743_v41 = vadd.f32 %v3742_v52, %v3741_v23  ;;  %v3803_v14 = vrot.slane %v3802_v3, 4  ;;  %v3878_v1 = vmul.f32 %v3877_v6, %v3877_v6 }
 0x913   :  { %v3696_v51 = vsub.f32 8.0, %v3694_v58  ;;  %v3683_v60 = vrot.slane %v3682_v62, 2  ;;  %v3937_v32 = vrot.slane %v3936_v15, 1  ;;  %v3825_v12 = vmax.f32 %v3817_v25, 1.0 }
 0x914   :  { %v4691_v13 = vpop.eup %4690  ;;  %v3886_v45 = vmax.f32 %v3878_v1, 1.0 }
 0x915   :  { %v1730_v43 = vmul.f32 0.6931472, %v4691_v13  ;;  %v3697_v55 = vadd.f32 1.0, %v3696_v51  ;;  %v3819_v13 = vadd.f32 1.0, %v3818_v4  ;;  %v3938_v20 = vadd.f32 %v3937_v32, %v3936_v15 }
 0x916   :  { %3852 = vadd.xlane.f32.xlu1 %v3851_v37  ;;  %v3695_v37 = vmul.f32 %v3694_v58, %v3694_v58 }
 0x917   :  { %v1731_v11 = vadd.f32 %v1730_v43, %v1723_v26  ;;  %4692 = vlog2.f32 %v3697_v55  ;;  %v3744_v43 = vrot.slane %v3743_v41, 2  ;;  %v3940_v44 = vsub.f32 8.0, %v3938_v20 }
 0x918   :  { %4694 = vlog2.f32 %v3758_v50 }
 0x919   :  { %v1732_v49 = vmul.f32 %v4025_v36, %v1731_v11  ;;  %v3703_v11 = vmax.f32 %v3695_v37, 1.0  ;;  %v3756_v36 = vmul.f32 %v3755_v59, %v3755_v59  ;;  %4696 = vlog2.f32 %v3819_v13 }
 0x91a   :  { %3913 = vadd.xlane.f32.xlu1 %v3912_v57  ;;  %v3879_v57 = vsub.f32 8.0, %v3877_v6  ;;  %v3745_v7 = vadd.f32 %v3744_v43, %v3743_v41  ;;  %v3941_v51 = vadd.f32 1.0, %v3940_v44 }
 0x91b   :  { %4698 = vrcp.f32 %v3703_v11  ;;  %v3764_v2 = vmax.f32 %v3756_v36, 1.0 }
 0x91c   :  { %v3746_v47 = vrot.slane %v3745_v7, 1 }
 0x91e   :  { %3923 = vadd.xlane.f32.xlu1 %v3922_v8  ;;  %v3804_v8 = vadd.f32 %v3803_v14, %v3802_v3  ;;  %v3747_v54 = vadd.f32 %v3746_v47, %v3745_v7 }
 0x920   :  { %v3805_v42 = vrot.slane %v3804_v8, 2 }
 0x921   :  { %v4693_v5 = vpop.eup %4692 }
 0x922   :  { %3622 = vadd.xlane.f32.xlu1 %v3621_v27  ;;  %v4695_v28 = vpop.eup %4694  ;;  %v3700_v31 = vmul.f32 0.6931472, %v4693_v5  ;;  %v3806_v21 = vadd.f32 %v3805_v42, %v3804_v8  ;;  %v3939_v8 = vmul.f32 %v3938_v20, %v3938_v20 }
 0x923   :  { %v3761_v38 = vmul.f32 0.6931472, %v4695_v28  ;;  %v4697_v0 = vpop.eup %4696 }
 0x924   :  { %v3701_v53 = vmul.f32 %v3700_v31, %v3695_v37  ;;  %v3807_v3 = vrot.slane %v3806_v21, 1  ;;  %v3822_v14 = vmul.f32 0.6931472, %v4697_v0 }
 0x925   :  { %v3762_v41 = vmul.f32 %v3761_v38, %v3756_v36 }
 0x926   :  { %1733 = vadd.xlane.f32.xlu1 %v1732_v49  ;;  %v3880_v49 = vadd.f32 1.0, %v3879_v57  ;;  %v3808_v37 = vadd.f32 %v3807_v3, %v3806_v21 }
 0x928   :  { %4700 = vlog2.f32 %v3880_v49 }
 0x929   :  { %4702 = vrcp.f32 %v3764_v2  ;;  %v3947_v2 = vmax.f32 %v3939_v8, 1.0 }
 0x92a   :  { %3046 = vadd.xlane.f32.xlu1 %v3045_v24  ;;  %v3684_v24 = vadd.f32 %v3683_v60, %v3682_v62  ;;  %4704 = vrcp.f32 %v3825_v12  ;;  %v4699_v62 = vpop.eup %4698 }
 0x92b   :  { %4706 = vlog2.f32 %v3941_v51 }
 0x92c   :  { %v3685_v61 = vrot.slane %v3684_v24, 1  ;;  %4708 = vrcp.f32 %v3886_v45 }
 0x92d   :  { %4710 = vrcp.f32 %v3947_v2 }
 0x92e   :  { %3612 = vadd.xlane.f32.xlu1 %v3611_v33  ;;  %v3864_v33 = vrot.slane %v3863_v40, 4  ;;  %v3686_v59 = vadd.f32 %v3685_v61, %v3684_v24 }
 0x930   :  { %v3865_v22 = vadd.f32 %v3864_v33, %v3863_v40 }
 0x932   :  { %v3866_v48 = vrot.slane %v3865_v22, 2  ;;  %v4701_v40 = vpop.eup %4700 }
 0x933   :  { %v3883_v5 = vmul.f32 0.6931472, %v4701_v40  ;;  %v4703_v36 = vpop.eup %4702 }
 0x934   :  { %v3867_v15 = vadd.f32 %v3866_v48, %v3865_v22  ;;  %v4705_v28 = vpop.eup %4704 }
 0x935   :  { %v3884_v31 = vmul.f32 %v3883_v5, %v3878_v1  ;;  %v4707_v12 = vpop.eup %4706 }
 0x936   :  { %v3868_v24 = vrot.slane %v3867_v15, 1 }
 0x997   :  { %v3670_v26 = vpop.xlane.xlu1 %3669 }
 0x998   :  { %v3671_v27 = vrot.slane %v3670_v26, 4 }
 0x99a   :  { %v3672_v46 = vadd.f32 %v3671_v27, %v3670_v26 }
 0x99b   :  { %v3731_v18 = vpop.xlane.xlu1 %3730 }
 0x99c   :  { %v3673_v17 = vrot.slane %v3672_v46, 2  ;;  %v3732_v56 = vrot.slane %v3731_v18, 4 }
 0x99e   :  { %v3674_v35 = vadd.f32 %v3673_v17, %v3672_v46  ;;  %v3733_v30 = vadd.f32 %v3732_v56, %v3731_v18  ;;  %v3823_v46 = vmul.f32 %v3822_v14, %v3817_v25 }
 0x99f   :  { %v3792_v10 = vpop.xlane.xlu1 %3791 }
 0x9a0   :  { %v3675_v58 = vrot.slane %v3674_v35, 1  ;;  %v3734_v9 = vrot.slane %v3733_v30, 2  ;;  %v3793_v23 = vrot.slane %v3792_v10, 4 }
 0x9a2   :  { %v3676_v34 = vadd.f32 %v3675_v58, %v3674_v35  ;;  %v3735_v16 = vadd.f32 %v3734_v9, %v3733_v30  ;;  %v3794_v29 = vadd.f32 %v3793_v23, %v3792_v10  ;;  %v3869_v35 = vadd.f32 %v3868_v24, %v3867_v15 }
 0x9a3   :  { %v3853_v55 = vpop.xlane.xlu1 %3852 }
 0x9a4   :  { %v3698_v52 = vsub.f32 %v3676_v34, %v3686_v59  ;;  %v3736_v50 = vrot.slane %v3735_v16, 1  ;;  %v3795_v4 = vrot.slane %v3794_v29, 2  ;;  %v3854_v6 = vrot.slane %v3853_v55, 4  ;;  %v4709_v59 = vpop.eup %4708 }
 0x9a5   :  { %v3944_v34 = vmul.f32 0.6931472, %v4707_v12 }
 0x9a6   :  { %v3737_v13 = vadd.f32 %v3736_v50, %v3735_v16  ;;  %v3796_v57 = vadd.f32 %v3795_v4, %v3794_v29  ;;  %v3855_v60 = vadd.f32 %v3854_v6, %v3853_v55  ;;  %v3702_v32 = vsub.f32 %v3698_v52, %v3701_v53  ;;  %v4711_v6 = vpop.eup %4710 }
 0x9a7   :  { %v3914_v43 = vpop.xlane.xlu1 %3913  ;;  %v3945_v45 = vmul.f32 %v3944_v34, %v3939_v8 }
 0x9a8   :  { %v3759_v26 = vsub.f32 %v3737_v13, %v3747_v54  ;;  %v3797_v11 = vrot.slane %v3796_v57, 1  ;;  %v3856_v27 = vrot.slane %v3855_v60, 2  ;;  %v3915_v49 = vrot.slane %v3914_v43, 4 }
 0x9a9   :  { %v3705_v33 = vmul.f32 %v4699_v62, %v3702_v32  ;;  %v4069_v32 = vsel %vm3955_vm0, 1.0, %v6531_v63 }
 0x9aa   :  { %v3798_v7 = vadd.f32 %v3797_v11, %v3796_v57  ;;  %v3857_v42 = vadd.f32 %v3856_v27, %v3855_v60  ;;  %v3916_v18 = vadd.f32 %v3915_v49, %v3914_v43  ;;  %v3763_v17 = vsub.f32 %v3759_v26, %v3762_v41 }
 0x9ab   :  { %3707 = vrot.lane.b32.xlu1 %v3705_v33, %s5091_s11  ;;  %v3924_v56 = vpop.xlane.xlu1 %3923  ;;  %v4070_v60 = vsel %vm3959_vm15, 1.0, %v6531_v63  ;;  %v3631_v11 = vsel %vm3630_vm1, %v6199_v19, 0.0 }
 0x9ac   :  { %v3820_v61 = vsub.f32 %v3798_v7, %v3808_v37  ;;  %v3858_v22 = vrot.slane %v3857_v42, 1  ;;  %v3917_v20 = vrot.slane %v3916_v18, 2  ;;  %v3925_v44 = vrot.slane %v3924_v56, 4 }
 0x9ad   :  { %v3766_v30 = vmul.f32 %v4703_v36, %v3763_v17  ;;  %v3632_v27 = vrot.slane %v3631_v11, 4 }
 0x9ae   :  { %v3859_v47 = vadd.f32 %v3858_v22, %v3857_v42  ;;  %v3918_v25 = vadd.f32 %v3917_v20, %v3916_v18  ;;  %v3926_v21 = vadd.f32 %v3925_v44, %v3924_v56  ;;  %v3824_v10 = vsub.f32 %v3820_v61, %v3823_v46 }
 0x9af   :  { %3768 = vrot.lane.b32.xlu1 %v3766_v30, %s5092_s0  ;;  %v3623_v58 = vpop.xlane.xlu1 %3622  ;;  %v3633_v49 = vadd.f32 %v3632_v27, %v3631_v11 }
 0x9b0   :  { %v3881_v9 = vsub.f32 %v3859_v47, %v3869_v35  ;;  %v3927_v23 = vrot.slane %v3926_v21, 2  ;;  %v3827_v48 = vmul.f32 %v4705_v28, %v3824_v10  ;;  %v3919_v38 = vrot.slane %v3918_v25, 1 }
 0x9b1   :  { %v3634_v24 = vrot.slane %v3633_v49, 2  ;;  %v3624_v18 = vrot.slane %v3623_v58, 4 }
 0x9b2   :  { %v3928_v51 = vadd.f32 %v3927_v23, %v3926_v21  ;;  %v3885_v0 = vsub.f32 %v3881_v9, %v3884_v31  ;;  %v3920_v54 = vadd.f32 %v3919_v38, %v3918_v25 }
 0x9b3   :  { %3829 = vrot.lane.b32.xlu1 %v3827_v48, %s5093_s4  ;;  %v1734_v1 = vpop.xlane.xlu1 %1733  ;;  %v3635_v33 = vadd.f32 %v3634_v24, %v3633_v49  ;;  %v3625_v2 = vadd.f32 %v3624_v18, %v3623_v58 }
 0x9b4   :  { %v3929_v16 = vrot.slane %v3928_v51, 1  ;;  %v1735_v29 = vrot.slane %v1734_v1, 4  ;;  %v3888_v53 = vmul.f32 %v4709_v59, %v3885_v0 }
 0x9b5   :  { %v3636_v46 = vrot.slane %v3635_v33, 1  ;;  %v3626_v22 = vrot.slane %v3625_v2, 2 }
 0x9b6   :  { %v3930_v3 = vadd.f32 %v3929_v16, %v3928_v51  ;;  %v1736_v55 = vadd.f32 %v1735_v29, %v1734_v1 }
 0x9b7   :  { %3890 = vrot.lane.b32.xlu1 %v3888_v53, %s5094_s17  ;;  %v3047_v52 = vpop.xlane.xlu1 %3046  ;;  %v3637_v5 = vadd.f32 %v3636_v46, %v3635_v33  ;;  %v3627_v28 = vadd.f32 %v3626_v22, %v3625_v2 }
 0x9b8   :  { %v3942_v50 = vsub.f32 %v3920_v54, %v3930_v3  ;;  %v1737_v4 = vrot.slane %v1736_v55, 2  ;;  %v3048_v15 = vmul.f32 0.0625, %v3047_v52 }
 0x9b9   :  { %v3639_v7 = vsub.f32 8.0, %v3637_v5  ;;  %v3638_v20 = vmul.f32 %v3637_v5, %v3637_v5  ;;  %v3628_v31 = vrot.slane %v3627_v28, 1 }
 0x9ba   :  { %v1738_v62 = vadd.f32 %v1737_v4, %v1736_v55  ;;  %v3946_v41 = vsub.f32 %v3942_v50, %v3945_v45  ;;  %v4048_v57 = vadd.f32 -2.7725887, %v3048_v15 }
 0x9bb   :  { %v3613_v36 = vpop.xlane.xlu1 %3612  ;;  %v3640_v17 = vadd.f32 1.0, %v3639_v7  ;;  %v3646_v19 = vmax.f32 %v3638_v20, 1.0  ;;  %v3629_v21 = vadd.f32 %v3628_v31, %v3627_v28 }
 0x9bc   :  { %v1739_v14 = vrot.slane %v1738_v62, 1  ;;  %v3949_v40 = vmul.f32 %v4711_v6, %v3946_v41  ;;  %v3962_v43 = vmul.f32 %v4070_v60, %v4048_v57  ;;  %v3614_v42 = vrot.slane %v3613_v36, 4 }
 0x9bd   :  { %4712 = vlog2.f32 %v3640_v17 }
 0x9be   :  { %v1740_v13 = vadd.f32 %v1739_v14, %v1738_v62  ;;  %3951 = vrot.lane.b32.xlu0 %v3949_v40, %s5095_s29  ;;  %v3615_v56 = vadd.f32 %v3614_v42, %v3613_v36  ;;  %4714 = vrcp.f32 %v3646_v19 }
 0x9c0   :  { %v1741_v37 = vmul.f32 0.020833334, %v1740_v13  ;;  %v3616_v61 = vrot.slane %v3615_v56, 2 }
 0x9c2   :  { %v3958_v8 = vmul.f32 %v4069_v32, %v1741_v37  ;;  %v3617_v44 = vadd.f32 %v3616_v61, %v3615_v56 }
 0x9c4   :  { %v6396_v26 = vadd.f32 %v3962_v43, %v3958_v8  ;;  %v3618_v35 = vrot.slane %v3617_v44, 1 }
 0x9c6   :  { %v3619_v47 = vadd.f32 %v3618_v35, %v3617_v44 }
 0x9c7   :  { %v4713_v30 = vpop.eup %4712 }
 0x9c8   :  { %v3643_v25 = vmul.f32 0.6931472, %v4713_v30  ;;  %v3641_v12 = vsub.f32 %v3619_v47, %v3629_v21  ;;  %v4715_v58 = vpop.eup %4714 }
 0x9ca   :  { %v3644_v9 = vmul.f32 %v3643_v25, %v3638_v20 }
 0x9cc   :  { %v3645_v59 = vsub.f32 %v3641_v12, %v3644_v9 }
 0x9ce   :  { %v3648_v38 = vmul.f32 %v4715_v58, %v3645_v59 }
 0xa1d   :  { %v3708_v10 = vpop.permute.xlu1 %3707 }
 0xa1e   :  { %v3710_v51 = vadd.f32 %v3708_v10, %v3648_v38 }
 0xa21   :  { %v3769_v23 = vpop.permute.xlu1 %3768 }
 0xa22   :  { %v3771_v0 = vadd.f32 %v3769_v23, %v3710_v51 }
 0xa25   :  { %v3830_v48 = vpop.permute.xlu1 %3829 }
 0xa26   :  { %v3832_v1 = vadd.f32 %v3830_v48, %v3771_v0 }
 0xa29   :  { %v3891_v34 = vpop.permute.xlu1 %3890 }
 0xa2a   :  { %v3893_v16 = vadd.f32 %v3891_v34, %v3832_v1 }
 0xa30   :  { %v3952_v29 = vpop.permute.xlu0 %3951 }
 0xa31   :  { %v3954_v53 = vadd.f32 %v3952_v29, %v3893_v16 }
 0xa33   :  { %3969 = vperm.xlu1 %4570, %v3954_v53  }
 0xa34   :  { %5014 = shalt.err (!%p5011_p10)
}
 0xa35   :  { %s5015_s15 = scalar_lea.hbm %s6448_s19, 128 }
 0xa36   :  { %p5016_p11 = scmp.ne.s32.totalorder %s6448_s19, %s5015_s15  ;;  %p5019_p12 = scmp.lt.u32.totalorder %s5015_s15, %s6448_s19 }
 0xa38   :  { %p5021_p13 = pnand %p5019_p12, %p5016_p11 }
 0xa3a   :  { %5024 = shalt.err (!%p5021_p13)
}
 0xa3b   :  { %3984 = dma.vmem_to_hbm [thread:$0]  %s3982_s16, 128, %s6448_s19, [#allocation4]  }
 0xa3c   :  { %s5025_s2 = scalar_lea.vmem %s3992_s18, 128  ;;  %p5030_p1 = scmp.lt.s32.totalorder %s3992_s18, %s3992_s18 }
 0xa3d   :  { %p5026_p0 = scmp.ne.s32.totalorder %s3992_s18, %s5025_s2  ;;  %p5031_p2 = scmp.lt.s32.totalorder %s5025_s2, %s5025_s2 }
 0xa3f   :  { %p5032_p3 = por %p5031_p2, %p5030_p1 }
 0xa41   :  { %p5033_p4 = pnand %p5032_p3, %p5026_p0 }
 0xa43   :  { %5036 = shalt.err (!%p5033_p4)
}
 0xa44   :  { %s6535_s14 = sld [smem:[#allocation59_spill]] }
 0xa4a   :  { %s5037_s24 = scalar_lea.hbm %s6535_s14, 128 }
 0xa4b   :  { %p5038_p5 = scmp.ne.s32.totalorder %s6535_s14, %s5037_s24  ;;  %p5041_p6 = scmp.lt.u32.totalorder %s5037_s24, %s6535_s14 }
 0xa4d   :  { %p5043_p7 = pnand %p5041_p6, %p5038_p5 }
 0xa4f   :  { %5046 = shalt.err (!%p5043_p7)
}
 0xa50   :  { %3994 = dma.vmem_to_hbm [thread:$0]  %s3992_s18, 128, %s6535_s14, [#allocation25]   ;;  %vm3964_vm2 = vcmp.eq.s32.totalorder %v6142_v39, 2 }
 0xa51   :  { %v4071_v54 = vsel %vm3964_vm2, 1.0, %v6531_v63  ;;  %s6536_s0 = sld [smem:[#allocation60_spill]] }
 0xab2   :  { %v3970_v3 = vpop.permute.xlu1 %3969 }
 0xab3   :  { %v3972_v55 = vmul.f32 %v4071_v54, %v3970_v3 }
 0xab5   :  { %v3973_v45 = vadd.f32 %v3972_v55, %v6396_v26 }
 0xab7   :  { %3974 = vst [vmem:[%s6536_s0] sm:$0x1] %v3973_v45 }
 0xab8   :  { %5061 = dma.done.wait [#allocation4], 128  }
 0xab9   :  { %5062 = vsyncadd [#allocation4], 4294967168 }
 0xaba   :  { %5063 = dma.done.wait [#allocation25], 128  }
 0xabb   :  { %5064 = vsyncadd [#allocation25], 4294967168 }
 0xabc   :  { %4005 = vsyncpa [#allocation3], 1 }
 0xabd   :  { %4006 = vsyncpa [#allocation6], 1 }
 0xabe   :  { %4007 = vsyncpa [#allocation9], 1 }
 0xabf   :  { %4008 = vsyncpa [#allocation12], 1 }
 0xac0   :  { %4009 = vsyncpa [#allocation15], 1 }
 0xac1   :  { %4010 = vsyncpa [#allocation18], 1 }
 0xac2   :  { %4011 = vsyncpa [#allocation21], 1 }
 0xac3   :  { %4012 = vsyncpa [#allocation4], 1 }
 0xac4   :  { %4013 = vsyncpa [#allocation25], 1 }

</bundles_post_ra>
